<compile_context>
chip_gen: v5e
topology: v5e:2x2
jax: 0.10.0
libtpu: 0.0.40
codegen_flags: <defaults>
</compile_context>

<pallas_src>
import jax
import jax.numpy as jnp
import numpy as np
from jax.experimental import pallas as pl
from jax.experimental.pallas import tpu as pltpu


# ----------------------------------------------------------------------------
# Fused double_conv kernel (one batch element per grid step)
# ----------------------------------------------------------------------------
def _double_conv_kernel(x_ref,
                        w1_ref, s1_ref, b1_ref,
                        w2_ref, s2_ref, b2_ref,
                        w3_ref, s3_ref, b3_ref,
                        o_ref,
                        p1_ref, p2_ref, p3_ref):
    """Full pipeline for one batch element (NHWC layout in VMEM).

    x_ref : (H, W, Cin)        f32   input tile
    wN_ref: (9*CinN, CoutN)    bf16  im2col-flattened weights ((dy,dx,cin) major->minor)
    sN/bN : (1, CoutN)         f32   folded BN scale / bias (conv bias folded in)
    o_ref : (C3, H/4 * W/4)    f32   CHW-flattened final output
    pN_ref: (h+2, w+2, c)      f32   zero-padded activation scratch for stage N
    """
    H, W, _ = x_ref.shape

    def conv3x3_bn(p_ref, w_ref, s_ref, b_ref, h, w, relu):
        # One (h*w, 9c) @ (9c, cout) MXU GEMM over the padded scratch buffer.
        c = p_ref.shape[-1]
        slabs = [p_ref[pl.ds(dy, h), pl.ds(dx, w), :]
                 for dy in range(3) for dx in range(3)]          # 9 x (h, w, c)
        patches = jnp.concatenate(slabs, axis=-1).reshape(h * w, 9 * c)
        acc = jnp.dot(patches.astype(w_ref.dtype), w_ref[...],
                      preferred_element_type=jnp.float32)        # (h*w, cout) f32
        y = acc * s_ref[...] + b_ref[...]                        # folded BN, f32
        return jnp.maximum(y, 0.0) if relu else y

    def maxpool2x2(y, h, w):
        # y: (h*w, c) f32 -> (h/2, w/2, c); reshapes keep the lane (c) dim intact.
        c = y.shape[-1]
        hh, wh = h // 2, w // 2
        y = y.reshape(h, wh, 2, c)
        y = jnp.maximum(y[:, :, 0, :], y[:, :, 1, :])            # pool along W
        y = y.reshape(hh, 2, wh, c)
        return jnp.maximum(y[:, 0], y[:, 1])                     # pool along H

    def pad_into(p_ref, val, h, w):
        # In-kernel zero padding: zero the scratch, then write the interior.
        p_ref[...] = jnp.zeros(p_ref.shape, p_ref.dtype)
        p_ref[pl.ds(1, h), pl.ds(1, w), :] = val

    # ---- stage 1: conv(Cin->C1) + BN + ReLU + maxpool(2) -------------------
    pad_into(p1_ref, x_ref[...], H, W)
    y1 = conv3x3_bn(p1_ref, w1_ref, s1_ref, b1_ref, H, W, relu=True)
    a1 = maxpool2x2(y1, H, W)                                    # (H/2, W/2, C1)

    # ---- stage 2: conv(C1->C2) + BN + ReLU + maxpool(2) --------------------
    H2, W2 = H // 2, W // 2
    pad_into(p2_ref, a1, H2, W2)
    y2 = conv3x3_bn(p2_ref, w2_ref, s2_ref, b2_ref, H2, W2, relu=True)
    a2 = maxpool2x2(y2, H2, W2)                                  # (H/4, W/4, C2)

    # ---- stage 3: conv(C2->C3) + BN (no ReLU, no pool) ---------------------
    H3, W3 = H2 // 2, W2 // 2
    pad_into(p3_ref, a2, H3, W3)
    y3 = conv3x3_bn(p3_ref, w3_ref, s3_ref, b3_ref, H3, W3, relu=False)  # (H3*W3, C3)

    # Store as a CHW slab so the wrapper only needs a pure reshape to NCHW.
    o_ref[...] = y3.T                                            # (C3, H3*W3)


@jax.jit
def double_conv_forward(x_nchw, params):
    (w1, s1, b1), (w2, s2, b2), (w3, s3, b3) = params
    N, Cin, H, W = x_nchw.shape
    C1, C2, C3 = w1.shape[-1], w2.shape[-1], w3.shape[-1]
    H2, W2, H3, W3 = H // 2, W // 2, H // 4, W // 4

    x = jnp.transpose(x_nchw, (0, 2, 3, 1))       # tiny boundary NCHW -> NHWC

    const = lambda n: (0, 0)
    out = pl.pallas_call(
        _double_conv_kernel,
        out_shape=jax.ShapeDtypeStruct((N, C3, H3 * W3), jnp.float32),
        grid=(N,),
        in_specs=[
            pl.BlockSpec((None, H, W, Cin), lambda n: (n, 0, 0, 0)),
            pl.BlockSpec((9 * Cin, C1), const),
            pl.BlockSpec((1, C1), const),
            pl.BlockSpec((1, C1), const),
            pl.BlockSpec((9 * C1, C2), const),
            pl.BlockSpec((1, C2), const),
            pl.BlockSpec((1, C2), const),
            pl.BlockSpec((9 * C2, C3), const),
            pl.BlockSpec((1, C3), const),
            pl.BlockSpec((1, C3), const),
        ],
        out_specs=pl.BlockSpec((None, C3, H3 * W3), lambda n: (n, 0, 0)),
        scratch_shapes=[
            pltpu.VMEM((H + 2, W + 2, Cin), jnp.float32),
            pltpu.VMEM((H2 + 2, W2 + 2, C1), jnp.float32),
            pltpu.VMEM((H3 + 2, W3 + 2, C2), jnp.float32),
        ],
        compiler_params=pltpu.CompilerParams(dimension_semantics=("parallel",)),
    )(x, w1, s1, b1, w2, s2, b2, w3, s3, b3)

    return out.reshape(N, C3, H3, W3)             # CHW slab -> NCHW (pure reshape)


# ----------------------------------------------------------------------------
# Parameter setup (deterministic, synthetic)
# ----------------------------------------------------------------------------
def _fold_bn(conv_bias, gamma, beta, mean, var, eps=1e-5):
    scale = gamma / jnp.sqrt(var + eps)
    bias = (conv_bias - mean) * scale + beta
    return scale, bias


def init_params(key, in_ch, out_ch):
    ks = jax.random.split(key, 9)
    chans = [(in_ch, out_ch), (out_ch, out_ch), (out_ch, 8)]
    params = []
    for i, (cin, cout) in enumerate(chans):
        kw, kb, kbn = ks[3 * i], ks[3 * i + 1], ks[3 * i + 2]
        w = jax.random.normal(kw, (3, 3, cin, cout), jnp.float32) / np.sqrt(9 * cin)
        b = 0.1 * jax.random.normal(kb, (cout,), jnp.float32)
        k1, k2, k3, k4 = jax.random.split(kbn, 4)
        gamma = jax.random.uniform(k1, (cout,), jnp.float32, 0.5, 1.5)
        beta = 0.1 * jax.random.normal(k2, (cout,), jnp.float32)
        mean = 0.1 * jax.random.normal(k3, (cout,), jnp.float32)
        var = jax.random.uniform(k4, (cout,), jnp.float32, 0.5, 1.5)
        scale, bias = _fold_bn(b, gamma, beta, mean, var)
        # Weights pre-flattened to ((dy,dx,cin), cout) and pre-cast to bf16 so
        # the Pallas kernel and the reference consume identical MXU inputs.
        params.append((w.reshape(9 * cin, cout).astype(jnp.bfloat16),
                       scale.reshape(1, cout), bias.reshape(1, cout)))
    return params


# ----------------------------------------------------------------------------
# Pure-JAX reference (same bf16 conv inputs / f32 accumulation as the kernel)
# ----------------------------------------------------------------------------
def reference_forward(x_nchw, params):
    x = jnp.transpose(x_nchw, (0, 2, 3, 1))

    def conv_bn(x, w_flat, s, b, relu):
        cout = w_flat.shape[-1]
        cin = w_flat.shape[0] // 9
        w = w_flat.reshape(3, 3, cin, cout)                    # bf16 HWIO
        y = jax.lax.conv_general_dilated(
            x.astype(jnp.bfloat16), w, window_strides=(1, 1), padding="SAME",
            dimension_numbers=("NHWC", "HWIO", "NHWC"),
            preferred_element_type=jnp.float32)
        y = y * s[0] + b[0]
        return jnp.maximum(y, 0.0) if relu else y

    def pool(x):
        return jax.lax.reduce_window(x, -jnp.inf, jax.lax.max,
                                     (1, 2, 2, 1), (1, 2, 2, 1), "VALID")

    (w1, s1, b1), (w2, s2, b2), (w3, s3, b3) = params
    x = conv_bn(x, w1, s1, b1, True)
    x = pool(x)
    x = conv_bn(x, w2, s2, b2, True)
    x = pool(x)
    x = conv_bn(x, w3, s3, b3, False)
    return jnp.transpose(x, (0, 3, 1, 2))


if __name__ == "__main__":
    key = jax.random.PRNGKey(0)
    kx, kp = jax.random.split(key)
    in_ch, out_ch = 4, 16
    x = jax.random.normal(kx, (2, in_ch, 16, 16), jnp.float32)   # NCHW like PyTorch
    params = init_params(kp, in_ch, out_ch)

    out = double_conv_forward(x, params)
    out = jax.block_until_ready(out)

    assert out.shape == (2, 8, 4, 4), out.shape
    ref = reference_forward(x, params)
    max_diff = float(jnp.max(jnp.abs(out - ref)))
    assert max_diff < 2e-2, f"mismatch vs reference: max |diff| = {max_diff}"
    print("KERNEL_OK")
</pallas_src>

<mosaic_0001>
module attributes {stable_mosaic.version = 11 : i64} {
  func.func @_double_conv_kernel(%arg0: i32, %arg1: memref<1x16x16x4xf32, #tpu.memory_space<vmem>>, %arg2: memref<36x16xbf16, #tpu.memory_space<vmem>>, %arg3: memref<1x16xf32, #tpu.memory_space<vmem>>, %arg4: memref<1x16xf32, #tpu.memory_space<vmem>>, %arg5: memref<144x16xbf16, #tpu.memory_space<vmem>>, %arg6: memref<1x16xf32, #tpu.memory_space<vmem>>, %arg7: memref<1x16xf32, #tpu.memory_space<vmem>>, %arg8: memref<144x8xbf16, #tpu.memory_space<vmem>>, %arg9: memref<1x8xf32, #tpu.memory_space<vmem>>, %arg10: memref<1x8xf32, #tpu.memory_space<vmem>>, %arg11: memref<1x8x16xf32, #tpu.memory_space<vmem>>, %arg12: memref<18x18x4xf32, #tpu.memory_space<vmem>>, %arg13: memref<10x10x16xf32, #tpu.memory_space<vmem>>, %arg14: memref<6x6x16xf32, #tpu.memory_space<vmem>>) attributes {dimension_semantics = [#tpu.dimension_semantics<parallel>], iteration_bounds = array<i64: 2>, scalar_prefetch = 0 : i64, scratch_operands = 3 : i64, tpu.core_type = #tpu.core_type<tc>, window_params = [{transform_indices = @transform_0, window_bounds = array<i64: 1, 16, 16, 4>}, {pipeline_mode = #tpu.pipeline_mode<synchronous>, transform_indices = @transform_1, window_bounds = array<i64: 36, 16>}, {pipeline_mode = #tpu.pipeline_mode<synchronous>, transform_indices = @transform_2, window_bounds = array<i64: 1, 16>}, {pipeline_mode = #tpu.pipeline_mode<synchronous>, transform_indices = @transform_3, window_bounds = array<i64: 1, 16>}, {pipeline_mode = #tpu.pipeline_mode<synchronous>, transform_indices = @transform_4, window_bounds = array<i64: 144, 16>}, {pipeline_mode = #tpu.pipeline_mode<synchronous>, transform_indices = @transform_5, window_bounds = array<i64: 1, 16>}, {pipeline_mode = #tpu.pipeline_mode<synchronous>, transform_indices = @transform_6, window_bounds = array<i64: 1, 16>}, {pipeline_mode = #tpu.pipeline_mode<synchronous>, transform_indices = @transform_7, window_bounds = array<i64: 144, 8>}, {pipeline_mode = #tpu.pipeline_mode<synchronous>, transform_indices = @transform_8, window_bounds = array<i64: 1, 8>}, {pipeline_mode = #tpu.pipeline_mode<synchronous>, transform_indices = @transform_9, window_bounds = array<i64: 1, 8>}, {transform_indices = @transform_10, window_bounds = array<i64: 1, 8, 16>}]} {
    %c0 = arith.constant 0 : index
    %c0_0 = arith.constant 0 : index
    %c0_1 = arith.constant 0 : index
    %c0_2 = arith.constant 0 : index
    %0 = vector.load %arg1[%c0, %c0_0, %c0_1, %c0_2] : memref<1x16x16x4xf32, #tpu.memory_space<vmem>>, vector<1x16x16x4xf32>
    %1 = vector.shape_cast %0 : vector<1x16x16x4xf32> to vector<16x16x4xf32>
    %cst = arith.constant 0.000000e+00 : f32
    %2 = vector.broadcast %cst : f32 to vector<18x18x4xf32>
    %c0_3 = arith.constant 0 : index
    %c0_4 = arith.constant 0 : index
    %c0_5 = arith.constant 0 : index
    %3 = vector.load %arg12[%c0_3, %c0_4, %c0_5] : memref<18x18x4xf32, #tpu.memory_space<vmem>>, vector<18x18x4xf32>
    tpu.vector_store %arg12[%c0_3, %c0_4, %c0_5], %2 {strides = array<i32>} : memref<18x18x4xf32, #tpu.memory_space<vmem>>, vector<18x18x4xf32>,
    %c1 = arith.constant 1 : index
    %c1_6 = arith.constant 1 : index
    %c0_7 = arith.constant 0 : index
    %4 = vector.load %arg12[%c1, %c1_6, %c0_7] : memref<18x18x4xf32, #tpu.memory_space<vmem>>, vector<16x16x4xf32>
    tpu.vector_store %arg12[%c1, %c1_6, %c0_7], %1 {strides = array<i32>} : memref<18x18x4xf32, #tpu.memory_space<vmem>>, vector<16x16x4xf32>,
    %c0_8 = arith.constant 0 : index
    %c0_9 = arith.constant 0 : index
    %c0_10 = arith.constant 0 : index
    %5 = vector.load %arg12[%c0_8, %c0_9, %c0_10] : memref<18x18x4xf32, #tpu.memory_space<vmem>>, vector<16x16x4xf32>
    %c0_11 = arith.constant 0 : index
    %c1_12 = arith.constant 1 : index
    %c0_13 = arith.constant 0 : index
    %6 = vector.load %arg12[%c0_11, %c1_12, %c0_13] : memref<18x18x4xf32, #tpu.memory_space<vmem>>, vector<16x16x4xf32>
    %c0_14 = arith.constant 0 : index
    %c2 = arith.constant 2 : index
    %c0_15 = arith.constant 0 : index
    %7 = vector.load %arg12[%c0_14, %c2, %c0_15] : memref<18x18x4xf32, #tpu.memory_space<vmem>>, vector<16x16x4xf32>
    %c1_16 = arith.constant 1 : index
    %c0_17 = arith.constant 0 : index
    %c0_18 = arith.constant 0 : index
    %8 = vector.load %arg12[%c1_16, %c0_17, %c0_18] : memref<18x18x4xf32, #tpu.memory_space<vmem>>, vector<16x16x4xf32>
    %c1_19 = arith.constant 1 : index
    %c1_20 = arith.constant 1 : index
    %c0_21 = arith.constant 0 : index
    %9 = vector.load %arg12[%c1_19, %c1_20, %c0_21] : memref<18x18x4xf32, #tpu.memory_space<vmem>>, vector<16x16x4xf32>
    %c1_22 = arith.constant 1 : index
    %c2_23 = arith.constant 2 : index
    %c0_24 = arith.constant 0 : index
    %10 = vector.load %arg12[%c1_22, %c2_23, %c0_24] : memref<18x18x4xf32, #tpu.memory_space<vmem>>, vector<16x16x4xf32>
    %c2_25 = arith.constant 2 : index
    %c0_26 = arith.constant 0 : index
    %c0_27 = arith.constant 0 : index
    %11 = vector.load %arg12[%c2_25, %c0_26, %c0_27] : memref<18x18x4xf32, #tpu.memory_space<vmem>>, vector<16x16x4xf32>
    %c2_28 = arith.constant 2 : index
    %c1_29 = arith.constant 1 : index
    %c0_30 = arith.constant 0 : index
    %12 = vector.load %arg12[%c2_28, %c1_29, %c0_30] : memref<18x18x4xf32, #tpu.memory_space<vmem>>, vector<16x16x4xf32>
    %c2_31 = arith.constant 2 : index
    %c2_32 = arith.constant 2 : index
    %c0_33 = arith.constant 0 : index
    %13 = vector.load %arg12[%c2_31, %c2_32, %c0_33] : memref<18x18x4xf32, #tpu.memory_space<vmem>>, vector<16x16x4xf32>
    %14 = tpu.concatenate %5, %6, %7, %8, %9, %10, %11, %12, %13 in 2 : vector<16x16x4xf32>, vector<16x16x4xf32>, vector<16x16x4xf32>, vector<16x16x4xf32>, vector<16x16x4xf32>, vector<16x16x4xf32>, vector<16x16x4xf32>, vector<16x16x4xf32>, vector<16x16x4xf32> -> vector<16x16x36xf32>
    %15 = vector.shape_cast %14 : vector<16x16x36xf32> to vector<256x36xf32>
    %16 = arith.truncf %15 : vector<256x36xf32> to vector<256x36xbf16>
    %c0_34 = arith.constant 0 : index
    %c0_35 = arith.constant 0 : index
    %17 = vector.load %arg2[%c0_34, %c0_35] : memref<36x16xbf16, #tpu.memory_space<vmem>>, vector<36x16xbf16>
    %cst_36 = arith.constant dense<0.000000e+00> : vector<256x16xf32>
    %18 = tpu.matmul %16, %17, %cst_36 {dimension_numbers = #tpu.dot_dimension_numbers<[1], [0], [0], [1], [0, 0, 1, 1], [], []>} : vector<256x36xbf16>, vector<36x16xbf16>, vector<256x16xf32> -> vector<256x16xf32>
    %c0_37 = arith.constant 0 : index
    %c0_38 = arith.constant 0 : index
    %19 = vector.load %arg3[%c0_37, %c0_38] : memref<1x16xf32, #tpu.memory_space<vmem>>, vector<1x16xf32>
    %20 = vector.broadcast %19 : vector<1x16xf32> to vector<256x16xf32>
    %21 = arith.mulf %18, %20 : vector<256x16xf32>
    %c0_39 = arith.constant 0 : index
    %c0_40 = arith.constant 0 : index
    %22 = vector.load %arg4[%c0_39, %c0_40] : memref<1x16xf32, #tpu.memory_space<vmem>>, vector<1x16xf32>
    %23 = vector.broadcast %22 : vector<1x16xf32> to vector<256x16xf32>
    %24 = arith.addf %21, %23 : vector<256x16xf32>
    %cst_41 = arith.constant 0.000000e+00 : f32
    %25 = vector.broadcast %cst_41 : f32 to vector<256x16xf32>
    %26 = arith.maximumf %24, %25 : vector<256x16xf32>
    %27 = vector.shape_cast %26 : vector<256x16xf32> to vector<16x8x2x16xf32>
    %28 = vector.extract_strided_slice %27 {offsets = [0, 0, 0, 0], sizes = [16, 8, 1, 16], strides = [1, 1, 1, 1]} : vector<16x8x2x16xf32> to vector<16x8x1x16xf32>
    %29 = vector.shape_cast %28 : vector<16x8x1x16xf32> to vector<16x8x16xf32>
    %30 = vector.extract_strided_slice %27 {offsets = [0, 0, 1, 0], sizes = [16, 8, 1, 16], strides = [1, 1, 1, 1]} : vector<16x8x2x16xf32> to vector<16x8x1x16xf32>
    %31 = vector.shape_cast %30 : vector<16x8x1x16xf32> to vector<16x8x16xf32>
    %32 = arith.maximumf %29, %31 : vector<16x8x16xf32>
    %33 = vector.shape_cast %32 : vector<16x8x16xf32> to vector<8x2x8x16xf32>
    %34 = vector.extract_strided_slice %33 {offsets = [0, 0, 0, 0], sizes = [8, 1, 8, 16], strides = [1, 1, 1, 1]} : vector<8x2x8x16xf32> to vector<8x1x8x16xf32>
    %35 = vector.shape_cast %34 : vector<8x1x8x16xf32> to vector<8x8x16xf32>
    %36 = vector.extract_strided_slice %33 {offsets = [0, 1, 0, 0], sizes = [8, 1, 8, 16], strides = [1, 1, 1, 1]} : vector<8x2x8x16xf32> to vector<8x1x8x16xf32>
    %37 = vector.shape_cast %36 : vector<8x1x8x16xf32> to vector<8x8x16xf32>
    %38 = arith.maximumf %35, %37 : vector<8x8x16xf32>
    %cst_42 = arith.constant 0.000000e+00 : f32
    %39 = vector.broadcast %cst_42 : f32 to vector<10x10x16xf32>
    %c0_43 = arith.constant 0 : index
    %c0_44 = arith.constant 0 : index
    %c0_45 = arith.constant 0 : index
    %40 = vector.load %arg13[%c0_43, %c0_44, %c0_45] : memref<10x10x16xf32, #tpu.memory_space<vmem>>, vector<10x10x16xf32>
    tpu.vector_store %arg13[%c0_43, %c0_44, %c0_45], %39 {strides = array<i32>} : memref<10x10x16xf32, #tpu.memory_space<vmem>>, vector<10x10x16xf32>,
    %c1_46 = arith.constant 1 : index
    %c1_47 = arith.constant 1 : index
    %c0_48 = arith.constant 0 : index
    %41 = vector.load %arg13[%c1_46, %c1_47, %c0_48] : memref<10x10x16xf32, #tpu.memory_space<vmem>>, vector<8x8x16xf32>
    tpu.vector_store %arg13[%c1_46, %c1_47, %c0_48], %38 {strides = array<i32>} : memref<10x10x16xf32, #tpu.memory_space<vmem>>, vector<8x8x16xf32>,
    %c0_49 = arith.constant 0 : index
    %c0_50 = arith.constant 0 : index
    %c0_51 = arith.constant 0 : index
    %42 = vector.load %arg13[%c0_49, %c0_50, %c0_51] : memref<10x10x16xf32, #tpu.memory_space<vmem>>, vector<8x8x16xf32>
    %c0_52 = arith.constant 0 : index
    %c1_53 = arith.constant 1 : index
    %c0_54 = arith.constant 0 : index
    %43 = vector.load %arg13[%c0_52, %c1_53, %c0_54] : memref<10x10x16xf32, #tpu.memory_space<vmem>>, vector<8x8x16xf32>
    %c0_55 = arith.constant 0 : index
    %c2_56 = arith.constant 2 : index
    %c0_57 = arith.constant 0 : index
    %44 = vector.load %arg13[%c0_55, %c2_56, %c0_57] : memref<10x10x16xf32, #tpu.memory_space<vmem>>, vector<8x8x16xf32>
    %c1_58 = arith.constant 1 : index
    %c0_59 = arith.constant 0 : index
    %c0_60 = arith.constant 0 : index
    %45 = vector.load %arg13[%c1_58, %c0_59, %c0_60] : memref<10x10x16xf32, #tpu.memory_space<vmem>>, vector<8x8x16xf32>
    %c1_61 = arith.constant 1 : index
    %c1_62 = arith.constant 1 : index
    %c0_63 = arith.constant 0 : index
    %46 = vector.load %arg13[%c1_61, %c1_62, %c0_63] : memref<10x10x16xf32, #tpu.memory_space<vmem>>, vector<8x8x16xf32>
    %c1_64 = arith.constant 1 : index
    %c2_65 = arith.constant 2 : index
    %c0_66 = arith.constant 0 : index
    %47 = vector.load %arg13[%c1_64, %c2_65, %c0_66] : memref<10x10x16xf32, #tpu.memory_space<vmem>>, vector<8x8x16xf32>
    %c2_67 = arith.constant 2 : index
    %c0_68 = arith.constant 0 : index
    %c0_69 = arith.constant 0 : index
    %48 = vector.load %arg13[%c2_67, %c0_68, %c0_69] : memref<10x10x16xf32, #tpu.memory_space<vmem>>, vector<8x8x16xf32>
    %c2_70 = arith.constant 2 : index
    %c1_71 = arith.constant 1 : index
    %c0_72 = arith.constant 0 : index
    %49 = vector.load %arg13[%c2_70, %c1_71, %c0_72] : memref<10x10x16xf32, #tpu.memory_space<vmem>>, vector<8x8x16xf32>
    %c2_73 = arith.constant 2 : index
    %c2_74 = arith.constant 2 : index
    %c0_75 = arith.constant 0 : index
    %50 = vector.load %arg13[%c2_73, %c2_74, %c0_75] : memref<10x10x16xf32, #tpu.memory_space<vmem>>, vector<8x8x16xf32>
    %51 = tpu.concatenate %42, %43, %44, %45, %46, %47, %48, %49, %50 in 2 : vector<8x8x16xf32>, vector<8x8x16xf32>, vector<8x8x16xf32>, vector<8x8x16xf32>, vector<8x8x16xf32>, vector<8x8x16xf32>, vector<8x8x16xf32>, vector<8x8x16xf32>, vector<8x8x16xf32> -> vector<8x8x144xf32>
    %52 = vector.shape_cast %51 : vector<8x8x144xf32> to vector<64x144xf32>
    %53 = arith.truncf %52 : vector<64x144xf32> to vector<64x144xbf16>
    %c0_76 = arith.constant 0 : index
    %c0_77 = arith.constant 0 : index
    %54 = vector.load %arg5[%c0_76, %c0_77] : memref<144x16xbf16, #tpu.memory_space<vmem>>, vector<144x16xbf16>
    %cst_78 = arith.constant dense<0.000000e+00> : vector<64x16xf32>
    %55 = tpu.matmul %53, %54, %cst_78 {dimension_numbers = #tpu.dot_dimension_numbers<[1], [0], [0], [1], [0, 0, 1, 1], [], []>} : vector<64x144xbf16>, vector<144x16xbf16>, vector<64x16xf32> -> vector<64x16xf32>
    %c0_79 = arith.constant 0 : index
    %c0_80 = arith.constant 0 : index
    %56 = vector.load %arg6[%c0_79, %c0_80] : memref<1x16xf32, #tpu.memory_space<vmem>>, vector<1x16xf32>
    %57 = vector.broadcast %56 : vector<1x16xf32> to vector<64x16xf32>
    %58 = arith.mulf %55, %57 : vector<64x16xf32>
    %c0_81 = arith.constant 0 : index
    %c0_82 = arith.constant 0 : index
    %59 = vector.load %arg7[%c0_81, %c0_82] : memref<1x16xf32, #tpu.memory_space<vmem>>, vector<1x16xf32>
    %60 = vector.broadcast %59 : vector<1x16xf32> to vector<64x16xf32>
    %61 = arith.addf %58, %60 : vector<64x16xf32>
    %cst_83 = arith.constant 0.000000e+00 : f32
    %62 = vector.broadcast %cst_83 : f32 to vector<64x16xf32>
    %63 = arith.maximumf %61, %62 : vector<64x16xf32>
    %64 = vector.shape_cast %63 : vector<64x16xf32> to vector<8x4x2x16xf32>
    %65 = vector.extract_strided_slice %64 {offsets = [0, 0, 0, 0], sizes = [8, 4, 1, 16], strides = [1, 1, 1, 1]} : vector<8x4x2x16xf32> to vector<8x4x1x16xf32>
    %66 = vector.shape_cast %65 : vector<8x4x1x16xf32> to vector<8x4x16xf32>
    %67 = vector.extract_strided_slice %64 {offsets = [0, 0, 1, 0], sizes = [8, 4, 1, 16], strides = [1, 1, 1, 1]} : vector<8x4x2x16xf32> to vector<8x4x1x16xf32>
    %68 = vector.shape_cast %67 : vector<8x4x1x16xf32> to vector<8x4x16xf32>
    %69 = arith.maximumf %66, %68 : vector<8x4x16xf32>
    %70 = vector.shape_cast %69 : vector<8x4x16xf32> to vector<4x2x4x16xf32>
    %71 = vector.extract_strided_slice %70 {offsets = [0, 0, 0, 0], sizes = [4, 1, 4, 16], strides = [1, 1, 1, 1]} : vector<4x2x4x16xf32> to vector<4x1x4x16xf32>
    %72 = vector.shape_cast %71 : vector<4x1x4x16xf32> to vector<4x4x16xf32>
    %73 = vector.extract_strided_slice %70 {offsets = [0, 1, 0, 0], sizes = [4, 1, 4, 16], strides = [1, 1, 1, 1]} : vector<4x2x4x16xf32> to vector<4x1x4x16xf32>
    %74 = vector.shape_cast %73 : vector<4x1x4x16xf32> to vector<4x4x16xf32>
    %75 = arith.maximumf %72, %74 : vector<4x4x16xf32>
    %cst_84 = arith.constant 0.000000e+00 : f32
    %76 = vector.broadcast %cst_84 : f32 to vector<6x6x16xf32>
    %c0_85 = arith.constant 0 : index
    %c0_86 = arith.constant 0 : index
    %c0_87 = arith.constant 0 : index
    %77 = vector.load %arg14[%c0_85, %c0_86, %c0_87] : memref<6x6x16xf32, #tpu.memory_space<vmem>>, vector<6x6x16xf32>
    tpu.vector_store %arg14[%c0_85, %c0_86, %c0_87], %76 {strides = array<i32>} : memref<6x6x16xf32, #tpu.memory_space<vmem>>, vector<6x6x16xf32>,
    %c1_88 = arith.constant 1 : index
    %c1_89 = arith.constant 1 : index
    %c0_90 = arith.constant 0 : index
    %78 = vector.load %arg14[%c1_88, %c1_89, %c0_90] : memref<6x6x16xf32, #tpu.memory_space<vmem>>, vector<4x4x16xf32>
    tpu.vector_store %arg14[%c1_88, %c1_89, %c0_90], %75 {strides = array<i32>} : memref<6x6x16xf32, #tpu.memory_space<vmem>>, vector<4x4x16xf32>,
    %c0_91 = arith.constant 0 : index
    %c0_92 = arith.constant 0 : index
    %c0_93 = arith.constant 0 : index
    %79 = vector.load %arg14[%c0_91, %c0_92, %c0_93] : memref<6x6x16xf32, #tpu.memory_space<vmem>>, vector<4x4x16xf32>
    %c0_94 = arith.constant 0 : index
    %c1_95 = arith.constant 1 : index
    %c0_96 = arith.constant 0 : index
    %80 = vector.load %arg14[%c0_94, %c1_95, %c0_96] : memref<6x6x16xf32, #tpu.memory_space<vmem>>, vector<4x4x16xf32>
    %c0_97 = arith.constant 0 : index
    %c2_98 = arith.constant 2 : index
    %c0_99 = arith.constant 0 : index
    %81 = vector.load %arg14[%c0_97, %c2_98, %c0_99] : memref<6x6x16xf32, #tpu.memory_space<vmem>>, vector<4x4x16xf32>
    %c1_100 = arith.constant 1 : index
    %c0_101 = arith.constant 0 : index
    %c0_102 = arith.constant 0 : index
    %82 = vector.load %arg14[%c1_100, %c0_101, %c0_102] : memref<6x6x16xf32, #tpu.memory_space<vmem>>, vector<4x4x16xf32>
    %c1_103 = arith.constant 1 : index
    %c1_104 = arith.constant 1 : index
    %c0_105 = arith.constant 0 : index
    %83 = vector.load %arg14[%c1_103, %c1_104, %c0_105] : memref<6x6x16xf32, #tpu.memory_space<vmem>>, vector<4x4x16xf32>
    %c1_106 = arith.constant 1 : index
    %c2_107 = arith.constant 2 : index
    %c0_108 = arith.constant 0 : index
    %84 = vector.load %arg14[%c1_106, %c2_107, %c0_108] : memref<6x6x16xf32, #tpu.memory_space<vmem>>, vector<4x4x16xf32>
    %c2_109 = arith.constant 2 : index
    %c0_110 = arith.constant 0 : index
    %c0_111 = arith.constant 0 : index
    %85 = vector.load %arg14[%c2_109, %c0_110, %c0_111] : memref<6x6x16xf32, #tpu.memory_space<vmem>>, vector<4x4x16xf32>
    %c2_112 = arith.constant 2 : index
    %c1_113 = arith.constant 1 : index
    %c0_114 = arith.constant 0 : index
    %86 = vector.load %arg14[%c2_112, %c1_113, %c0_114] : memref<6x6x16xf32, #tpu.memory_space<vmem>>, vector<4x4x16xf32>
    %c2_115 = arith.constant 2 : index
    %c2_116 = arith.constant 2 : index
    %c0_117 = arith.constant 0 : index
    %87 = vector.load %arg14[%c2_115, %c2_116, %c0_117] : memref<6x6x16xf32, #tpu.memory_space<vmem>>, vector<4x4x16xf32>
    %88 = tpu.concatenate %79, %80, %81, %82, %83, %84, %85, %86, %87 in 2 : vector<4x4x16xf32>, vector<4x4x16xf32>, vector<4x4x16xf32>, vector<4x4x16xf32>, vector<4x4x16xf32>, vector<4x4x16xf32>, vector<4x4x16xf32>, vector<4x4x16xf32>, vector<4x4x16xf32> -> vector<4x4x144xf32>
    %89 = vector.shape_cast %88 : vector<4x4x144xf32> to vector<16x144xf32>
    %90 = arith.truncf %89 : vector<16x144xf32> to vector<16x144xbf16>
    %c0_118 = arith.constant 0 : index
    %c0_119 = arith.constant 0 : index
    %91 = vector.load %arg8[%c0_118, %c0_119] : memref<144x8xbf16, #tpu.memory_space<vmem>>, vector<144x8xbf16>
    %cst_120 = arith.constant dense<0.000000e+00> : vector<16x8xf32>
    %92 = tpu.matmul %90, %91, %cst_120 {dimension_numbers = #tpu.dot_dimension_numbers<[1], [0], [0], [1], [0, 0, 1, 1], [], []>} : vector<16x144xbf16>, vector<144x8xbf16>, vector<16x8xf32> -> vector<16x8xf32>
    %c0_121 = arith.constant 0 : index
    %c0_122 = arith.constant 0 : index
    %93 = vector.load %arg9[%c0_121, %c0_122] : memref<1x8xf32, #tpu.memory_space<vmem>>, vector<1x8xf32>
    %94 = vector.broadcast %93 : vector<1x8xf32> to vector<16x8xf32>
    %95 = arith.mulf %92, %94 : vector<16x8xf32>
    %c0_123 = arith.constant 0 : index
    %c0_124 = arith.constant 0 : index
    %96 = vector.load %arg10[%c0_123, %c0_124] : memref<1x8xf32, #tpu.memory_space<vmem>>, vector<1x8xf32>
    %97 = vector.broadcast %96 : vector<1x8xf32> to vector<16x8xf32>
    %98 = arith.addf %95, %97 : vector<16x8xf32>
    %99 = tpu.transpose %98, [1, 0] : vector<16x8xf32> -> vector<8x16xf32>
    %c0_125 = arith.constant 0 : index
    %c0_126 = arith.constant 0 : index
    %c0_127 = arith.constant 0 : index
    %100 = vector.load %arg11[%c0_125, %c0_126, %c0_127] : memref<1x8x16xf32, #tpu.memory_space<vmem>>, vector<1x8x16xf32>
    %101 = vector.shape_cast %100 : vector<1x8x16xf32> to vector<8x16xf32>
    %102 = vector.shape_cast %99 : vector<8x16xf32> to vector<1x8x16xf32>
    tpu.vector_store %arg11[%c0_125, %c0_126, %c0_127], %102 {strides = array<i32>} : memref<1x8x16xf32, #tpu.memory_space<vmem>>, vector<1x8x16xf32>,
    return
  }
  func.func @transform_0(%arg0: i32) -> (i32, i32, i32, i32) {
    %c0_i32 = arith.constant 0 : i32
    %c0_i32_0 = arith.constant 0 : i32
    %c0_i32_1 = arith.constant 0 : i32
    %c0_i32_2 = arith.constant 0 : i32
    return %arg0, %c0_i32, %c0_i32_0, %c0_i32_1 : i32, i32, i32, i32
  }
  func.func @transform_1(%arg0: i32) -> (i32, i32) {
    %c0_i32 = arith.constant 0 : i32
    %c0_i32_0 = arith.constant 0 : i32
    %c0_i32_1 = arith.constant 0 : i32
    return %c0_i32, %c0_i32_0 : i32, i32
  }
  func.func @transform_2(%arg0: i32) -> (i32, i32) {
    %c0_i32 = arith.constant 0 : i32
    %c0_i32_0 = arith.constant 0 : i32
    %c0_i32_1 = arith.constant 0 : i32
    return %c0_i32, %c0_i32_0 : i32, i32
  }
  func.func @transform_3(%arg0: i32) -> (i32, i32) {
    %c0_i32 = arith.constant 0 : i32
    %c0_i32_0 = arith.constant 0 : i32
    %c0_i32_1 = arith.constant 0 : i32
    return %c0_i32, %c0_i32_0 : i32, i32
  }
  func.func @transform_4(%arg0: i32) -> (i32, i32) {
    %c0_i32 = arith.constant 0 : i32
    %c0_i32_0 = arith.constant 0 : i32
    %c0_i32_1 = arith.constant 0 : i32
    return %c0_i32, %c0_i32_0 : i32, i32
  }
  func.func @transform_5(%arg0: i32) -> (i32, i32) {
    %c0_i32 = arith.constant 0 : i32
    %c0_i32_0 = arith.constant 0 : i32
    %c0_i32_1 = arith.constant 0 : i32
    return %c0_i32, %c0_i32_0 : i32, i32
  }
  func.func @transform_6(%arg0: i32) -> (i32, i32) {
    %c0_i32 = arith.constant 0 : i32
    %c0_i32_0 = arith.constant 0 : i32
    %c0_i32_1 = arith.constant 0 : i32
    return %c0_i32, %c0_i32_0 : i32, i32
  }
  func.func @transform_7(%arg0: i32) -> (i32, i32) {
    %c0_i32 = arith.constant 0 : i32
    %c0_i32_0 = arith.constant 0 : i32
    %c0_i32_1 = arith.constant 0 : i32
    return %c0_i32, %c0_i32_0 : i32, i32
  }
  func.func @transform_8(%arg0: i32) -> (i32, i32) {
    %c0_i32 = arith.constant 0 : i32
    %c0_i32_0 = arith.constant 0 : i32
    %c0_i32_1 = arith.constant 0 : i32
    return %c0_i32, %c0_i32_0 : i32, i32
  }
  func.func @transform_9(%arg0: i32) -> (i32, i32) {
    %c0_i32 = arith.constant 0 : i32
    %c0_i32_0 = arith.constant 0 : i32
    %c0_i32_1 = arith.constant 0 : i32
    return %c0_i32, %c0_i32_0 : i32, i32
  }
  func.func @transform_10(%arg0: i32) -> (i32, i32, i32) {
    %c0_i32 = arith.constant 0 : i32
    %c0_i32_0 = arith.constant 0 : i32
    %c0_i32_1 = arith.constant 0 : i32
    return %arg0, %c0_i32, %c0_i32_0 : i32, i32, i32
  }
}

</mosaic_0001>

<bundles_post_ra>
// kernel: double_conv_forward.1
= control target key start
LH: loop header
LB: loop body
LE: loop exit
PB: predicated region body
PF: predicated region fallthrough
CT: control target
= control target key end

     0   :  { %s5786_s13 = smov 0   ;;  %s7626_s0 = inlined_call_operand.vmem [shape: f32[2,16,16,4], index: 0, kind: input, shape index: {}]   ;;  %s7627_s1 = inlined_call_operand.vmem [shape: bf16[36,16], index: 1, kind: input, shape index: {}]   ;;  %s7628_s2 = inlined_call_operand.vmem [shape: f32[1,16], index: 2, kind: input, shape index: {}]   ;;  %s7629_s3 = inlined_call_operand.vmem [shape: f32[1,16], index: 3, kind: input, shape index: {}]   ;;  %s7630_s4 = inlined_call_operand.vmem [shape: bf16[144,16], index: 4, kind: input, shape index: {}]   ;;  %s7631_s5 = inlined_call_operand.vmem [shape: f32[1,16], index: 5, kind: input, shape index: {}]   ;;  %s7632_s6 = inlined_call_operand.vmem [shape: f32[1,16], index: 6, kind: input, shape index: {}]   ;;  %s7633_s7 = inlined_call_operand.vmem [shape: bf16[144,8], index: 7, kind: input, shape index: {}]   ;;  %s7634_s8 = inlined_call_operand.vmem [shape: f32[1,8], index: 8, kind: input, shape index: {}]   ;;  %s7635_s9 = inlined_call_operand.vmem [shape: f32[1,8], index: 9, kind: input, shape index: {}]   ;;  %s7636_s10 = inlined_call_operand.vmem [shape: f32[2,8,16], index: 10, kind: output, shape index: {}]  }
   0x1 LB: > { %s4580_s14 = sadd.s32 4294967295, %s5715_s13   ;;  %p4584_p0 = scmp.ge.s32.totalorder %s5715_s13, 1  ;;  %s5715_s13 = sphi %s5786_s13, %s20_s13  }
   0x2   : > { %p312_p1 = scmp.lt.s32.totalorder %s5715_s13, 3 }
   0x4   : > { %p313_p2 = pnand %p4584_p0, %p312_p1 }
   0x6   : > { %316 = sbr.rel (%p313_p2) target bundleno = 1466 (0x5ba), region = 60 }
   0xb   : > { %vm391_vm0 = vcmask 31744   ;;  %vm394_vm1 = vcmask 25600   ;;  %v7637_v0 = vmov 0.0   ;;  %s5718_s15 = smov 4   ;;  %p349_p3 = scmp.lt.s32.totalorder %s4580_s14, 1  ;;  %vm1891_vm2 = vcmask 130048  }
   0xc   : > { %392 = vst.msk [vmem:[#allocation2] sm:$0xff] %vm391_vm0, %v7637_v0  ;;  %s5719_s20 = smov 8   ;;  %s5720_s21 = smov 12   ;;  %vm2141_vm3 = vcmask 1041408   ;;  %vm1825_vm4 = vcmask 64512   ;;  %vm1858_vm5 = vcmask 97280  }
   0xd   : > { %393 = vst.msk [vmem:[#allocation2 + $0x8] sm:$0xff] %vm391_vm0, %v7637_v0  ;;  %s7695_s14 = smov (!%p349_p3, %s4580_s14), 1  ;;  %s5721_s22 = smov 20   ;;  %vm1924_vm6 = vcmask 162816   ;;  %vm1957_vm7 = vcmask 195584   ;;  %vm1990_vm8 = vcmask 228352  }
   0xe   : > { %395 = vst.msk [vmem:[#allocation2 + $0x10] sm:$0x3] %vm394_vm1, %v7637_v0  ;;  %s4851_s16 = sshll.u32 %s7695_s14, 8  ;;  %s5722_s23 = smov 16   ;;  %vm2023_vm9 = vcmask 261120   ;;  %vm2092_vm10 = vcmask 293888  }
   0xf   : > { %396 = vst.msk [vmem:[#allocation2 + $0x18] sm:$0xff] %vm391_vm0, %v7637_v0  ;;  %s5903_s19 = scalar_lea.vmem %s7626_s0, %s4851_s16  ;;  %s5723_s24 = smov 24   ;;  %vm3139_vm11 = vcmask 123904   ;;  %vm3287_vm12 = vcmask 1041409   ;;  %vm3289_vm13 = vcmask 1042434   ;;  %vm3291_vm14 = vcmask 1043459  }
  0x10   : > { %397 = vst.msk [vmem:[#allocation2 + $0x20] sm:$0xff] %vm391_vm0, %v7637_v0  ;;  %v365_v4 = vld [vmem:[%s5903_s19 + $0x30] sm:$0xff]  ;;  %v366_v5 = vld [vmem:[%s5903_s19 + $0x38] sm:$0xff]  ;;  %v359_v8 = vld [vmem:[%s5903_s19] sm:$0xff]  ;;  %s5724_s25 = smov 32   ;;  %s5725_s26 = smov 28  }
  0x11   : > { %398 = vst.msk [vmem:[#allocation2 + $0x28] sm:$0x3] %vm394_vm1, %v7637_v0  ;;  %v361_v6 = vld [vmem:[%s5903_s19 + $0x10] sm:$0xff]  ;;  %v362_v7 = vld [vmem:[%s5903_s19 + $0x18] sm:$0xff]  ;;  %v360_v9 = vld [vmem:[%s5903_s19 + $0x8] sm:$0xff]  ;;  %vm3293_vm15 = vcmask 1044484  }
  0x12   : > { %399 = vst.msk [vmem:[#allocation2 + $0x30] sm:$0xff] %vm391_vm0, %v7637_v0  ;;  %v367_v10 = vld [vmem:[%s5903_s19 + $0x40] sm:$0xff]  ;;  %v368_v11 = vld [vmem:[%s5903_s19 + $0x48] sm:$0xff]  ;;  %v369_v15 = vld [vmem:[%s5903_s19 + $0x50] sm:$0xff]  ;;  %s5729_s30 = smov 112   ;;  %s5730_s11 = smov 96  }
  0x13   : > { %400 = vst.msk [vmem:[#allocation2 + $0x38] sm:$0xff] %vm391_vm0, %v7637_v0  ;;  %v363_v12 = vld [vmem:[%s5903_s19 + $0x20] sm:$0xff]  ;;  %v364_v13 = vld [vmem:[%s5903_s19 + $0x28] sm:$0xff]  ;;  %v370_v17 = vld [vmem:[%s5903_s19 + $0x58] sm:$0xff] }
  0x14   : > { %v512_v1 = vld [vmem:[#allocation2 + $0x1] sm:$0xff]  ;;  %401 = vst.msk [vmem:[#allocation2 + $0x40] sm:$0x3] %vm394_vm1, %v7637_v0  ;;  %v374_v22 = vld [vmem:[%s5903_s19 + $0x78] sm:$0xff]  ;;  %v371_v25 = vld [vmem:[%s5903_s19 + $0x60] sm:$0xff] }
  0x15   : > { %v513_v2 = vld [vmem:[#allocation2 + $0x9] sm:$0xff]  ;;  %402 = vst.msk [vmem:[#allocation2 + $0x48] sm:$0xff] %vm391_vm0, %v7637_v0  ;;  %v372_v27 = vld [vmem:[%s5903_s19 + $0x68] sm:$0xff]  ;;  %v375_v30 = vld [vmem:[%s5903_s19 + $0x80] sm:$0xff] }
  0x16   : > { %v4903_v3 = vpack.i.bf16 %v513_v2, %v512_v1  ;;  %403 = vst.msk [vmem:[#allocation2 + $0x50] sm:$0xff] %vm391_vm0, %v7637_v0  ;;  %v373_v20 = vld [vmem:[%s5903_s19 + $0x70] sm:$0xff]  ;;  %v376_v32 = vld [vmem:[%s5903_s19 + $0x88] sm:$0xff]  ;;  %v379_v35 = vld [vmem:[%s5903_s19 + $0xa0] sm:$0xff] }
  0x17   : > { %404 = vst.msk [vmem:[#allocation2 + $0x58] sm:$0x3] %vm394_vm1, %v7637_v0  ;;  %v380_v37 = vld [vmem:[%s5903_s19 + $0xa8] sm:$0xff]  ;;  %v377_v40 = vld [vmem:[%s5903_s19 + $0x90] sm:$0xff]  ;;  %v378_v42 = vld [vmem:[%s5903_s19 + $0x98] sm:$0xff] }
  0x18   : > { %4904 = vrot.lane.b32.xlu0 %v4903_v3, %s5718_s15  ;;  %405 = vst.msk [vmem:[#allocation2 + $0x60] sm:$0xff] %vm391_vm0, %v7637_v0  ;;  %v381_v44 = vld [vmem:[%s5903_s19 + $0xb0] sm:$0xff]  ;;  %v382_v47 = vld [vmem:[%s5903_s19 + $0xb8] sm:$0xff]  ;;  %v383_v53 = vld [vmem:[%s5903_s19 + $0xc0] sm:$0xff] }
  0x19   : > { %406 = vst.msk [vmem:[#allocation2 + $0x68] sm:$0xff] %vm391_vm0, %v7637_v0  ;;  %v385_v48 = vld [vmem:[%s5903_s19 + $0xd0] sm:$0xff]  ;;  %v386_v51 = vld [vmem:[%s5903_s19 + $0xd8] sm:$0xff]  ;;  %v384_v56 = vld [vmem:[%s5903_s19 + $0xc8] sm:$0xff] }
  0x1a   : > { %407 = vst.msk [vmem:[#allocation2 + $0x70] sm:$0x3] %vm394_vm1, %v7637_v0  ;;  %v387_v58 = vld [vmem:[%s5903_s19 + $0xe0] sm:$0xff]  ;;  %v388_v59 = vld [vmem:[%s5903_s19 + $0xe8] sm:$0xff] }
  0x1b   : > { %408 = vst.msk [vmem:[#allocation2 + $0x78] sm:$0xff] %vm391_vm0, %v7637_v0 }
  0x1c   : > { %409 = vst.msk [vmem:[#allocation2 + $0x80] sm:$0xff] %vm391_vm0, %v7637_v0 }
  0x1d   : > { %410 = vst.msk [vmem:[#allocation2 + $0x88] sm:$0x3] %vm394_vm1, %v7637_v0 }
  0x1e   : > { %411 = vst.msk [vmem:[#allocation2 + $0x90] sm:$0xff] %vm391_vm0, %v7637_v0 }
  0x1f   : > { %412 = vst.msk [vmem:[#allocation2 + $0x98] sm:$0xff] %vm391_vm0, %v7637_v0 }
  0x20   : > { %413 = vst.msk [vmem:[#allocation2 + $0xa0] sm:$0x3] %vm394_vm1, %v7637_v0 }
  0x21   : > { %414 = vst.msk [vmem:[#allocation2 + $0xa8] sm:$0xff] %vm391_vm0, %v7637_v0 }
  0x22   : > { %415 = vst.msk [vmem:[#allocation2 + $0xb0] sm:$0xff] %vm391_vm0, %v7637_v0 }
  0x23   : > { %416 = vst.msk [vmem:[#allocation2 + $0xb8] sm:$0x3] %vm394_vm1, %v7637_v0 }
  0x24   : > { %417 = vst.msk [vmem:[#allocation2 + $0xc0] sm:$0xff] %vm391_vm0, %v7637_v0 }
  0x25   : > { %418 = vst.msk [vmem:[#allocation2 + $0xc8] sm:$0xff] %vm391_vm0, %v7637_v0 }
  0x26   : > { %419 = vst.msk [vmem:[#allocation2 + $0xd0] sm:$0x3] %vm394_vm1, %v7637_v0 }
  0x27   : > { %420 = vst.msk [vmem:[#allocation2 + $0xd8] sm:$0xff] %vm391_vm0, %v7637_v0 }
  0x28   : > { %421 = vst.msk [vmem:[#allocation2 + $0xe0] sm:$0xff] %vm391_vm0, %v7637_v0 }
  0x29   : > { %422 = vst.msk [vmem:[#allocation2 + $0xe8] sm:$0x3] %vm394_vm1, %v7637_v0 }
  0x2a   : > { %423 = vst.msk [vmem:[#allocation2 + $0xf0] sm:$0xff] %vm391_vm0, %v7637_v0 }
  0x2b   : > { %424 = vst.msk [vmem:[#allocation2 + $0xf8] sm:$0xff] %vm391_vm0, %v7637_v0 }
  0x2c   : > { %425 = vst.msk [vmem:[#allocation2 + $0x100] sm:$0x3] %vm394_vm1, %v7637_v0 }
  0x2d   : > { %426 = vst.msk [vmem:[#allocation2 + $0x108] sm:$0xff] %vm391_vm0, %v7637_v0 }
  0x2e   : > { %427 = vst.msk [vmem:[#allocation2 + $0x110] sm:$0xff] %vm391_vm0, %v7637_v0 }
  0x2f   : > { %428 = vst.msk [vmem:[#allocation2 + $0x118] sm:$0x3] %vm394_vm1, %v7637_v0 }
  0x30   : > { %429 = vst.msk [vmem:[#allocation2 + $0x120] sm:$0xff] %vm391_vm0, %v7637_v0 }
  0x31   : > { %430 = vst.msk [vmem:[#allocation2 + $0x128] sm:$0xff] %vm391_vm0, %v7637_v0 }
  0x32   : > { %431 = vst.msk [vmem:[#allocation2 + $0x130] sm:$0x3] %vm394_vm1, %v7637_v0 }
  0x33   : > { %432 = vst.msk [vmem:[#allocation2 + $0x138] sm:$0xff] %vm391_vm0, %v7637_v0 }
  0x34   : > { %433 = vst.msk [vmem:[#allocation2 + $0x140] sm:$0xff] %vm391_vm0, %v7637_v0 }
  0x35   : > { %434 = vst.msk [vmem:[#allocation2 + $0x148] sm:$0x3] %vm394_vm1, %v7637_v0 }
  0x36   : > { %435 = vst.msk [vmem:[#allocation2 + $0x150] sm:$0xff] %vm391_vm0, %v7637_v0 }
  0x37   : > { %436 = vst.msk [vmem:[#allocation2 + $0x158] sm:$0xff] %vm391_vm0, %v7637_v0 }
  0x38   : > { %437 = vst.msk [vmem:[#allocation2 + $0x160] sm:$0x3] %vm394_vm1, %v7637_v0 }
  0x39   : > { %438 = vst.msk [vmem:[#allocation2 + $0x168] sm:$0xff] %vm391_vm0, %v7637_v0 }
  0x3a   : > { %439 = vst.msk [vmem:[#allocation2 + $0x170] sm:$0xff] %vm391_vm0, %v7637_v0 }
  0x3b   : > { %440 = vst.msk [vmem:[#allocation2 + $0x178] sm:$0x3] %vm394_vm1, %v7637_v0 }
  0x3c   : > { %441 = vst.msk [vmem:[#allocation2 + $0x180] sm:$0xff] %vm391_vm0, %v7637_v0 }
  0x3d   : > { %442 = vst.msk [vmem:[#allocation2 + $0x188] sm:$0xff] %vm391_vm0, %v7637_v0 }
  0x3e   : > { %443 = vst.msk [vmem:[#allocation2 + $0x190] sm:$0x3] %vm394_vm1, %v7637_v0 }
  0x3f   : > { %444 = vst.msk [vmem:[#allocation2 + $0x198] sm:$0xff] %vm391_vm0, %v7637_v0 }
  0x40   : > { %445 = vst.msk [vmem:[#allocation2 + $0x1a0] sm:$0xff] %vm391_vm0, %v7637_v0 }
  0x41   : > { %446 = vst.msk [vmem:[#allocation2 + $0x1a8] sm:$0x3] %vm394_vm1, %v7637_v0  ;;  %vm3295_vm1 = vcmask 1045509  }
  0x42   : > { %454 = vst.msk [vmem:[#allocation2 + $0x61] sm:$0xff] %vm391_vm0, %v365_v4 }
  0x43   : > { %455 = vst.msk [vmem:[#allocation2 + $0x69] sm:$0xff] %vm391_vm0, %v366_v5 }
  0x44   : > { %450 = vst.msk [vmem:[#allocation2 + $0x31] sm:$0xff] %vm391_vm0, %v361_v6 }
  0x45   : > { %451 = vst.msk [vmem:[#allocation2 + $0x39] sm:$0xff] %vm391_vm0, %v362_v7 }
  0x46   : > { %448 = vst.msk [vmem:[#allocation2 + $0x19] sm:$0xff] %vm391_vm0, %v359_v8 }
  0x47   : > { %449 = vst.msk [vmem:[#allocation2 + $0x21] sm:$0xff] %vm391_vm0, %v360_v9 }
  0x48   : > { %456 = vst.msk [vmem:[#allocation2 + $0x79] sm:$0xff] %vm391_vm0, %v367_v10 }
  0x49   : > { %v520_v14 = vld [vmem:[#allocation2 + $0x61] sm:$0xff]  ;;  %457 = vst.msk [vmem:[#allocation2 + $0x81] sm:$0xff] %vm391_vm0, %v368_v11 }
  0x4a   : > { %v521_v16 = vld [vmem:[#allocation2 + $0x69] sm:$0xff]  ;;  %452 = vst.msk [vmem:[#allocation2 + $0x49] sm:$0xff] %vm391_vm0, %v363_v12 }
  0x4b   : > { %v5936_v18 = vpack.i.bf16 %v521_v16, %v520_v14  ;;  %v516_v19 = vld [vmem:[#allocation2 + $0x31] sm:$0xff]  ;;  %453 = vst.msk [vmem:[#allocation2 + $0x51] sm:$0xff] %vm391_vm0, %v364_v13 }
  0x4c   : > { %v517_v21 = vld [vmem:[#allocation2 + $0x39] sm:$0xff]  ;;  %458 = vst.msk [vmem:[#allocation2 + $0x91] sm:$0xff] %vm391_vm0, %v369_v15 }
  0x4d   : > { %4924 = vrot.lane.b32.xlu2 %v5936_v18, %s5718_s15  ;;  %v5944_v23 = vpack.i.bf16 %v517_v21, %v516_v19  ;;  %v514_v24 = vld [vmem:[#allocation2 + $0x19] sm:$0xff]  ;;  %459 = vst.msk [vmem:[#allocation2 + $0x99] sm:$0xff] %vm391_vm0, %v370_v17  ;;  %v544_v19 = vld [vmem:[#allocation2 + $0x2] sm:$0xff] }
  0x4e   : > { %v515_v26 = vld [vmem:[#allocation2 + $0x21] sm:$0xff]  ;;  %462 = vst.msk [vmem:[#allocation2 + $0xc1] sm:$0xff] %vm391_vm0, %v373_v20  ;;  %v545_v20 = vld [vmem:[#allocation2 + $0xa] sm:$0xff] }
  0x4f   : > { %4914 = vrot.lane.b32.xlu1 %v5944_v23, %s5718_s15  ;;  %v5952_v28 = vpack.i.bf16 %v515_v26, %v514_v24  ;;  %v522_v29 = vld [vmem:[#allocation2 + $0x79] sm:$0xff]  ;;  %463 = vst.msk [vmem:[#allocation2 + $0xc9] sm:$0xff] %vm391_vm0, %v374_v22  ;;  %v547_v17 = vld [vmem:[#allocation2 + $0x22] sm:$0xff] }
  0x50   : > { %v523_v31 = vld [vmem:[#allocation2 + $0x81] sm:$0xff]  ;;  %460 = vst.msk [vmem:[#allocation2 + $0xa9] sm:$0xff] %vm391_vm0, %v371_v25  ;;  %v548_v22 = vld [vmem:[#allocation2 + $0x32] sm:$0xff]  ;;  %v4983_v25 = vpack.i.bf16 %v545_v20, %v544_v19 }
  0x51   : > { %4909 = vrot.lane.b32.xlu0 %v5952_v28, %s5718_s15  ;;  %v5960_v33 = vpack.i.bf16 %v523_v31, %v522_v29  ;;  %v518_v34 = vld [vmem:[#allocation2 + $0x49] sm:$0xff]  ;;  %461 = vst.msk [vmem:[#allocation2 + $0xb1] sm:$0xff] %vm391_vm0, %v372_v27  ;;  %v546_v16 = vld [vmem:[#allocation2 + $0x1a] sm:$0xff] }
  0x52   : > { %v519_v36 = vld [vmem:[#allocation2 + $0x51] sm:$0xff]  ;;  %464 = vst.msk [vmem:[#allocation2 + $0xd9] sm:$0xff] %vm391_vm0, %v375_v30  ;;  %v6014_v21 = vpack.i.bf16 %v547_v17, %v546_v16  ;;  %v549_v24 = vld [vmem:[#allocation2 + $0x3a] sm:$0xff]  ;;  %v552_v27 = vld [vmem:[#allocation2 + $0x62] sm:$0xff] }
  0x53   : > { %v5966_v38 = vpack.i.bf16 %v519_v36, %v518_v34  ;;  %v524_v39 = vld [vmem:[#allocation2 + $0x91] sm:$0xff]  ;;  %465 = vst.msk [vmem:[#allocation2 + $0xe1] sm:$0xff] %vm391_vm0, %v376_v32  ;;  %v6018_v26 = vpack.i.bf16 %v549_v24, %v548_v22  ;;  %v554_v34 = vld [vmem:[#allocation2 + $0x7a] sm:$0xff]  ;;  %v6077_v16 = vld [vmem:[#allocation2 + $0x68] sm:$0xff] }
  0x54   : > { %v525_v41 = vld [vmem:[#allocation2 + $0x99] sm:$0xff]  ;;  %468 = vst.msk [vmem:[#allocation2 + $0x109] sm:$0xff] %vm391_vm0, %v379_v35  ;;  %v553_v29 = vld [vmem:[#allocation2 + $0x6a] sm:$0xff]  ;;  %v555_v35 = vld [vmem:[#allocation2 + $0x82] sm:$0xff] }
  0x55   : > { %4929 = vrot.lane.b32.xlu2 %v5960_v33, %s5718_s15  ;;  %v4933_v43 = vpack.i.bf16 %v525_v41, %v524_v39  ;;  %469 = vst.msk [vmem:[#allocation2 + $0x111] sm:$0xff] %vm391_vm0, %v380_v37  ;;  %v528_v45 = vld [vmem:[#allocation2 + $0xc1] sm:$0xff]  ;;  %v550_v30 = vld [vmem:[#allocation2 + $0x4a] sm:$0xff]  ;;  %v551_v31 = vld [vmem:[#allocation2 + $0x52] sm:$0xff]  ;;  %v6023_v32 = vpack.i.bf16 %v553_v29, %v552_v27  ;;  %v6029_v37 = vpack.i.bf16 %v555_v35, %v554_v34 }
  0x56   : > { %v529_v46 = vld [vmem:[#allocation2 + $0xc9] sm:$0xff]  ;;  %466 = vst.msk [vmem:[#allocation2 + $0xf1] sm:$0xff] %vm391_vm0, %v377_v40  ;;  %v6025_v36 = vpack.i.bf16 %v551_v31, %v550_v30  ;;  %v556_v41 = vld [vmem:[#allocation2 + $0x92] sm:$0xff]  ;;  %v585_v24 = vld [vmem:[#allocation2 + $0x80] sm:$0xff] }
  0x57   : > { %4919 = vrot.lane.b32.xlu1 %v5966_v38, %s5718_s15  ;;  %467 = vst.msk [vmem:[#allocation2 + $0xf9] sm:$0xff] %vm391_vm0, %v378_v42  ;;  %v526_v49 = vld [vmem:[#allocation2 + $0xa9] sm:$0xff]  ;;  %v5985_v52 = vpack.i.bf16 %v529_v46, %v528_v45  ;;  %v557_v42 = vld [vmem:[#allocation2 + $0x9a] sm:$0xff] }
  0x58   : > { %v527_v50 = vld [vmem:[#allocation2 + $0xb1] sm:$0xff]  ;;  %470 = vst.msk [vmem:[#allocation2 + $0x121] sm:$0xff] %vm391_vm0, %v381_v44  ;;  %v560_v44 = vld [vmem:[#allocation2 + $0xc2] sm:$0xff]  ;;  %v6035_v46 = vpack.i.bf16 %v557_v42, %v556_v41 }
  0x59   : > { %4934 = vrot.lane.b32.xlu0 %v4933_v43, %s5718_s15  ;;  %471 = vst.msk [vmem:[#allocation2 + $0x129] sm:$0xff] %vm391_vm0, %v382_v47  ;;  %v530_v54 = vld [vmem:[#allocation2 + $0xd9] sm:$0xff]  ;;  %v4938_v57 = vpack.i.bf16 %v527_v50, %v526_v49  ;;  %v558_v39 = vld [vmem:[#allocation2 + $0xaa] sm:$0xff] }
  0x5a   : > { %v531_v55 = vld [vmem:[#allocation2 + $0xe1] sm:$0xff]  ;;  %474 = vst.msk [vmem:[#allocation2 + $0x151] sm:$0xff] %vm391_vm0, %v385_v48  ;;  %v559_v40 = vld [vmem:[#allocation2 + $0xb2] sm:$0xff]  ;;  %v561_v45 = vld [vmem:[#allocation2 + $0xca] sm:$0xff] }
  0x5b   : > { %475 = vst.msk [vmem:[#allocation2 + $0x159] sm:$0xff] %vm391_vm0, %v386_v51  ;;  %v4948_v60 = vpack.i.bf16 %v531_v55, %v530_v54  ;;  %v534_v61 = vld [vmem:[#allocation2 + $0x109] sm:$0xff]  ;;  %v5018_v43 = vpack.i.bf16 %v559_v40, %v558_v39  ;;  %v6038_v47 = vpack.i.bf16 %v561_v45, %v560_v44  ;;  %v562_v50 = vld [vmem:[#allocation2 + $0xda] sm:$0xff] }
  0x5c   : > { %472 = vst.msk [vmem:[#allocation2 + $0x139] sm:$0xff] %vm391_vm0, %v383_v53  ;;  %v535_v62 = vld [vmem:[#allocation2 + $0x111] sm:$0xff]  ;;  %v563_v51 = vld [vmem:[#allocation2 + $0xe2] sm:$0xff] }
  0x5d   : > { %4944 = vrot.lane.b32.xlu2 %v5985_v52, %s5718_s15  ;;  %473 = vst.msk [vmem:[#allocation2 + $0x141] sm:$0xff] %vm391_vm0, %v384_v56  ;;  %v532_v63 = vld [vmem:[#allocation2 + $0xf1] sm:$0xff]  ;;  %v4958_v2 = vpack.i.bf16 %v535_v62, %v534_v61  ;;  %v6044_v56 = vpack.i.bf16 %v563_v51, %v562_v50  ;;  %v6080_v17 = vld [vmem:[#allocation2 + $0x48] sm:$0xff]  ;;  %v6105_v40 = vld [vmem:[#allocation2 + $0xc0] sm:$0xff] }
  0x5e   : > { %476 = vst.msk [vmem:[#allocation2 + $0x169] sm:$0xff] %vm391_vm0, %v387_v58  ;;  %v533_v1 = vld [vmem:[#allocation2 + $0xf9] sm:$0xff]  ;;  %v566_v54 = vld [vmem:[#allocation2 + $0x10a] sm:$0xff]  ;;  %v720_v0 = vld [vmem:[#allocation2 + $0xe1] sm:$0xff] }
  0x5f   : > { %4939 = vrot.lane.b32.xlu1 %v4938_v57, %s5718_s15  ;;  %477 = vst.msk [vmem:[#allocation2 + $0x171] sm:$0xff] %vm391_vm0, %v388_v59  ;;  %v536_v3 = vld [vmem:[#allocation2 + $0x121] sm:$0xff]  ;;  %v4953_v5 = vpack.i.bf16 %v533_v1, %v532_v63  ;;  %v564_v48 = vld [vmem:[#allocation2 + $0xf2] sm:$0xff] }
  0x60   : > { %v537_v4 = vld [vmem:[#allocation2 + $0x129] sm:$0xff]  ;;  %v565_v49 = vld [vmem:[#allocation2 + $0xfa] sm:$0xff]  ;;  %v567_v55 = vld [vmem:[#allocation2 + $0x112] sm:$0xff] }
  0x61   : > { %4949 = vrot.lane.b32.xlu0 %v4948_v60, %s5718_s15  ;;  %v6003_v6 = vpack.i.bf16 %v537_v4, %v536_v3  ;;  %v540_v7 = vld [vmem:[#allocation2 + $0x151] sm:$0xff]  ;;  %v5033_v53 = vpack.i.bf16 %v565_v49, %v564_v48  ;;  %v5038_v57 = vpack.i.bf16 %v567_v55, %v566_v54  ;;  %v568_v60 = vld [vmem:[#allocation2 + $0x122] sm:$0xff] }
  0x62   : > { %v541_v8 = vld [vmem:[#allocation2 + $0x159] sm:$0xff]  ;;  %v569_v61 = vld [vmem:[#allocation2 + $0x12a] sm:$0xff] }
  0x63   : > { %v538_v9 = vld [vmem:[#allocation2 + $0x139] sm:$0xff]  ;;  %v4973_v11 = vpack.i.bf16 %v541_v8, %v540_v7  ;;  %v6082_v19 = vld [vmem:[#allocation2 + $0x50] sm:$0xff]  ;;  %v588_v29 = vld [vmem:[#allocation2 + $0xa8] sm:$0xff] }
  0x64   : > { %v539_v10 = vld [vmem:[#allocation2 + $0x141] sm:$0xff]  ;;  %v572_v63 = vld [vmem:[#allocation2 + $0x152] sm:$0xff] }
  0x65   : > { %4959 = vrot.lane.b32.xlu2 %v4958_v2, %s5718_s15  ;;  %v542_v12 = vld [vmem:[#allocation2 + $0x169] sm:$0xff]  ;;  %v6008_v14 = vpack.i.bf16 %v539_v10, %v538_v9  ;;  %v570_v58 = vld [vmem:[#allocation2 + $0x13a] sm:$0xff]  ;;  %v6052_v2 = vpack.i.bf16 %v569_v61, %v568_v60 }
  0x66   : > { %v543_v13 = vld [vmem:[#allocation2 + $0x171] sm:$0xff]  ;;  %v571_v59 = vld [vmem:[#allocation2 + $0x142] sm:$0xff]  ;;  %v573_v1 = vld [vmem:[#allocation2 + $0x15a] sm:$0xff] }
  0x67   : > { %4954 = vrot.lane.b32.xlu1 %v4953_v5, %s5718_s15  ;;  %v4978_v15 = vpack.i.bf16 %v543_v13, %v542_v12  ;;  %v6050_v62 = vpack.i.bf16 %v571_v59, %v570_v58  ;;  %v6056_v3 = vpack.i.bf16 %v573_v1, %v572_v63  ;;  %v6058_v4 = vld [vmem:[#allocation2 + $0x18] sm:$0xff]  ;;  %v6060_v5 = vld [vmem:[#allocation2 + $0x20] sm:$0xff]  ;;  %v574_v7 = vld [vmem:[#allocation2 + $0x16a] sm:$0xff] }
  0x68   : > { %v575_v8 = vld [vmem:[#allocation2 + $0x172] sm:$0xff]  ;;  %v5063_v9 = vpack.i.bf16 %v6060_v5, %v6058_v4  ;;  %v6107_v41 = vld [vmem:[#allocation2 + $0xc8] sm:$0xff]  ;;  %v593_v50 = vld [vmem:[#allocation2 + $0xe0] sm:$0xff] }
  0x69   : > { %4964 = vrot.lane.b32.xlu0 %v6003_v6, %s5718_s15  ;;  %v6068_v10 = vld [vmem:[#allocation2 + $0x30] sm:$0xff]  ;;  %v5058_v12 = vpack.i.bf16 %v575_v8, %v574_v7  ;;  %v584_v22 = vld [vmem:[#allocation2 + $0x78] sm:$0xff] }
  0x6a   : > { %v6093_v27 = vpack.i.bf16 %v585_v24, %v584_v22  ;;  %v6095_v30 = vld [vmem:[#allocation2 + $0xb0] sm:$0xff]  ;;  %v587_v35 = vld [vmem:[#allocation2 + $0x98] sm:$0xff] }
  0x6b   : > { %v586_v34 = vld [vmem:[#allocation2 + $0x90] sm:$0xff]  ;;  %v6103_v39 = vpack.i.bf16 %v6095_v30, %v588_v29  ;;  %v595_v45 = vld [vmem:[#allocation2 + $0xf8] sm:$0xff]  ;;  %v505_v29 = vld [vmem:[#allocation2 + $0x128] sm:$0xff] }
  0x6c   : > { %v6109_v42 = vpack.i.bf16 %v587_v35, %v586_v34  ;;  %v594_v44 = vld [vmem:[#allocation2 + $0xf0] sm:$0xff]  ;;  %v592_v49 = vld [vmem:[#allocation2 + $0xd8] sm:$0xff] }
  0x6d   : > { %4974 = vrot.lane.b32.xlu2 %v4973_v11, %s5718_s15  ;;  %v6070_v11 = vld [vmem:[#allocation2 + $0x38] sm:$0xff]  ;;  %v6120_v51 = vpack.i.bf16 %v595_v45, %v594_v44  ;;  %v6124_v54 = vld [vmem:[#allocation2 + $0x110] sm:$0xff]  ;;  %v6126_v55 = vpack.i.bf16 %v593_v50, %v592_v49 }
  0x6e   : > { %v5068_v13 = vpack.i.bf16 %v6070_v11, %v6068_v10 }
  0x6f   : > { %4969 = vrot.lane.b32.xlu1 %v6008_v14, %s5718_s15 }
  0x71   : > { %4979 = vrot.lane.b32.xlu0 %v4978_v15, %s5718_s15  ;;  %v6075_v15 = vld [vmem:[#allocation2 + $0x60] sm:$0xff] }
  0x72   : > { %v6087_v20 = vpack.i.bf16 %v6077_v16, %v6075_v15 }
  0x75   : > { %4989 = vrot.lane.b32.xlu2 %v6014_v21, %s5719_s20 }
  0x77   : > { %4984 = vrot.lane.b32.xlu1 %v4983_v25, %s5719_s20  ;;  %v5073_v25 = vpack.i.bf16 %v6082_v19, %v6080_v17 }
  0x79   : > { %4994 = vrot.lane.b32.xlu0 %v6018_v26, %s5719_s20 }
  0x7d   : > { %5004 = vrot.lane.b32.xlu2 %v6023_v32, %s5719_s20 }
  0x7f   : > { %4999 = vrot.lane.b32.xlu1 %v6025_v36, %s5719_s20 }
  0x81   : > { %5009 = vrot.lane.b32.xlu0 %v6029_v37, %s5719_s20 }
  0x85   : > { %5019 = vrot.lane.b32.xlu2 %v5018_v43, %s5719_s20  ;;  %v5098_v43 = vpack.i.bf16 %v6107_v41, %v6105_v40 }
  0x87   : > { %5014 = vrot.lane.b32.xlu1 %v6035_v46, %s5719_s20 }
  0x89   : > { %5024 = vrot.lane.b32.xlu0 %v6038_v47, %s5719_s20 }
  0x8a   : > { %v6137_v59 = vpop.permute.xlu0 %4904 }
  0x8d   : > { %5034 = vrot.lane.b32.xlu2 %v5033_v53, %s5719_s20  ;;  %v6122_v53 = vld [vmem:[#allocation2 + $0x108] sm:$0xff] }
  0x8f   : > { %5029 = vrot.lane.b32.xlu1 %v6044_v56, %s5719_s20 }
  0x91   : > { %5039 = vrot.lane.b32.xlu0 %v5038_v57, %s5719_s20  ;;  %v5113_v57 = vpack.i.bf16 %v6124_v54, %v6122_v53 }
  0x95   : > { %5049 = vrot.lane.b32.xlu2 %v6050_v62, %s5719_s20 }
  0x97   : > { %5044 = vrot.lane.b32.xlu1 %v6052_v2, %s5719_s20 }
  0x99   : > { %5054 = vrot.lane.b32.xlu0 %v6056_v3, %s5719_s20 }
  0x9d   : > { %5064 = vrot.lane.b32.xlu2 %v5063_v9, %s5720_s21 }
  0x9f   : > { %5059 = vrot.lane.b32.xlu1 %v5058_v12, %s5719_s20  ;;  %s5727_s20 = smov 64  }
  0xa1   : > { %5069 = vrot.lane.b32.xlu0 %v5068_v13, %s5720_s21 }
  0xa5   : > { %5079 = vrot.lane.b32.xlu2 %v6087_v20, %s5720_s21 }
  0xa7   : > { %5074 = vrot.lane.b32.xlu1 %v5073_v25, %s5720_s21  ;;  %v6098_v31 = vpop.permute.xlu2 %4924 }
  0xa9   : > { %5084 = vrot.lane.b32.xlu0 %v6093_v27, %s5720_s21 }
  0xad   : > { %5094 = vrot.lane.b32.xlu2 %v6103_v39, %s5720_s21 }
  0xaf   : > { %5089 = vrot.lane.b32.xlu1 %v6109_v42, %s5720_s21  ;;  %v6117_v48 = vpop.permute.xlu2 %4929 }
  0xb1   : > { %5099 = vrot.lane.b32.xlu0 %v5098_v43, %s5720_s21  ;;  %v507_v43 = vld [vmem:[#allocation2 + $0x140] sm:$0xff] }
  0xb5   : > { %5109 = vrot.lane.b32.xlu2 %v6120_v51, %s5720_s21 }
  0xb7   : > { %5104 = vrot.lane.b32.xlu1 %v6126_v55, %s5720_s21  ;;  %v6134_v58 = vpop.permute.xlu2 %4944 }
  0xb9   : > { %5114 = vrot.lane.b32.xlu0 %v5113_v57, %s5720_s21 }
  0xbd   : > { %5124 = vrot.lane.b32.xlu2 %v6014_v21, %s5721_s22 }
  0xbf   : > { %5119 = vrot.lane.b32.xlu1 %v5952_v28, %s5722_s23  ;;  %v6143_v60 = vpop.permute.xlu2 %4959 }
  0xc1   : > { %v6145_v61 = vpop.permute.xlu1 %4914  ;;  %5129 = vrot.lane.b32.xlu0 %v5068_v13, %s5723_s24 }
  0xc3   : > { %v6148_v63 = vpop.permute.xlu0 %4909 }
  0xc5   : > { %5139 = vrot.lane.b32.xlu2 %v6018_v26, %s5724_s25 }
  0xc7   : > { %5134 = vrot.lane.b32.xlu1 %v5944_v23, %s5725_s26  ;;  %v6154_v21 = vpop.permute.xlu2 %4974 }
  0xc8   : > { %7656 = vst [vmem:[#allocation5_spill] sm:$0xff] %v6154_v21 }
  0xc9   : > { %v6156_v28 = vpop.permute.xlu1 %4919  ;;  %5144 = vrot.lane.b32.xlu0 %v5944_v23, %s5722_s23 }
  0xcb   : > { %v6160_v1 = vpop.permute.xlu0 %4934 }
  0xcc   : > { %7657 = vst [vmem:[#allocation6_spill] sm:$0xff] %v6160_v1 }
  0xcd   : > { %5154 = vrot.lane.b32.xlu2 %v5073_v25, %s5723_s24  ;;  %v504_v25 = vld [vmem:[#allocation2 + $0x120] sm:$0xff] }
  0xce   : > { %v5218_v34 = vpack.i.bf16 %v505_v29, %v504_v25  ;;  %v713_v29 = vld [vmem:[#allocation2 + $0x91] sm:$0xff] }
  0xcf   : > { %5149 = vrot.lane.b32.xlu1 %v6018_v26, %s5721_s22  ;;  %v6165_v7 = vpop.permute.xlu2 %4989 }
  0xd1   : > { %v6167_v8 = vpop.permute.xlu1 %4939  ;;  %5159 = vrot.lane.b32.xlu0 %v5966_v38, %s5725_s26 }
  0xd3   : > { %v6171_v9 = vpop.permute.xlu0 %4949 }
  0xd4   : > { %7658 = vst [vmem:[#allocation7_spill] sm:$0xff] %v6171_v9 }
  0xd5   : > { %5169 = vrot.lane.b32.xlu2 %v5966_v38, %s5722_s23 }
  0xd7   : > { %5164 = vrot.lane.b32.xlu1 %v6025_v36, %s5724_s25  ;;  %v6177_v23 = vpop.permute.xlu2 %5004 }
  0xd9   : > { %v6179_v12 = vpop.permute.xlu1 %4954  ;;  %5174 = vrot.lane.b32.xlu0 %v6025_v36, %s5721_s22 }
  0xda   : > { %7659 = vst [vmem:[#allocation8_spill] sm:$0xff] %v6179_v12 }
  0xdb   : > { %v6183_v26 = vpop.permute.xlu0 %4964 }
  0xdd   : > { %5184 = vrot.lane.b32.xlu2 %v5936_v18, %s5725_s26 }
  0xdf   : > { %5179 = vrot.lane.b32.xlu1 %v6087_v20, %s5723_s24  ;;  %v6189_v13 = vpop.permute.xlu2 %5019 }
  0xe1   : > { %v6191_v38 = vpop.permute.xlu1 %4969  ;;  %5189 = vrot.lane.b32.xlu0 %v6023_v32, %s5724_s25 }
  0xe2   : > { %7660 = vst [vmem:[#allocation9_spill] sm:$0xff] %v6191_v38 }
  0xe3   : > { %v6195_v22 = vpop.permute.xlu0 %4979 }
  0xe4   : > { %7661 = vst [vmem:[#allocation10_spill] sm:$0xff] %v6195_v22  ;;  %v2076_v22 = vld [vmem:[%s7627_s1 + $0x10] sm:$0x3] }
  0xe5   : > { %5199 = vrot.lane.b32.xlu2 %v6023_v32, %s5721_s22 }
  0xe7   : > { %5194 = vrot.lane.b32.xlu1 %v5936_v18, %s5722_s23  ;;  %v6201_v36 = vpop.permute.xlu2 %5034 }
  0xe8   : > { %7662 = vst [vmem:[#allocation11_spill] sm:$0xff] %v6201_v36 }
  0xe9   : > { %v6203_v24 = vpop.permute.xlu1 %4984  ;;  %5204 = vrot.lane.b32.xlu0 %v6093_v27, %s5723_s24  ;;  %v506_v27 = vld [vmem:[#allocation2 + $0x138] sm:$0xff] }
  0xea   : > { %v6222_v44 = vpack.i.bf16 %v507_v43, %v506_v27 }
  0xeb   : > { %v6207_v20 = vpop.permute.xlu0 %4994 }
  0xed   : > { %5214 = vrot.lane.b32.xlu2 %v6029_v37, %s5724_s25 }
  0xef   : > { %5209 = vrot.lane.b32.xlu1 %v5960_v33, %s5725_s26  ;;  %v6213_v32 = vpop.permute.xlu2 %5049 }
  0xf0   : > { %7663 = vst [vmem:[#allocation12_spill] sm:$0xff] %v6213_v32 }
  0xf1   : > { %v6215_v18 = vpop.permute.xlu1 %4999  ;;  %5219 = vrot.lane.b32.xlu0 %v5218_v34, %s5720_s21  ;;  %v714_v34 = vld [vmem:[#allocation2 + $0x99] sm:$0xff] }
  0xf3   : > { %v6218_v35 = vpop.permute.xlu0 %5009 }
  0xf5   : > { %5229 = vrot.lane.b32.xlu2 %v6052_v2, %s5721_s22 }
  0xf7   : > { %5224 = vrot.lane.b32.xlu1 %v6003_v6, %s5722_s23  ;;  %v6226_v45 = vpop.permute.xlu2 %5064 }
  0xf9   : > { %v6228_v49 = vpop.permute.xlu1 %5014  ;;  %5234 = vrot.lane.b32.xlu0 %v6222_v44, %s5723_s24 }
  0xfa   : > { %7664 = vst [vmem:[#allocation13_spill] sm:$0xff] %v6228_v49  ;;  %v651_v49 = vld [vmem:[#allocation2 + $0x9a] sm:$0xff] }
  0xfb   : > { %v6232_v50 = vpop.permute.xlu0 %5024 }
  0xfc   : > { %v5027_v32 = vunpack.i.h.bf16 %v6232_v50 }
  0xfd   : > { %5244 = vrot.lane.b32.xlu2 %v6050_v62, %s5724_s25 }
  0xff   : > { %5239 = vrot.lane.b32.xlu1 %v6008_v14, %s5725_s26  ;;  %v6238_v2 = vpop.permute.xlu2 %5079 }
 0x101   : > { %v6240_v57 = vpop.permute.xlu1 %5029  ;;  %5249 = vrot.lane.b32.xlu0 %v5960_v33, %s5722_s23  ;;  %v6258_v33 = vpack.i.bf16 %v714_v34, %v713_v29  ;;  %v2086_v29 = vunpack.c.l.b16 %v2076_v22  ;;  %v4853_v22 = vld [vmem:[%s7627_s1 + $0x8] sm:$0xff] }
 0x102   : > { %7665 = vst [vmem:[#allocation14_spill] sm:$0xff] %v6240_v57  ;;  %v650_v57 = vld [vmem:[#allocation2 + $0x92] sm:$0xff] }
 0x103   : > { %v6244_v6 = vpop.permute.xlu0 %5039 }
 0x105   : > { %5259 = vrot.lane.b32.xlu2 %v6109_v42, %s5723_s24  ;;  %v719_v42 = vld [vmem:[#allocation2 + $0xd9] sm:$0xff] }
 0x107   : > { %5254 = vrot.lane.b32.xlu1 %v6029_v37, %s5721_s22  ;;  %v6250_v25 = vpop.permute.xlu2 %5094 }
 0x108   : > { %7666 = vst [vmem:[#allocation15_spill] sm:$0xff] %v6250_v25 }
 0x109   : > { %v6252_v27 = vpop.permute.xlu1 %5044  ;;  %5264 = vrot.lane.b32.xlu0 %v5985_v52, %s5722_s23  ;;  %v7669_v52 = vmov 0.0  }
 0x10a   : > { %3138 = vst.msk [vmem:[#allocation3] sm:$0xff] %vm1891_vm2, %v7669_v52 }
 0x10b   : > { %v6256_v43 = vpop.permute.xlu0 %5054  ;;  %3141 = vst.msk [vmem:[#allocation3 + $0x10] sm:$0xff] %vm1891_vm2, %v7669_v52 }
 0x10c   : > { %7667 = vst [vmem:[#allocation16_spill] sm:$0xff] %v6256_v43 }
 0x10d   : > { %5274 = vrot.lane.b32.xlu2 %v6038_v47, %s5721_s22  ;;  %v6275_v47 = vpack.i.bf16 %v720_v0, %v719_v42  ;;  %3143 = vst.msk [vmem:[#allocation3 + $0x20] sm:$0xff] %vm1891_vm2, %v7669_v52 }
 0x10e   : > { %3145 = vst.msk [vmem:[#allocation3 + $0x30] sm:$0xff] %vm1891_vm2, %v7669_v52 }
 0x10f   : > { %5269 = vrot.lane.b32.xlu1 %v6258_v33, %s5725_s26  ;;  %v6264_v37 = vpop.permute.xlu2 %5109  ;;  %3147 = vst.msk [vmem:[#allocation3 + $0x40] sm:$0xff] %vm1891_vm2, %v7669_v52 }
 0x110   : > { %7668 = vst [vmem:[#allocation17_spill] sm:$0xff] %v6264_v37  ;;  %v2089_v37 = vpack.c.b16 %v2086_v29, %v2086_v29  ;;  %v729_v29 = vld [vmem:[#allocation2 + $0x151] sm:$0xff] }
 0x111   : > { %v6271_v34 = vpop.permute.xlu1 %5059  ;;  %5279 = vrot.lane.b32.xlu0 %v6035_v46, %s5724_s25  ;;  %3149 = vst.msk [vmem:[#allocation3 + $0x50] sm:$0xff] %vm1891_vm2, %v7669_v52 }
 0x112   : > { %7670 = vst [vmem:[#allocation18_spill] sm:$0xff] %v6271_v34  ;;  %v2143_v0 = vsel %vm2141_vm3, %v2089_v37, 0  ;;  %v4852_v37 = vld [vmem:[%s7627_s1] sm:$0xff]  ;;  %vm3297_vm3 = vcmask 1046534  }
 0x113   : > { %v6281_v43 = vpop.permute.xlu0 %5069  ;;  %3151 = vst.msk [vmem:[#allocation3 + $0x60] sm:$0xff] %vm1891_vm2, %v7669_v52  ;;  %2150 = vmatpush.bf16.msra.mxu0 %v2143_v0  ;;  %4874 = vmatpush.bf16.msra.mxu3 %v2143_v0 }
 0x114   : > { %3153 = vst.msk [vmem:[#allocation3 + $0x70] sm:$0xff] %vm1891_vm2, %v7669_v52  ;;  %4872 = vmatpush.bf16.msra.mxu1 %v2143_v0  ;;  %4873 = vmatpush.bf16.msra.mxu2 %v2143_v0  ;;  %v730_v0 = vld [vmem:[#allocation2 + $0x159] sm:$0xff] }
 0x115   : > { %5289 = vrot.lane.b32.xlu2 %v6275_v47, %s5725_s26  ;;  %3155 = vst.msk [vmem:[#allocation3 + $0x80] sm:$0xff] %vm1891_vm2, %v7669_v52 }
 0x116   : > { %3157 = vst.msk [vmem:[#allocation3 + $0x90] sm:$0xff] %vm1891_vm2, %v7669_v52  ;;  %v508_v52 = vld [vmem:[#allocation2 + $0x150] sm:$0xff] }
 0x117   : > { %5284 = vrot.lane.b32.xlu1 %v6126_v55, %s5723_s24  ;;  %v6295_v46 = vpop.permute.xlu2 %5124  ;;  %2151 = vmatpush.bf16.msra.mxu0 %v4853_v22 }
 0x118   : > { %4877 = vmatpush.bf16.msra.mxu3 %v4853_v22  ;;  %4875 = vmatpush.bf16.msra.mxu1 %v4853_v22 }
 0x119   : > { %v6304_v42 = vpop.permute.xlu1 %5074  ;;  %5294 = vrot.lane.b32.xlu0 %v6044_v56, %s5724_s25  ;;  %4876 = vmatpush.bf16.msra.mxu2 %v4853_v22  ;;  %v6325_v22 = vpack.i.bf16 %v730_v0, %v729_v29  ;;  %v5333_v0 = vpack.i.bf16 %v651_v49, %v650_v57  ;;  %v715_v49 = vld [vmem:[#allocation2 + $0xa9] sm:$0xff]  ;;  %v716_v57 = vld [vmem:[#allocation2 + $0xb1] sm:$0xff] }
 0x11b   : > { %v6310_v55 = vpop.permute.xlu0 %5084  ;;  %2152 = vmatpush.bf16.msra.mxu0 %v4852_v37 }
 0x11c   : > { %4880 = vmatpush.bf16.msra.mxu3 %v4852_v37  ;;  %4878 = vmatpush.bf16.msra.mxu1 %v4852_v37 }
 0x11d   : > { %5304 = vrot.lane.b32.xlu2 %v6008_v14, %s5722_s23  ;;  %4879 = vmatpush.bf16.msra.mxu2 %v4852_v37  ;;  %v509_v14 = vld [vmem:[#allocation2 + $0x158] sm:$0xff]  ;;  %v4946_v37 = vunpack.i.l.bf16 %v6134_v58 }
 0x11e   : > { %v6329_v36 = vpack.i.bf16 %v509_v14, %v508_v52 }
 0x11f   : > { %5299 = vrot.lane.b32.xlu1 %v6222_v44, %s5720_s21  ;;  %v6319_v56 = vpop.permute.xlu2 %5139  ;;  %v4947_v44 = vunpack.i.h.bf16 %v6134_v58  ;;  %v1809_v14 = vsel %vm391_vm0, %v6105_v40, %v4946_v37  ;;  %v4906_v40 = vunpack.i.l.bf16 %v6137_v59  ;;  %v4987_v37 = vunpack.i.h.bf16 %v6203_v24 }
 0x121   : > { %v6321_v34 = vpop.permute.xlu1 %5089  ;;  %5309 = vrot.lane.b32.xlu0 %v6050_v62, %s5721_s22  ;;  %v5026_v62 = vunpack.i.l.bf16 %v6232_v50  ;;  %v1810_v58 = vsel %vm391_vm0, %v6107_v41, %v4947_v44  ;;  %v4907_v41 = vunpack.i.h.bf16 %v6137_v59  ;;  %v481_v44 = vld [vmem:[#allocation2 + $0x8] sm:$0xff]  ;;  %v6370_v59 = vpack.i.bf16 %v716_v57, %v715_v49 }
 0x122   : > { %7671 = vst [vmem:[#allocation19_spill] sm:$0xff] %v6321_v34  ;;  %v1843_v50 = vsel %vm1825_vm4, %v1810_v58, %v5027_v32  ;;  %v480_v32 = vld [vmem:[#allocation2] sm:$0xff]  ;;  %v5126_v49 = vunpack.i.l.bf16 %v6295_v46 }
 0x123   : > { %v6327_v25 = vpop.permute.xlu0 %5099  ;;  %v1842_v9 = vsel %vm1825_vm4, %v1809_v14, %v5026_v62  ;;  %v4986_v62 = vunpack.i.l.bf16 %v6203_v24  ;;  %v1793_v58 = vsel %vm391_vm0, %v480_v32, %v4906_v40 }
 0x125   : > { %5319 = vrot.lane.b32.xlu2 %v6325_v22, %s5725_s26 }
 0x127   : > { %5314 = vrot.lane.b32.xlu1 %v6329_v36, %s5723_s24  ;;  %v6339_v29 = vpop.permute.xlu2 %5154 }
 0x129   : > { %v5105_v52 = vpop.permute.xlu1 %5104  ;;  %5324 = vrot.lane.b32.xlu0 %v6056_v3, %s5724_s25 }
 0x12a   : > { %v5107_v38 = vunpack.i.h.bf16 %v5105_v52  ;;  %v5106_v12 = vunpack.i.l.bf16 %v5105_v52 }
 0x12b   : > { %v6349_v1 = vpop.permute.xlu0 %5114 }
 0x12c   : > { %7672 = vst [vmem:[#allocation20_spill] sm:$0xff] %v6349_v1  ;;  %v6352_v21 = vsel %vm1858_vm5, %v1842_v9, %v5106_v12  ;;  %v6355_v3 = vsel %vm1858_vm5, %v1843_v50, %v5107_v38  ;;  %v5067_v12 = vunpack.i.h.bf16 %v6226_v45  ;;  %v5066_v38 = vunpack.i.l.bf16 %v6226_v45  ;;  %v656_v50 = vld [vmem:[#allocation2 + $0xda] sm:$0xff] }
 0x12d   : > { %7673 = vst [vmem:[#allocation21_spill] sm:$0xff] %v6352_v21  ;;  %5334 = vrot.lane.b32.xlu2 %v5333_v0, %s5721_s22  ;;  %v1794_v0 = vsel %vm391_vm0, %v481_v44, %v4907_v41 }
 0x12e   : > { %7674 = vst [vmem:[#allocation22_spill] sm:$0xff] %v6355_v3  ;;  %v1827_v1 = vsel %vm1825_vm4, %v1794_v0, %v4987_v37  ;;  %v1826_v3 = vsel %vm1825_vm4, %v1793_v58, %v4986_v62  ;;  %v748_v37 = vld [vmem:[#allocation2 + $0xb2] sm:$0xff]  ;;  %v5142_v62 = vunpack.i.h.bf16 %v6319_v56 }
 0x12f   : > { %5329 = vrot.lane.b32.xlu1 %v6258_v33, %s5722_s23  ;;  %v6364_v9 = vpop.permute.xlu2 %5169  ;;  %v657_v33 = vld [vmem:[#allocation2 + $0xe2] sm:$0xff]  ;;  %v1860_v45 = vsel %vm1858_vm5, %v1827_v1, %v5067_v12  ;;  %v1859_v34 = vsel %vm1858_vm5, %v1826_v3, %v5066_v38  ;;  %v5141_v12 = vunpack.i.l.bf16 %v6319_v56  ;;  %v722_v0 = vld [vmem:[#allocation2 + $0xf9] sm:$0xff]  ;;  %v4911_v56 = vunpack.i.l.bf16 %v6148_v63 }
 0x130   : > { %v5353_v57 = vpack.i.bf16 %v657_v33, %v656_v50  ;;  %v4912_v33 = vunpack.i.h.bf16 %v6148_v63  ;;  %v5072_v63 = vunpack.i.h.bf16 %v6281_v43 }
 0x131   : > { %v5120_v52 = vpop.permute.xlu1 %5119  ;;  %5339 = vrot.lane.b32.xlu0 %v6103_v39, %s5723_s24  ;;  %v5127_v39 = vunpack.i.h.bf16 %v6295_v46 }
 0x132   : > { %v5122_v24 = vunpack.i.h.bf16 %v5120_v52  ;;  %v5121_v14 = vunpack.i.l.bf16 %v5120_v52 }
 0x133   : > { %v5130_v21 = vpop.permute.xlu0 %5129 }
 0x134   : > { %v1892_v41 = vsel %vm1891_vm2, %v1859_v34, %v5121_v14  ;;  %v1893_v40 = vsel %vm1891_vm2, %v1860_v45, %v5122_v24  ;;  %v5132_v44 = vunpack.i.h.bf16 %v5130_v21  ;;  %v5131_v32 = vunpack.i.l.bf16 %v5130_v21  ;;  %v747_v34 = vld [vmem:[#allocation2 + $0xaa] sm:$0xff] }
 0x135   : > { %5349 = vrot.lane.b32.xlu2 %v6370_v59, %s5725_s26  ;;  %v1925_v3 = vsel %vm1924_vm6, %v1892_v41, %v5126_v49  ;;  %v1926_v46 = vsel %vm1924_vm6, %v1893_v40, %v5127_v39  ;;  %v6395_v50 = vpack.i.bf16 %v748_v37, %v747_v34  ;;  %v753_v37 = vld [vmem:[#allocation2 + $0xf2] sm:$0xff] }
 0x136   : > { %v1959_v58 = vsel %vm1957_vm7, %v1926_v46, %v5132_v44  ;;  %v1958_v24 = vsel %vm1957_vm7, %v1925_v3, %v5131_v32  ;;  %v4991_v44 = vunpack.i.l.bf16 %v6165_v7  ;;  %v5071_v3 = vunpack.i.l.bf16 %v6281_v43 }
 0x137   : > { %5344 = vrot.lane.b32.xlu1 %v6275_v47, %s5722_s23  ;;  %v6386_v1 = vpop.permute.xlu2 %5184  ;;  %v721_v47 = vld [vmem:[#allocation2 + $0xf1] sm:$0xff] }
 0x138   : > { %v6405_v40 = vpack.i.bf16 %v722_v0, %v721_v47 }
 0x139   : > { %v5135_v38 = vpop.permute.xlu1 %5134  ;;  %5354 = vrot.lane.b32.xlu0 %v5353_v57, %s5721_s22  ;;  %v4992_v57 = vunpack.i.h.bf16 %v6165_v7  ;;  %v1796_v7 = vsel %vm391_vm0, %v6060_v5, %v4912_v33  ;;  %v5156_v5 = vunpack.i.l.bf16 %v6339_v29 }
 0x13a   : > { %v5137_v21 = vunpack.i.h.bf16 %v5135_v38  ;;  %v5136_v52 = vunpack.i.l.bf16 %v5135_v38 }
 0x13b   : > { %v5145_v14 = vpop.permute.xlu0 %5144 }
 0x13c   : > { %v1991_v45 = vsel %vm1990_vm8, %v1958_v24, %v5136_v52  ;;  %v1992_v39 = vsel %vm1990_vm8, %v1959_v58, %v5137_v21  ;;  %v5147_v46 = vunpack.i.h.bf16 %v5145_v14  ;;  %v5146_v34 = vunpack.i.l.bf16 %v5145_v14 }
 0x13d   : > { %5364 = vrot.lane.b32.xlu2 %v6120_v51, %s5723_s24  ;;  %v2024_v49 = vsel %vm2023_vm9, %v1991_v45, %v5141_v12  ;;  %v2025_v41 = vsel %vm2023_vm9, %v1992_v39, %v5142_v62  ;;  %v754_v62 = vld [vmem:[#allocation2 + $0xfa] sm:$0xff]  ;;  %v1795_v12 = vsel %vm391_vm0, %v6058_v4, %v4911_v56  ;;  %v1829_v21 = vsel %vm1825_vm4, %v1796_v7, %v4992_v57  ;;  %v732_v7 = vld [vmem:[#allocation2 + $0x171] sm:$0xff] }
 0x13e   : > { %v2056_v32 = vpack.c.bf16 %v2025_v41, %v2024_v49  ;;  %v1828_v43 = vsel %vm1825_vm4, %v1795_v12, %v4991_v44  ;;  %v1862_v58 = vsel %vm1858_vm5, %v1829_v21, %v5072_v63  ;;  %v6426_v14 = vpack.i.bf16 %v754_v62, %v753_v37  ;;  %v510_v49 = vld [vmem:[#allocation2 + $0x168] sm:$0xff] }
 0x13f   : > { %5359 = vrot.lane.b32.xlu1 %v6395_v50, %s5724_s25  ;;  %v6413_v51 = vpop.permute.xlu2 %5199  ;;  %v1861_v0 = vsel %vm1858_vm5, %v1828_v43, %v5071_v3  ;;  %v5157_v4 = vunpack.i.h.bf16 %v6339_v29  ;;  %v1895_v56 = vsel %vm1891_vm2, %v1862_v58, %v5147_v46  ;;  %v511_v29 = vld [vmem:[#allocation2 + $0x170] sm:$0xff]  ;;  %v667_v46 = vld [vmem:[#allocation2 + $0x15a] sm:$0xff] }
 0x140   : > { %4596 = vmatmul.msk.bf16.vlgmr.msra.gmra.mxu0 %vm2092_vm10, %v2056_v32  ;;  %v1894_v33 = vsel %vm1891_vm2, %v1861_v0, %v5146_v34  ;;  %v666_v3 = vld [vmem:[#allocation2 + $0x152] sm:$0xff]  ;;  %v731_v12 = vld [vmem:[#allocation2 + $0x169] sm:$0xff]  ;;  %v4916_v0 = vunpack.i.l.bf16 %v6145_v61 }
 0x141   : > { %v5150_v38 = vpop.permute.xlu1 %5149  ;;  %5369 = vrot.lane.b32.xlu0 %v6405_v40, %s5725_s26 }
 0x142   : > { %v5152_v52 = vunpack.i.h.bf16 %v5150_v38  ;;  %v5151_v47 = vunpack.i.l.bf16 %v5150_v38 }
 0x143   : > { %v5160_v24 = vpop.permute.xlu0 %5159 }
 0x144   : > { %v1927_v45 = vsel %vm1924_vm6, %v1894_v33, %v5151_v47  ;;  %v1928_v39 = vsel %vm1924_vm6, %v1895_v56, %v5152_v52  ;;  %v5162_v41 = vunpack.i.h.bf16 %v5160_v24  ;;  %v5161_v57 = vunpack.i.l.bf16 %v5160_v24 }
 0x145   : > { %5379 = vrot.lane.b32.xlu2 %v6329_v36, %s5720_s21  ;;  %v1960_v32 = vsel %vm1957_vm7, %v1927_v45, %v5156_v5  ;;  %v1961_v63 = vsel %vm1957_vm7, %v1928_v39, %v5157_v4  ;;  %v5393_v36 = vpack.i.bf16 %v511_v29, %v510_v49  ;;  %v5388_v52 = vpack.i.bf16 %v667_v46, %v666_v3 }
 0x146   : > { %v1993_v38 = vsel %vm1990_vm8, %v1960_v32, %v5161_v57  ;;  %v1994_v43 = vsel %vm1990_vm8, %v1961_v63, %v5162_v41  ;;  %v4917_v47 = vunpack.i.h.bf16 %v6145_v61  ;;  %v4996_v4 = vunpack.i.l.bf16 %v6207_v20  ;;  %v763_v32 = vld [vmem:[#allocation2 + $0x16a] sm:$0xff] }
 0x147   : > { %5374 = vrot.lane.b32.xlu1 %v6426_v14, %s5724_s25  ;;  %v6438_v44 = vpop.permute.xlu2 %5214  ;;  %v6453_v33 = vpack.i.bf16 %v732_v7, %v731_v12  ;;  %v5077_v56 = vunpack.i.h.bf16 %v6304_v42  ;;  %v5076_v45 = vunpack.i.l.bf16 %v6304_v42  ;;  %v5172_v39 = vunpack.i.h.bf16 %v6364_v9  ;;  %v764_v42 = vld [vmem:[#allocation2 + $0x172] sm:$0xff] }
 0x148   : > { %v5171_v61 = vunpack.i.l.bf16 %v6364_v9  ;;  %v1798_v41 = vsel %vm391_vm0, %v6070_v11, %v4917_v47  ;;  %v6475_v12 = vpack.i.bf16 %v764_v42, %v763_v32  ;;  %v5187_v7 = vunpack.i.h.bf16 %v6386_v1 }
 0x149   : > { %v5165_v34 = vpop.permute.xlu1 %5164  ;;  %5384 = vrot.lane.b32.xlu0 %v6325_v22, %s5722_s23  ;;  %v4997_v22 = vunpack.i.h.bf16 %v6207_v20  ;;  %v1797_v20 = vsel %vm391_vm0, %v6068_v10, %v4916_v0  ;;  %v389_v0 = vld [vmem:[%s5903_s19 + $0xf0] sm:$0xff] }
 0x14a   : > { %v5167_v37 = vunpack.i.h.bf16 %v5165_v34  ;;  %v5166_v62 = vunpack.i.l.bf16 %v5165_v34  ;;  %v1830_v9 = vsel %vm1825_vm4, %v1797_v20, %v4996_v4  ;;  %478 = vst.msk [vmem:[#allocation2 + $0x181] sm:$0xff] %vm391_vm0, %v389_v0  ;;  %v5002_v20 = vunpack.i.h.bf16 %v6215_v18  ;;  %v691_v0 = vld [vmem:[#allocation2 + $0x108] sm:$0xff] }
 0x14b   : > { %v5175_v21 = vpop.permute.xlu0 %5174  ;;  %v1831_v63 = vsel %vm1825_vm4, %v1798_v41, %v4997_v22  ;;  %v1863_v10 = vsel %vm1858_vm5, %v1830_v9, %v5076_v45  ;;  %v717_v41 = vld [vmem:[#allocation2 + $0xc1] sm:$0xff] }
 0x14c   : > { %v2026_v58 = vsel %vm2023_vm9, %v1993_v38, %v5166_v62  ;;  %v2027_v24 = vsel %vm2023_vm9, %v1994_v43, %v5167_v37  ;;  %v5177_v57 = vunpack.i.h.bf16 %v5175_v21  ;;  %v5176_v29 = vunpack.i.l.bf16 %v5175_v21 }
 0x14d   : > { %5394 = vrot.lane.b32.xlu2 %v5393_v36, %s5723_s24  ;;  %v2057_v5 = vpack.c.bf16 %v2027_v24, %v2026_v58  ;;  %v1864_v11 = vsel %vm1858_vm5, %v1831_v63, %v5077_v56  ;;  %v1896_v36 = vsel %vm1891_vm2, %v1863_v10, %v5171_v61  ;;  %v5186_v38 = vunpack.i.l.bf16 %v6386_v1  ;;  %v390_v58 = vld [vmem:[%s5903_s19 + $0xf8] sm:$0xff]  ;;  %v685_v1 = vld [vmem:[#allocation2 + $0xc0] sm:$0xff]  ;;  %s5726_s19 = smov 80  }
 0x14e   : > { %v1897_v37 = vsel %vm1891_vm2, %v1864_v11, %v5172_v39  ;;  %v1929_v43 = vsel %vm1924_vm6, %v1896_v36, %v5176_v29  ;;  %479 = vst.msk [vmem:[#allocation2 + $0x189] sm:$0xff] %vm391_vm0, %v390_v58  ;;  %v4922_v39 = vunpack.i.h.bf16 %v6156_v28  ;;  %v4921_v61 = vunpack.i.l.bf16 %v6156_v28  ;;  %v749_v36 = vld [vmem:[#allocation2 + $0xc2] sm:$0xff]  ;;  %v692_v58 = vld [vmem:[#allocation2 + $0x110] sm:$0xff] }
 0x14f   : > { %5389 = vrot.lane.b32.xlu1 %v5388_v52, %s5721_s22  ;;  %v6460_v49 = vpop.permute.xlu2 %5229  ;;  %v1930_v21 = vsel %vm1924_vm6, %v1897_v37, %v5177_v57  ;;  %v718_v57 = vld [vmem:[#allocation2 + $0xc9] sm:$0xff]  ;;  %v5001_v29 = vunpack.i.l.bf16 %v6215_v18 }
 0x150   : > { %4597 = vmatmul.msk.bf16.gmra.mxu0 %vm2092_vm10, %v2057_v5  ;;  %v686_v5 = vld [vmem:[#allocation2 + $0xc8] sm:$0xff]  ;;  %v5428_v28 = vpack.i.bf16 %v718_v57, %v717_v41  ;;  %v1799_v18 = vsel %vm391_vm0, %v6080_v17, %v4921_v61  ;;  %v4961_v61 = vunpack.i.l.bf16 %v6143_v60  ;;  %v5041_v41 = vunpack.i.l.bf16 %v6244_v6 }
 0x151   : > { %v5180_v3 = vpop.permute.xlu1 %5179  ;;  %5399 = vrot.lane.b32.xlu0 %v6453_v33, %s5725_s26  ;;  %v5418_v42 = vpack.i.bf16 %v686_v5, %v685_v1  ;;  %v750_v37 = vld [vmem:[#allocation2 + $0xca] sm:$0xff] }
 0x152   : > { %v5182_v46 = vunpack.i.h.bf16 %v5180_v3  ;;  %v5181_v34 = vunpack.i.l.bf16 %v5180_v3  ;;  %v5082_v3 = vunpack.i.h.bf16 %v6238_v2  ;;  %v755_v57 = vld [vmem:[#allocation2 + $0x10a] sm:$0xff] }
 0x153   : > { %v5190_v62 = vpop.permute.xlu0 %5189 }
 0x154   : > { %v1962_v52 = vsel %vm1957_vm7, %v1929_v43, %v5181_v34  ;;  %v1963_v47 = vsel %vm1957_vm7, %v1930_v21, %v5182_v46  ;;  %v5192_v24 = vunpack.i.h.bf16 %v5190_v62  ;;  %v5191_v22 = vunpack.i.l.bf16 %v5190_v62 }
 0x155   : > { %5409 = vrot.lane.b32.xlu2 %v6370_v59, %s5722_s23  ;;  %v1995_v56 = vsel %vm1990_vm8, %v1962_v52, %v5186_v38  ;;  %v1996_v45 = vsel %vm1990_vm8, %v1963_v47, %v5187_v7  ;;  %v1800_v46 = vsel %vm391_vm0, %v6082_v19, %v4922_v39  ;;  %v1832_v62 = vsel %vm1825_vm4, %v1799_v18, %v5001_v29  ;;  %v756_v29 = vld [vmem:[#allocation2 + $0x112] sm:$0xff] }
 0x156   : > { %v2028_v63 = vsel %vm2023_vm9, %v1995_v56, %v5191_v22  ;;  %v2029_v9 = vsel %vm2023_vm9, %v1996_v45, %v5192_v24  ;;  %v1833_v7 = vsel %vm1825_vm4, %v1800_v46, %v5002_v20  ;;  %v5202_v19 = vunpack.i.h.bf16 %v6413_v51 }
 0x157   : > { %5404 = vrot.lane.b32.xlu1 %v6475_v12, %s5724_s25  ;;  %v6489_v4 = vpop.permute.xlu2 %5244  ;;  %v2058_v34 = vpack.c.bf16 %v2029_v9, %v2028_v63  ;;  %v5201_v43 = vunpack.i.l.bf16 %v6413_v51  ;;  %v5438_v47 = vpack.i.bf16 %v750_v37, %v749_v36  ;;  %v5443_v39 = vpack.i.bf16 %v692_v58, %v691_v0 }
 0x158   : > { %v5042_v20 = vunpack.i.h.bf16 %v6244_v6  ;;  %v5453_v18 = vpack.i.bf16 %v756_v29, %v755_v57 }
 0x159   : > { %v5195_v59 = vpop.permute.xlu1 %5194  ;;  %5414 = vrot.lane.b32.xlu0 %v6395_v50, %s5721_s22  ;;  %v5081_v50 = vunpack.i.l.bf16 %v6238_v2 }
 0x15a   : > { %v5197_v10 = vunpack.i.h.bf16 %v5195_v59  ;;  %v5196_v11 = vunpack.i.l.bf16 %v5195_v59  ;;  %v4962_v59 = vunpack.i.h.bf16 %v6143_v60 }
 0x15b   : > { %v5205_v32 = vpop.permute.xlu0 %5204  ;;  %v1865_v38 = vsel %vm1858_vm5, %v1832_v62, %v5081_v50  ;;  %v604_v62 = vld [vmem:[#allocation2 + $0x168] sm:$0xff] }
 0x15c   : > { %v1898_v17 = vsel %vm1891_vm2, %v1865_v38, %v5196_v11  ;;  %v5207_v24 = vunpack.i.h.bf16 %v5205_v32  ;;  %v5206_v22 = vunpack.i.l.bf16 %v5205_v32  ;;  %v5217_v32 = vunpack.i.h.bf16 %v6438_v44  ;;  %v723_v11 = vld [vmem:[#allocation2 + $0x109] sm:$0xff] }
 0x15d   : > { %5424 = vrot.lane.b32.xlu2 %v6405_v40, %s5722_s23  ;;  %v1866_v40 = vsel %vm1858_vm5, %v1833_v7, %v5082_v3  ;;  %v1931_v5 = vsel %vm1924_vm6, %v1898_v17, %v5201_v43  ;;  %v605_v7 = vld [vmem:[#allocation2 + $0x170] sm:$0xff]  ;;  %v5232_v17 = vunpack.i.h.bf16 %v6460_v49 }
 0x15e   : > { %v1899_v21 = vsel %vm1891_vm2, %v1866_v40, %v5197_v10  ;;  %v1964_v9 = vsel %vm1957_vm7, %v1931_v5, %v5206_v22  ;;  %v5458_v58 = vpack.i.bf16 %v605_v7, %v604_v62 }
 0x15f   : > { %5419 = vrot.lane.b32.xlu1 %v5418_v42, %s5723_s24  ;;  %v6514_v2 = vpop.permute.xlu2 %5259  ;;  %v1932_v56 = vsel %vm1924_vm6, %v1899_v21, %v5202_v19  ;;  %v5216_v42 = vunpack.i.l.bf16 %v6438_v44  ;;  %v1816_v44 = vsel %vm391_vm0, %v6124_v54, %v4962_v59  ;;  %v5231_v21 = vunpack.i.l.bf16 %v6460_v49 }
 0x160   : > { %4598 = vmatmul.msk.bf16.gmra.mxu0 %vm2092_vm10, %v2058_v34  ;;  %v1965_v63 = vsel %vm1957_vm7, %v1932_v56, %v5207_v24  ;;  %v1849_v34 = vsel %vm1825_vm4, %v1816_v44, %v5042_v20 }
 0x161   : > { %v5210_v52 = vpop.permute.xlu1 %5209  ;;  %5429 = vrot.lane.b32.xlu0 %v5428_v28, %s5725_s26  ;;  %v724_v28 = vld [vmem:[#allocation2 + $0x111] sm:$0xff] }
 0x162   : > { %v5212_v51 = vunpack.i.h.bf16 %v5210_v52  ;;  %v5211_v45 = vunpack.i.l.bf16 %v5210_v52  ;;  %v5448_v19 = vpack.i.bf16 %v724_v28, %v723_v11  ;;  %v5007_v11 = vunpack.i.h.bf16 %v6177_v23 }
 0x163   : > { %v5220_v1 = vpop.permute.xlu0 %5219 }
 0x164   : > { %v1997_v60 = vsel %vm1990_vm8, %v1964_v9, %v5211_v45  ;;  %v1998_v50 = vsel %vm1990_vm8, %v1965_v63, %v5212_v51  ;;  %v5222_v6 = vunpack.i.h.bf16 %v5220_v1  ;;  %v5221_v10 = vunpack.i.l.bf16 %v5220_v1  ;;  %v693_v9 = vld [vmem:[#allocation2 + $0x120] sm:$0xff] }
 0x165   : > { %5439 = vrot.lane.b32.xlu2 %v5438_v47, %s5724_s25  ;;  %v2030_v43 = vsel %vm2023_vm9, %v1997_v60, %v5216_v42  ;;  %v2031_v54 = vsel %vm2023_vm9, %v1998_v50, %v5217_v32  ;;  %v5247_v51 = vunpack.i.h.bf16 %v6489_v4  ;;  %v5246_v45 = vunpack.i.l.bf16 %v6489_v4  ;;  %v694_v60 = vld [vmem:[#allocation2 + $0x128] sm:$0xff] }
 0x166   : > { %v1882_v52 = vsel %vm1858_vm5, %v1849_v34, %v5222_v6  ;;  %v2059_v24 = vpack.c.bf16 %v2031_v54, %v2030_v43  ;;  %v4926_v50 = vunpack.i.l.bf16 %v6098_v31  ;;  %v5483_v44 = vpack.i.bf16 %v694_v60, %v693_v9  ;;  %v701_v34 = vld [vmem:[#allocation2 + $0x180] sm:$0xff]  ;;  %v5689_v60 = vld [vmem:[#allocation2 + $0xa8] sm:$0xff] }
 0x167   : > { %5434 = vrot.lane.b32.xlu1 %v6426_v14, %s5721_s22  ;;  %v6537_v3 = vpop.permute.xlu2 %5274  ;;  %v1815_v14 = vsel %vm391_vm0, %v6122_v53, %v4961_v61 }
 0x168   : > { %v1848_v40 = vsel %vm1825_vm4, %v1815_v14, %v5041_v41  ;;  %v5086_v14 = vunpack.i.l.bf16 %v6310_v55 }
 0x169   : > { %v5225_v46 = vpop.permute.xlu1 %5224  ;;  %5444 = vrot.lane.b32.xlu0 %v5443_v39, %s5723_s24  ;;  %v1881_v53 = vsel %vm1858_vm5, %v1848_v40, %v5221_v10  ;;  %v4927_v10 = vunpack.i.h.bf16 %v6098_v31  ;;  %v4942_v40 = vunpack.i.h.bf16 %v6167_v8 }
 0x16a   : > { %v5227_v36 = vunpack.i.h.bf16 %v5225_v46  ;;  %v5226_v37 = vunpack.i.l.bf16 %v5225_v46  ;;  %v5087_v46 = vunpack.i.h.bf16 %v6310_v55 }
 0x16b   : > { %v5235_v38 = vpop.permute.xlu0 %5234 }
 0x16c   : > { %v1914_v47 = vsel %vm1891_vm2, %v1881_v53, %v5226_v37  ;;  %v1915_v0 = vsel %vm1891_vm2, %v1882_v52, %v5227_v36  ;;  %v5237_v22 = vunpack.i.h.bf16 %v5235_v38  ;;  %v5236_v1 = vunpack.i.l.bf16 %v5235_v38  ;;  %v702_v36 = vld [vmem:[#allocation2 + $0x188] sm:$0xff] }
 0x16d   : > { %5454 = vrot.lane.b32.xlu2 %v5453_v18, %s5724_s25  ;;  %v1947_v49 = vsel %vm1924_vm6, %v1914_v47, %v5231_v21  ;;  %v1948_v56 = vsel %vm1924_vm6, %v1915_v0, %v5232_v17  ;;  %v1801_v37 = vsel %vm391_vm0, %v6075_v15, %v4926_v50  ;;  %v6595_v43 = vpack.i.bf16 %v702_v36, %v701_v34  ;;  %v733_v17 = vld [vmem:[#allocation2 + $0x181] sm:$0xff]  ;;  %v734_v21 = vld [vmem:[#allocation2 + $0x189] sm:$0xff] }
 0x16e   : > { %v1980_v20 = vsel %vm1957_vm7, %v1947_v49, %v5236_v1  ;;  %v1981_v41 = vsel %vm1957_vm7, %v1948_v56, %v5237_v22  ;;  %v5261_v53 = vunpack.i.l.bf16 %v6514_v2  ;;  %v1808_v22 = vsel %vm391_vm0, %v6095_v30, %v4942_v40  ;;  %v766_v40 = vld [vmem:[#allocation2 + $0x18a] sm:$0xff] }
 0x16f   : > { %5449 = vrot.lane.b32.xlu1 %v5448_v19, %s5725_s26  ;;  %v6558_v5 = vpop.permute.xlu2 %5289  ;;  %v4941_v1 = vunpack.i.l.bf16 %v6167_v8  ;;  %v5022_v56 = vunpack.i.h.bf16 %v6189_v13  ;;  %v5101_v30 = vunpack.i.l.bf16 %v6327_v25  ;;  %v5277_v34 = vunpack.i.h.bf16 %v6537_v3 }
 0x170   : > { %4599 = vmatmul.msk.bf16.gmra.mxu0 %vm2092_vm10, %v2059_v24  ;;  %v726_v24 = vld [vmem:[#allocation2 + $0x129] sm:$0xff]  ;;  %v5276_v36 = vunpack.i.l.bf16 %v6537_v3 }
 0x171   : > { %v5240_v59 = vpop.permute.xlu1 %5239  ;;  %5459 = vrot.lane.b32.xlu0 %v5458_v58, %s5720_s21  ;;  %v725_v58 = vld [vmem:[#allocation2 + $0x121] sm:$0xff]  ;;  %v1807_v50 = vsel %vm391_vm0, %v5689_v60, %v4941_v1  ;;  %v703_v1 = vld [vmem:[#allocation2 + $0x198] sm:$0xff] }
 0x172   : > { %v5242_v39 = vunpack.i.h.bf16 %v5240_v59  ;;  %v5241_v61 = vunpack.i.l.bf16 %v5240_v59  ;;  %v6617_v59 = vpack.i.bf16 %v734_v21, %v733_v17 }
 0x173   : > { %v5250_v57 = vpop.permute.xlu0 %5249 }
 0x174   : > { %v2013_v29 = vsel %vm1990_vm8, %v1980_v20, %v5241_v61  ;;  %v2014_v32 = vsel %vm1990_vm8, %v1981_v41, %v5242_v39  ;;  %v5252_v31 = vunpack.i.h.bf16 %v5250_v57  ;;  %v5251_v62 = vunpack.i.l.bf16 %v5250_v57  ;;  %v757_v20 = vld [vmem:[#allocation2 + $0x122] sm:$0xff]  ;;  %v758_v41 = vld [vmem:[#allocation2 + $0x12a] sm:$0xff] }
 0x175   : > { %5469 = vrot.lane.b32.xlu2 %v6453_v33, %s5722_s23  ;;  %v2046_v42 = vsel %vm2023_vm9, %v2013_v29, %v5246_v45  ;;  %v2047_v4 = vsel %vm2023_vm9, %v2014_v32, %v5247_v51  ;;  %v5006_v33 = vunpack.i.l.bf16 %v6177_v23  ;;  %v1802_v23 = vsel %vm391_vm0, %v6077_v16, %v4927_v10 }
 0x176   : > { %v2067_v63 = vpack.c.bf16 %v2047_v4, %v2046_v42  ;;  %v5262_v16 = vunpack.i.h.bf16 %v6514_v2  ;;  %v5021_v51 = vunpack.i.l.bf16 %v6189_v13  ;;  %v5102_v45 = vunpack.i.h.bf16 %v6327_v25 }
 0x177   : > { %5464 = vrot.lane.b32.xlu1 %v5448_v19, %s5722_s23  ;;  %v6576_v6 = vpop.permute.xlu2 %5304  ;;  %v1835_v19 = vsel %vm1825_vm4, %v1802_v23, %v5007_v11  ;;  %v1834_v55 = vsel %vm1825_vm4, %v1801_v37, %v5006_v33  ;;  %v5493_v61 = vpack.i.bf16 %v726_v24, %v725_v58  ;;  %v1841_v10 = vsel %vm1825_vm4, %v1808_v22, %v5022_v56  ;;  %v765_v23 = vld [vmem:[#allocation2 + $0x182] sm:$0xff] }
 0x178   : > { %4607 = vmatmul.msk.bf16.vlgmr.msra.gmra.mxu3 %vm2092_vm10, %v2067_v63  ;;  %v1868_v15 = vsel %vm1858_vm5, %v1835_v19, %v5087_v46  ;;  %v1867_v54 = vsel %vm1858_vm5, %v1834_v55, %v5086_v14  ;;  %v5503_v11 = vpack.i.bf16 %v758_v41, %v757_v20  ;;  %v1840_v33 = vsel %vm1825_vm4, %v1807_v50, %v5021_v51  ;;  %v735_v20 = vld [vmem:[#allocation2 + $0x199] sm:$0xff]  ;;  %v5690_v41 = vld [vmem:[#allocation2 + $0x128] sm:$0xff] }
 0x179   : > { %v5255_v28 = vpop.permute.xlu1 %5254  ;;  %5474 = vrot.lane.b32.xlu0 %v5453_v18, %s5721_s22  ;;  %v1900_v52 = vsel %vm1891_vm2, %v1867_v54, %v5251_v62  ;;  %v1901_v47 = vsel %vm1891_vm2, %v1868_v15, %v5252_v31  ;;  %v1873_v14 = vsel %vm1858_vm5, %v1840_v33, %v5101_v30  ;;  %v5508_v21 = vpack.i.bf16 %v766_v40, %v765_v23 }
 0x17a   : > { %v5257_v18 = vunpack.i.h.bf16 %v5255_v28  ;;  %v5256_v38 = vunpack.i.l.bf16 %v5255_v28  ;;  %v1874_v28 = vsel %vm1858_vm5, %v1841_v10, %v5102_v45  ;;  %v4966_v56 = vunpack.i.l.bf16 %v6183_v26 }
 0x17b   : > { %v6587_v7 = vpop.permute.xlu0 %5264 }
 0x17c   : > { %v1933_v49 = vsel %vm1924_vm6, %v1900_v52, %v5256_v38  ;;  %v1934_v2 = vsel %vm1924_vm6, %v1901_v47, %v5257_v18  ;;  %v5267_v57 = vunpack.i.h.bf16 %v6587_v7  ;;  %v5266_v29 = vunpack.i.l.bf16 %v6587_v7 }
 0x17d   : > { %5484 = vrot.lane.b32.xlu2 %v5483_v44, %s5723_s24  ;;  %v1966_v13 = vsel %vm1957_vm7, %v1933_v49, %v5261_v53  ;;  %v1967_v32 = vsel %vm1957_vm7, %v1934_v2, %v5262_v16  ;;  %v5292_v18 = vunpack.i.h.bf16 %v6558_v5  ;;  %v5291_v38 = vunpack.i.l.bf16 %v6558_v5  ;;  %v704_v49 = vld [vmem:[#allocation2 + $0x1a0] sm:$0xff] }
 0x17e   : > { %v1906_v62 = vsel %vm1891_vm2, %v1873_v14, %v5266_v29  ;;  %v1907_v7 = vsel %vm1891_vm2, %v1874_v28, %v5267_v57  ;;  %v4967_v2 = vunpack.i.h.bf16 %v6183_v26  ;;  %v736_v26 = vld [vmem:[#allocation2 + $0x1a1] sm:$0xff] }
 0x17f   : > { %5479 = vrot.lane.b32.xlu1 %v6475_v12, %s5721_s22  ;;  %v6605_v0 = vpop.permute.xlu2 %5319  ;;  %v1939_v15 = vsel %vm1924_vm6, %v1906_v62, %v5276_v36  ;;  %v1940_v54 = vsel %vm1924_vm6, %v1907_v7, %v5277_v34  ;;  %v5691_v29 = vld [vmem:[#allocation2 + $0x120] sm:$0xff] }
 0x180   : > { %v1818_v57 = vsel %vm391_vm0, %v5690_v41, %v4967_v2  ;;  %v767_v28 = vld [vmem:[#allocation2 + $0x19a] sm:$0xff] }
 0x181   : > { %v5270_v12 = vpop.permute.xlu1 %5269  ;;  %5489 = vrot.lane.b32.xlu0 %v6595_v43, %s5723_s24  ;;  %v5692_v2 = vld [vmem:[#allocation2 + $0x80] sm:$0xff] }
 0x182   : > { %v5272_v39 = vunpack.i.h.bf16 %v5270_v12  ;;  %v5271_v8 = vunpack.i.l.bf16 %v5270_v12  ;;  %v5046_v12 = vunpack.i.l.bf16 %v6252_v27 }
 0x183   : > { %v5280_v42 = vpop.permute.xlu0 %5279 }
 0x184   : > { %v1999_v4 = vsel %vm1990_vm8, %v1966_v13, %v5271_v8  ;;  %v2000_v63 = vsel %vm1990_vm8, %v1967_v32, %v5272_v39  ;;  %v5282_v9 = vunpack.i.h.bf16 %v5280_v42  ;;  %v5281_v25 = vunpack.i.l.bf16 %v5280_v42 }
 0x185   : > { %5499 = vrot.lane.b32.xlu2 %v6617_v59, %s5725_s26  ;;  %v5528_v39 = vpack.i.bf16 %v704_v49, %v703_v1  ;;  %v1817_v13 = vsel %vm391_vm0, %v5691_v29, %v4966_v56 }
 0x186   : > { %v2032_v44 = vsel %vm2023_vm9, %v1999_v4, %v5281_v25  ;;  %v2033_v46 = vsel %vm2023_vm9, %v2000_v63, %v5282_v9  ;;  %v5306_v4 = vunpack.i.l.bf16 %v6576_v6  ;;  %v5533_v25 = vpack.i.bf16 %v736_v26, %v735_v20 }
 0x187   : > { %5494 = vrot.lane.b32.xlu1 %v5493_v61, %s5725_s26  ;;  %v6638_v37 = vpop.permute.xlu2 %5334  ;;  %v2060_v31 = vpack.c.bf16 %v2033_v46, %v2032_v44  ;;  %v768_v44 = vld [vmem:[#allocation2 + $0x1a2] sm:$0xff]  ;;  %v5321_v46 = vunpack.i.l.bf16 %v6605_v0 }
 0x188   : > { %v5538_v23 = vpack.i.bf16 %v768_v44, %v767_v28 }
 0x189   : > { %v5285_v19 = vpop.permute.xlu1 %5284  ;;  %5504 = vrot.lane.b32.xlu0 %v5503_v11, %s5724_s25  ;;  %4600 = vmatmul.msk.bf16.gmra.mxu0 %vm2092_vm10, %v2060_v31 }
 0x18a   : > { %v5287_v3 = vunpack.i.h.bf16 %v5285_v19  ;;  %v5286_v55 = vunpack.i.l.bf16 %v5285_v19 }
 0x18b   : > { %v5295_v17 = vpop.permute.xlu0 %5294 }
 0x18c   : > { %v1972_v16 = vsel %vm1957_vm7, %v1939_v15, %v5286_v55  ;;  %v1973_v53 = vsel %vm1957_vm7, %v1940_v54, %v5287_v3  ;;  %v5297_v52 = vunpack.i.h.bf16 %v5295_v17  ;;  %v5296_v47 = vunpack.i.l.bf16 %v5295_v17 }
 0x18d   : > { %5514 = vrot.lane.b32.xlu2 %v6595_v43, %s5720_s21  ;;  %v2005_v5 = vsel %vm1990_vm8, %v1972_v16, %v5291_v38  ;;  %v2006_v58 = vsel %vm1990_vm8, %v1973_v53, %v5292_v18  ;;  %v5047_v43 = vunpack.i.h.bf16 %v6252_v27  ;;  %v1850_v27 = vsel %vm1825_vm4, %v1817_v13, %v5046_v12  ;;  %s5728_s21 = smov 48  }
 0x18e   : > { %v2038_v24 = vsel %vm2023_vm9, %v2005_v5, %v5296_v47  ;;  %v2039_v22 = vsel %vm2023_vm9, %v2006_v58, %v5297_v52  ;;  %v4932_v16 = vunpack.i.h.bf16 %v6117_v48  ;;  %v4931_v53 = vunpack.i.l.bf16 %v6117_v48  ;;  %v7675_v58 = vld [vmem:[#allocation19_spill] sm:$0xff] }
 0x18f   : > { %5509 = vrot.lane.b32.xlu1 %v5508_v21, %s5724_s25  ;;  %v6659_v51 = vpop.permute.xlu2 %5349  ;;  %v2063_v45 = vpack.c.bf16 %v2039_v22, %v2038_v24  ;;  %v1851_v42 = vsel %vm1825_vm4, %v1818_v57, %v5047_v43  ;;  %v5012_v47 = vunpack.i.h.bf16 %v6218_v35  ;;  %v5011_v5 = vunpack.i.l.bf16 %v6218_v35 }
 0x190   : > { %v5092_v24 = vunpack.i.h.bf16 %v7675_v58  ;;  %v5091_v22 = vunpack.i.l.bf16 %v7675_v58  ;;  %v1804_v56 = vsel %vm391_vm0, %v5692_v2, %v4932_v16 }
 0x191   : > { %v5300_v30 = vpop.permute.xlu1 %5299  ;;  %5519 = vrot.lane.b32.xlu0 %v6617_v59, %s5722_s23  ;;  %4603 = vmatmul.msk.bf16.vlgmr.msra.gmra.mxu1 %vm2092_vm10, %v2063_v45  ;;  %v5307_v59 = vunpack.i.h.bf16 %v6576_v6  ;;  %v5322_v6 = vunpack.i.h.bf16 %v6605_v0  ;;  %v5693_v45 = vld [vmem:[#allocation2 + $0x78] sm:$0xff]  ;;  %v1837_v12 = vsel %vm1825_vm4, %v1804_v56, %v5012_v47 }
 0x192   : > { %v5302_v8 = vunpack.i.h.bf16 %v5300_v30  ;;  %v5301_v61 = vunpack.i.l.bf16 %v5300_v30  ;;  %v1803_v43 = vsel %vm391_vm0, %v5693_v45, %v4931_v53  ;;  %v5697_v45 = vld [vmem:[#allocation2 + $0x90] sm:$0xff] }
 0x193   : > { %v5310_v32 = vpop.permute.xlu0 %5309  ;;  %v1836_v48 = vsel %vm1825_vm4, %v1803_v43, %v5011_v5  ;;  %v5696_v5 = vld [vmem:[#allocation2 + $0x98] sm:$0xff] }
 0x194   : > { %v1883_v63 = vsel %vm1858_vm5, %v1850_v27, %v5301_v61  ;;  %v1884_v9 = vsel %vm1858_vm5, %v1851_v42, %v5302_v8  ;;  %v5312_v60 = vunpack.i.h.bf16 %v5310_v32  ;;  %v5311_v50 = vunpack.i.l.bf16 %v5310_v32 }
 0x195   : > { %5529 = vrot.lane.b32.xlu2 %v5528_v39, %s5723_s24  ;;  %v1916_v11 = vsel %vm1891_vm2, %v1883_v63, %v5306_v4  ;;  %v1917_v33 = vsel %vm1891_vm2, %v1884_v9, %v5307_v59  ;;  %v1869_v35 = vsel %vm1858_vm5, %v1836_v48, %v5091_v22  ;;  %v1870_v39 = vsel %vm1858_vm5, %v1837_v12, %v5092_v24  ;;  %v5698_v12 = vld [vmem:[#allocation2 + $0xe0] sm:$0xff] }
 0x196   : > { %v1949_v31 = vsel %vm1924_vm6, %v1916_v11, %v5311_v50  ;;  %v1950_v62 = vsel %vm1924_vm6, %v1917_v33, %v5312_v60  ;;  %v5337_v8 = vunpack.i.h.bf16 %v6638_v37  ;;  %v5336_v61 = vunpack.i.l.bf16 %v6638_v37  ;;  %v7677_v11 = vld [vmem:[#allocation6_spill] sm:$0xff] }
 0x197   : > { %5524 = vrot.lane.b32.xlu1 %v5508_v21, %s5721_s22  ;;  %v6676_v10 = vpop.permute.xlu2 %5364  ;;  %v5352_v42 = vunpack.i.h.bf16 %v6659_v51  ;;  %v5351_v59 = vunpack.i.l.bf16 %v6659_v51  ;;  %v4937_v33 = vunpack.i.h.bf16 %v7677_v11  ;;  %v4936_v28 = vunpack.i.l.bf16 %v7677_v11  ;;  %v5701_v11 = vld [vmem:[#allocation2 + $0xf0] sm:$0xff] }
 0x198   : > { %v5367_v24 = vunpack.i.h.bf16 %v6676_v10  ;;  %v5366_v22 = vunpack.i.l.bf16 %v6676_v10 }
 0x199   : > { %v5315_v14 = vpop.permute.xlu1 %5314  ;;  %5534 = vrot.lane.b32.xlu0 %v5533_v25, %s5725_s26  ;;  %v7676_v25 = vld [vmem:[#allocation5_spill] sm:$0xff]  ;;  %v1806_v58 = vsel %vm391_vm0, %v5696_v5, %v4937_v33  ;;  %v1805_v43 = vsel %vm391_vm0, %v5697_v45, %v4936_v28 }
 0x19a   : > { %v5317_v34 = vunpack.i.h.bf16 %v5315_v14  ;;  %v5316_v36 = vunpack.i.l.bf16 %v5315_v14  ;;  %v4977_v60 = vunpack.i.h.bf16 %v7676_v25  ;;  %v4976_v50 = vunpack.i.l.bf16 %v7676_v25 }
 0x19b   : > { %v5325_v7 = vpop.permute.xlu0 %5324 }
 0x19c   : > { %v1982_v40 = vsel %vm1957_vm7, %v1949_v31, %v5316_v36  ;;  %v1983_v18 = vsel %vm1957_vm7, %v1950_v62, %v5317_v34  ;;  %v5327_v38 = vunpack.i.h.bf16 %v5325_v7  ;;  %v5326_v19 = vunpack.i.l.bf16 %v5325_v7 }
 0x19d   : > { %v2015_v3 = vsel %vm1990_vm8, %v1982_v40, %v5321_v46  ;;  %v2016_v0 = vsel %vm1990_vm8, %v1983_v18, %v5322_v6  ;;  %v7678_v6 = vld [vmem:[#allocation7_spill] sm:$0xff]  ;;  %v7679_v18 = vld [vmem:[#allocation21_spill] sm:$0xff] }
 0x19e   : > { %v2048_v55 = vsel %vm2023_vm9, %v2015_v3, %v5326_v19  ;;  %v2049_v15 = vsel %vm2023_vm9, %v2016_v0, %v5327_v38  ;;  %v4952_v46 = vunpack.i.h.bf16 %v7678_v6  ;;  %v4951_v14 = vunpack.i.l.bf16 %v7678_v6  ;;  %v7680_v19 = vld [vmem:[#allocation22_spill] sm:$0xff]  ;;  %v6780_v6 = vld [vmem:[%s7629_s3] ss:$0 sm:$0xff] }
 0x19f   : > { %5539 = vrot.lane.b32.xlu1 %v5538_v23, %s5724_s25  ;;  %v6692_v54 = vpop.permute.xlu2 %5379  ;;  %v2068_v17 = vpack.c.bf16 %v2049_v15, %v2048_v55  ;;  %v5694_v15 = vld [vmem:[#allocation2 + $0x158] sm:$0xff] }
 0x1a0   : > { %v6750_v48 = vsel %vm391_vm0, %v5698_v12, %v4952_v46  ;;  %v7688_v12 = vld [vmem:[#allocation17_spill] sm:$0xff] }
 0x1a1   : > { %v5330_v21 = vpop.permute.xlu1 %5329  ;;  %4608 = vmatmul.msk.bf16.gmra.mxu3 %vm2092_vm10, %v2068_v17  ;;  %v6736_v17 = vsel %vm391_vm0, %v5694_v15, %v4977_v60 }
 0x1a2   : > { %v5332_v1 = vunpack.i.h.bf16 %v5330_v21  ;;  %v5331_v49 = vunpack.i.l.bf16 %v5330_v21  ;;  %v7681_v21 = vld [vmem:[#allocation8_spill] sm:$0xff] }
 0x1a3   : > { %v5340_v52 = vpop.permute.xlu0 %5339  ;;  %v4957_v16 = vunpack.i.h.bf16 %v7681_v21  ;;  %v4956_v10 = vunpack.i.l.bf16 %v7681_v21 }
 0x1a4   : > { %v1902_v26 = vsel %vm1891_vm2, %v1869_v35, %v5331_v49  ;;  %v1903_v41 = vsel %vm1891_vm2, %v1870_v39, %v5332_v1  ;;  %v5342_v29 = vunpack.i.h.bf16 %v5340_v52  ;;  %v5341_v13 = vunpack.i.l.bf16 %v5340_v52  ;;  %v5695_v52 = vld [vmem:[#allocation2 + $0x150] sm:$0xff]  ;;  %v5699_v35 = vld [vmem:[#allocation2 + $0xd8] sm:$0xff] }
 0x1a5   : > { %v1935_v32 = vsel %vm1924_vm6, %v1902_v26, %v5336_v61  ;;  %v1936_v27 = vsel %vm1924_vm6, %v1903_v41, %v5337_v8  ;;  %v6740_v47 = vsel %vm391_vm0, %v5695_v52, %v4976_v50  ;;  %v1811_v39 = vsel %vm391_vm0, %v5699_v35, %v4951_v14  ;;  %v5700_v8 = vld [vmem:[#allocation2 + $0xf8] sm:$0xff] }
 0x1a6   : > { %v1968_v4 = vsel %vm1957_vm7, %v1935_v32, %v5341_v13  ;;  %v1969_v37 = vsel %vm1957_vm7, %v1936_v27, %v5342_v29  ;;  %v6755_v61 = vsel %vm391_vm0, %v5700_v8, %v4957_v16  ;;  %v6772_v33 = vsel %vm391_vm0, %v5701_v11, %v4956_v10 }
 0x1a7   : > { %v6705_v30 = vpop.permute.xlu2 %5394  ;;  %v2001_v23 = vsel %vm1990_vm8, %v1968_v4, %v5351_v59  ;;  %v2002_v40 = vsel %vm1990_vm8, %v1969_v37, %v5352_v42  ;;  %v6765_v4 = vld [vmem:[%s7628_s2] ss:$0 sm:$0xff]  ;;  %v5382_v16 = vunpack.i.h.bf16 %v6692_v54  ;;  %v5112_v35 = vunpack.i.h.bf16 %v7688_v12 }
 0x1a9   : > { %v5345_v20 = vpop.permute.xlu1 %5344 }
 0x1aa   : > { %v5347_v63 = vunpack.i.h.bf16 %v5345_v20  ;;  %v5346_v9 = vunpack.i.l.bf16 %v5345_v20  ;;  %v7682_v20 = vld [vmem:[#allocation9_spill] sm:$0xff] }
 0x1ab   : > { %v5355_v57 = vpop.permute.xlu0 %5354  ;;  %v4972_v26 = vunpack.i.h.bf16 %v7682_v20  ;;  %v4971_v41 = vunpack.i.l.bf16 %v7682_v20 }
 0x1ac   : > { %v5357_v31 = vunpack.i.h.bf16 %v5355_v57  ;;  %v5356_v62 = vunpack.i.l.bf16 %v5355_v57  ;;  %v1908_v38 = vsel %vm1891_vm2, %v7679_v18, %v5346_v9  ;;  %v1909_v3 = vsel %vm1891_vm2, %v7680_v19, %v5347_v63  ;;  %v7683_v57 = vld [vmem:[#allocation12_spill] sm:$0xff]  ;;  %v7684_v63 = vld [vmem:[#allocation13_spill] sm:$0xff] }
 0x1ad   : > { %v5052_v29 = vunpack.i.h.bf16 %v7683_v57  ;;  %v5051_v37 = vunpack.i.l.bf16 %v7683_v57  ;;  %v5016_v9 = vunpack.i.l.bf16 %v7684_v63  ;;  %v5017_v28 = vunpack.i.h.bf16 %v7684_v63 }
 0x1ae   : > { %v1941_v1 = vsel %vm1924_vm6, %v1908_v38, %v5356_v62  ;;  %v1942_v49 = vsel %vm1924_vm6, %v1909_v3, %v5357_v31  ;;  %v5703_v31 = vld [vmem:[#allocation2 + $0x138] sm:$0xff]  ;;  %v7686_v38 = vld [vmem:[#allocation11_spill] sm:$0xff] }
 0x1af   : > { %v6725_v36 = vpop.permute.xlu2 %5409  ;;  %v1974_v32 = vsel %vm1957_vm7, %v1941_v1, %v5366_v22  ;;  %v1975_v27 = vsel %vm1957_vm7, %v1942_v49, %v5367_v24  ;;  %v1819_v62 = vsel %vm391_vm0, %v5703_v31, %v4971_v41  ;;  %v5037_v19 = vunpack.i.h.bf16 %v7686_v38 }
 0x1b0   : > { %v5036_v3 = vunpack.i.l.bf16 %v7686_v38  ;;  %v1852_v15 = vsel %vm1825_vm4, %v1819_v62, %v5051_v37  ;;  %v1838_v21 = vsel %vm1825_vm4, %v1805_v43, %v5016_v9  ;;  %v1839_v52 = vsel %vm1825_vm4, %v1806_v58, %v5017_v28  ;;  %v7690_v9 = vld [vmem:[#allocation16_spill] sm:$0xff] }
 0x1b1   : > { %v5360_v44 = vpop.permute.xlu1 %5359 }
 0x1b2   : > { %v5362_v51 = vunpack.i.h.bf16 %v5360_v44  ;;  %v5361_v34 = vunpack.i.l.bf16 %v5360_v44 }
 0x1b3   : > { %v5370_v7 = vpop.permute.xlu0 %5369 }
 0x1b4   : > { %v2034_v0 = vsel %vm2023_vm9, %v2001_v23, %v5361_v34  ;;  %v2035_v55 = vsel %vm2023_vm9, %v2002_v40, %v5362_v51  ;;  %v5372_v2 = vunpack.i.h.bf16 %v5370_v7  ;;  %v5371_v56 = vunpack.i.l.bf16 %v5370_v7  ;;  %v5702_v51 = vld [vmem:[#allocation2 + $0x140] sm:$0xff]  ;;  %v7685_v7 = vld [vmem:[#allocation14_spill] sm:$0xff] }
 0x1b5   : > { %v2061_v53 = vpack.c.bf16 %v2035_v55, %v2034_v0  ;;  %v1820_v34 = vsel %vm391_vm0, %v5702_v51, %v4972_v26  ;;  %v5031_v23 = vunpack.i.l.bf16 %v7685_v7  ;;  %v5032_v1 = vunpack.i.h.bf16 %v7685_v7 }
 0x1b6   : > { %v2007_v25 = vsel %vm1990_vm8, %v1974_v32, %v5371_v56  ;;  %v2008_v60 = vsel %vm1990_vm8, %v1975_v27, %v5372_v2  ;;  %v1853_v0 = vsel %vm1825_vm4, %v1820_v34, %v5052_v29  ;;  %v7687_v2 = vld [vmem:[#allocation15_spill] sm:$0xff]  ;;  %v5397_v26 = vunpack.i.h.bf16 %v6705_v30 }
 0x1b7   : > { %4601 = vmatmul.msk.bf16.gmra.mxu0 %vm2092_vm10, %v2061_v53  ;;  %v6775_v44 = vpop.permute.xlu2 %5424  ;;  %v5381_v53 = vunpack.i.l.bf16 %v6692_v54  ;;  %v1844_v49 = vsel %vm1825_vm4, %v1811_v39, %v5031_v23  ;;  %v5097_v56 = vunpack.i.h.bf16 %v7687_v2  ;;  %v5096_v45 = vunpack.i.l.bf16 %v7687_v2 }
 0x1b8   : > { %v5111_v54 = vunpack.i.l.bf16 %v7688_v12  ;;  %v1886_v20 = vsel %vm1858_vm5, %v1853_v0, %v5382_v16  ;;  %v5396_v39 = vunpack.i.l.bf16 %v6705_v30  ;;  %v7689_v32 = vmov 0.0  }
 0x1b9   : > { %v5375_v13 = vpop.permute.xlu1 %5374  ;;  %v1885_v58 = vsel %vm1858_vm5, %v1852_v15, %v5381_v53  ;;  %3142 = vst.msk [vmem:[#allocation3 + $0x18] sm:$0x3] %vm3139_vm11, %v7689_v32  ;;  %v1845_v27 = vsel %vm1825_vm4, %v6750_v48, %v5032_v1  ;;  %v1872_v30 = vsel %vm1858_vm5, %v1839_v52, %v5097_v56  ;;  %v5412_v51 = vunpack.i.h.bf16 %v6725_v36 }
 0x1ba   : > { %v5377_v42 = vunpack.i.h.bf16 %v5375_v13  ;;  %v5376_v59 = vunpack.i.l.bf16 %v5375_v13  ;;  %3140 = vst.msk [vmem:[#allocation3 + $0x8] sm:$0x3] %vm3139_vm11, %v7689_v32  ;;  %v1878_v48 = vsel %vm1858_vm5, %v1845_v27, %v5112_v35  ;;  %v5411_v7 = vunpack.i.l.bf16 %v6725_v36  ;;  %v7691_v36 = vld [vmem:[#allocation20_spill] sm:$0xff] }
 0x1bb   : > { %v5385_v50 = vpop.permute.xlu0 %5384  ;;  %3144 = vst.msk [vmem:[#allocation3 + $0x28] sm:$0x3] %vm3139_vm11, %v7689_v32  ;;  %v5426_v15 = vunpack.i.l.bf16 %v6775_v44  ;;  %v5117_v53 = vunpack.i.h.bf16 %v7691_v36 }
 0x1bc   : > { %v2040_v46 = vsel %vm2023_vm9, %v2007_v25, %v5376_v59  ;;  %v2041_v14 = vsel %vm2023_vm9, %v2008_v60, %v5377_v42  ;;  %v5387_v5 = vunpack.i.h.bf16 %v5385_v50  ;;  %v5386_v24 = vunpack.i.l.bf16 %v5385_v50  ;;  %3146 = vst.msk [vmem:[#allocation3 + $0x38] sm:$0x3] %vm3139_vm11, %v7689_v32 }
 0x1bd   : > { %v2154_v40 = vpop.f32.mrf.mxu0  ;;  %v2064_v18 = vpack.c.bf16 %v2041_v14, %v2040_v46  ;;  %v1871_v42 = vsel %vm1858_vm5, %v1838_v21, %v5096_v45  ;;  %v5057_v25 = vunpack.i.h.bf16 %v7690_v9  ;;  %v5056_v60 = vunpack.i.l.bf16 %v7690_v9  ;;  %3148 = vst.msk [vmem:[#allocation3 + $0x48] sm:$0x3] %vm3139_vm11, %v7689_v32 }
 0x1be   : > { %v2238_v55 = vmul.f32 %v6765_v4, %v2154_v40  ;;  %v1919_v57 = vsel %vm1891_vm2, %v1886_v20, %v5387_v5  ;;  %v1918_v29 = vsel %vm1891_vm2, %v1885_v58, %v5386_v24  ;;  %v1877_v50 = vsel %vm1858_vm5, %v1844_v49, %v5111_v54  ;;  %3150 = vst.msk [vmem:[#allocation3 + $0x58] sm:$0x3] %vm3139_vm11, %v7689_v32 }
 0x1bf   : > { %4604 = vmatmul.msk.bf16.gmra.mxu1 %vm2092_vm10, %v2064_v18  ;;  %v6825_v11 = vpop.permute.xlu2 %5439  ;;  %3152 = vst.msk [vmem:[#allocation3 + $0x68] sm:$0x3] %vm3139_vm11, %v7689_v32  ;;  %v1904_v56 = vsel %vm1891_vm2, %v1871_v42, %v5411_v7  ;;  %v1905_v45 = vsel %vm1891_vm2, %v1872_v30, %v5412_v51  ;;  %v6866_v54 = vsel %vm1891_vm2, %v1877_v50, %v5426_v15 }
 0x1c0   : > { %v2274_v22 = vadd.f32 %v6780_v6, %v2238_v55  ;;  %v5427_v55 = vunpack.i.h.bf16 %v6775_v44  ;;  %3154 = vst.msk [vmem:[#allocation3 + $0x78] sm:$0x3] %vm3139_vm11, %v7689_v32  ;;  %v5442_v20 = vunpack.i.h.bf16 %v6825_v11  ;;  %v5441_v27 = vunpack.i.l.bf16 %v6825_v11 }
 0x1c1   : > { %v5390_v43 = vpop.permute.xlu1 %5389  ;;  %3156 = vst.msk [vmem:[#allocation3 + $0x88] sm:$0x3] %vm3139_vm11, %v7689_v32 }
 0x1c2   : > { %v5392_v10 = vunpack.i.h.bf16 %v5390_v43  ;;  %v5391_v8 = vunpack.i.l.bf16 %v5390_v43  ;;  %v6810_v13 = vmax.f32 %v2274_v22, 0.0  ;;  %3158 = vst.msk [vmem:[#allocation3 + $0x98] sm:$0x3] %vm3139_vm11, %v7689_v32  ;;  %vm3299_vm11 = vcmask 1047559  }
 0x1c3   : > { %v5400_v41 = vpop.permute.xlu0 %5399 }
 0x1c4   : > { %v1951_v59 = vsel %vm1924_vm6, %v1918_v29, %v5391_v8  ;;  %v1952_v37 = vsel %vm1924_vm6, %v1919_v57, %v5392_v10  ;;  %v5402_v28 = vunpack.i.h.bf16 %v5400_v41  ;;  %v5401_v46 = vunpack.i.l.bf16 %v5400_v41 }
 0x1c5   : > { %v2156_v63 = vpop.f32.mrf.mxu0  ;;  %v2370_v34 = vrot.slane %v6810_v13, 2  ;;  %v1984_v31 = vsel %vm1957_vm7, %v1951_v59, %v5396_v39  ;;  %v1985_v62 = vsel %vm1957_vm7, %v1952_v37, %v5397_v26  ;;  %v2371_v23 = vrot.slane %v6810_v13, 4 }
 0x1c6   : > { %v2239_v14 = vmul.f32 %v6765_v4, %v2156_v63  ;;  %v2372_v40 = vrot.slane %v6810_v13, 6  ;;  %v2017_v52 = vsel %vm1990_vm8, %v1984_v31, %v5401_v46  ;;  %v2018_v5 = vsel %vm1990_vm8, %v1985_v62, %v5402_v28 }
 0x1c7   : > { %v4612_v1 = vrot.slane %v6810_v13, 9  ;;  %v4613_v44 = vrot.slane %v2370_v34, 9  ;;  %v4614_v43 = vrot.slane %v2371_v23, 9  ;;  %v6869_v10 = vsel %vm1891_vm2, %v1878_v48, %v5427_v55  ;;  %v6876_v42 = vpop.permute.xlu2 %5454 }
 0x1c8   : > { %v2275_v18 = vadd.f32 %v6780_v6, %v2239_v14  ;;  %v4615_v12 = vrot.slane %v2372_v40, 9  ;;  %v5457_v50 = vunpack.i.h.bf16 %v6876_v42 }
 0x1c9   : > { %v5405_v0 = vpop.permute.xlu1 %5404  ;;  %v2946_v57 = vmax.f32 %v6810_v13, %v4612_v1  ;;  %v2947_v29 = vmax.f32 %v2370_v34, %v4613_v44  ;;  %v2948_v37 = vmax.f32 %v2371_v23, %v4614_v43 }
 0x1ca   : > { %v5407_v21 = vunpack.i.h.bf16 %v5405_v0  ;;  %v5406_v16 = vunpack.i.l.bf16 %v5405_v0  ;;  %v6852_v24 = vmax.f32 %v2275_v18, 0.0  ;;  %v6880_v63 = vmax.f32 %v2372_v40, %v4615_v12 }
 0x1cb   : > { %v5415_v22 = vpop.permute.xlu0 %5414 }
 0x1cc   : > { %v2050_v49 = vsel %vm2023_vm9, %v2017_v52, %v5406_v16  ;;  %v2051_v2 = vsel %vm2023_vm9, %v2018_v5, %v5407_v21  ;;  %v2373_v26 = vrot.slane %v6852_v24, 2  ;;  %v5417_v41 = vunpack.i.h.bf16 %v5415_v22 }
 0x1cd   : > { %v2159_v35 = vpop.f32.mrf.mxu0  ;;  %v2069_v58 = vpack.c.bf16 %v2051_v2, %v2050_v49  ;;  %v5416_v39 = vunpack.i.l.bf16 %v5415_v22  ;;  %v2374_v30 = vrot.slane %v6852_v24, 4  ;;  %v2375_v28 = vrot.slane %v6852_v24, 6 }
 0x1ce   : > { %v2240_v8 = vmul.f32 %v6765_v4, %v2159_v35  ;;  %v4616_v11 = vrot.slane %v6852_v24, 9  ;;  %v4617_v51 = vrot.slane %v2373_v26, 9  ;;  %v1938_v31 = vsel %vm1924_vm6, %v1905_v45, %v5417_v41 }
 0x1cf   : > { %4609 = vmatmul.msk.bf16.gmra.mxu3 %vm2092_vm10, %v2069_v58  ;;  %v1937_v34 = vsel %vm1924_vm6, %v1904_v56, %v5416_v39  ;;  %v4618_v44 = vrot.slane %v2374_v30, 9 }
 0x1d0   : > { %v2276_v59 = vadd.f32 %v6780_v6, %v2240_v8  ;;  %v4619_v8 = vrot.slane %v2375_v28, 9  ;;  %v2950_v58 = vmax.f32 %v6852_v24, %v4616_v11 }
 0x1d1   : > { %v5420_v48 = vpop.permute.xlu1 %5419 }
 0x1d2   : > { %v2308_v13 = vmax.f32 %v2276_v59, 0.0  ;;  %v5422_v46 = vunpack.i.h.bf16 %v5420_v48  ;;  %v5421_v14 = vunpack.i.l.bf16 %v5420_v48  ;;  %v2951_v48 = vmax.f32 %v2373_v26, %v4617_v51 }
 0x1d3   : > { %v5430_v62 = vpop.permute.xlu0 %5429  ;;  %v2953_v51 = vmax.f32 %v2375_v28, %v4619_v8 }
 0x1d4   : > { %v2376_v7 = vrot.slane %v2308_v13, 2  ;;  %v2377_v23 = vrot.slane %v2308_v13, 4  ;;  %v2378_v40 = vrot.slane %v2308_v13, 6  ;;  %v4620_v18 = vrot.slane %v2308_v13, 9 }
 0x1d5   : > { %v1970_v0 = vsel %vm1957_vm7, %v1937_v34, %v5421_v14  ;;  %v1971_v55 = vsel %vm1957_vm7, %v1938_v31, %v5422_v46  ;;  %v5432_v15 = vunpack.i.h.bf16 %v5430_v62  ;;  %v5431_v21 = vunpack.i.l.bf16 %v5430_v62  ;;  %v2161_v16 = vpop.f32.mrf.mxu0 }
 0x1d6   : > { %v4621_v52 = vrot.slane %v2376_v7, 9  ;;  %v4622_v5 = vrot.slane %v2377_v23, 9  ;;  %v4623_v22 = vrot.slane %v2378_v40, 9  ;;  %v2954_v1 = vmax.f32 %v2308_v13, %v4620_v18 }
 0x1d7   : > { %v2003_v49 = vsel %vm1990_vm8, %v1970_v0, %v5431_v21  ;;  %v2004_v2 = vsel %vm1990_vm8, %v1971_v55, %v5432_v15  ;;  %v2241_v56 = vmul.f32 %v6765_v4, %v2161_v16 }
 0x1d8   : > { %v2955_v45 = vmax.f32 %v2376_v7, %v4621_v52  ;;  %v2956_v43 = vmax.f32 %v2377_v23, %v4622_v5  ;;  %v2957_v12 = vmax.f32 %v2378_v40, %v4623_v22  ;;  %v3074_v35 = vmax.f32 %v2946_v57, %v2954_v1 }
 0x1d9   : > { %v2277_v41 = vadd.f32 %v6780_v6, %v2241_v56  ;;  %v5435_v39 = vpop.permute.xlu1 %5434  ;;  %v2036_v59 = vsel %vm2023_vm9, %v2003_v49, %v5441_v27  ;;  %v2037_v57 = vsel %vm2023_vm9, %v2004_v2, %v5442_v20 }
 0x1da   : > { %v3075_v13 = vmax.f32 %v2947_v29, %v2955_v45  ;;  %v3076_v46 = vmax.f32 %v2948_v37, %v2956_v43  ;;  %v3077_v14 = vmax.f32 %v6880_v63, %v2957_v12  ;;  %v3223_v34 = vperm.slane %v3074_v35, 0 }
 0x1db   : > { %v2309_v31 = vmax.f32 %v2277_v41, 0.0  ;;  %v5436_v62 = vunpack.i.l.bf16 %v5435_v39  ;;  %v5445_v7 = vpop.permute.xlu0 %5444  ;;  %v5437_v11 = vunpack.i.h.bf16 %v5435_v39  ;;  %v2062_v40 = vpack.c.bf16 %v2037_v57, %v2036_v59 }
 0x1dc   : > { %v3224_v23 = vperm.slane %v3075_v13, 0  ;;  %v3225_v24 = vperm.slane %v3076_v46, 0  ;;  %v2952_v37 = vmax.f32 %v2374_v30, %v4618_v44  ;;  %v3226_v63 = vperm.slane %v3077_v14, 0  ;;  %v6911_v46 = vpop.permute.xlu2 %5469 }
 0x1dd   : > { %v2379_v18 = vrot.slane %v2309_v31, 2  ;;  %v2380_v0 = vrot.slane %v2309_v31, 4  ;;  %v2381_v27 = vrot.slane %v2309_v31, 6  ;;  %v4624_v26 = vrot.slane %v2309_v31, 9  ;;  %v2164_v29 = vpop.f32.mrf.mxu0  ;;  %4602 = vmatmul.msk.bf16.gmra.mxu0 %vm2092_vm10, %v2062_v40 }
 0x1de   : > { %v3288_v55 = vsel %vm3287_vm12, %v3224_v23, %v3223_v34  ;;  %v1943_v16 = vsel %vm1924_vm6, %v6866_v54, %v5436_v62  ;;  %v1944_v22 = vsel %vm1924_vm6, %v6869_v10, %v5437_v11  ;;  %v5447_v1 = vunpack.i.h.bf16 %v5445_v7 }
 0x1df   : > { %v4625_v15 = vrot.slane %v2379_v18, 9  ;;  %v4626_v21 = vrot.slane %v2380_v0, 9  ;;  %v4627_v20 = vrot.slane %v2381_v27, 9  ;;  %v3290_v52 = vsel %vm3289_vm13, %v3225_v24, %v3288_v55 }
 0x1e0   : > { %v2958_v5 = vmax.f32 %v2309_v31, %v4624_v26  ;;  %v2242_v49 = vmul.f32 %v6765_v4, %v2164_v29  ;;  %v5446_v45 = vunpack.i.l.bf16 %v5445_v7  ;;  %v5456_v10 = vunpack.i.l.bf16 %v6876_v42 }
 0x1e1   : > { %v2959_v30 = vmax.f32 %v2379_v18, %v4625_v15  ;;  %v2960_v28 = vmax.f32 %v2380_v0, %v4626_v21  ;;  %v2961_v44 = vmax.f32 %v2381_v27, %v4627_v20  ;;  %v5450_v2 = vpop.permute.xlu1 %5449  ;;  %v3292_v13 = vsel %vm3291_vm14, %v3226_v63, %v3290_v52 }
 0x1e2   : > { %v3078_v56 = vmax.f32 %v2950_v58, %v2958_v5  ;;  %v5452_v43 = vunpack.i.h.bf16 %v5450_v2  ;;  %v5451_v12 = vunpack.i.l.bf16 %v5450_v2  ;;  %v2278_v41 = vadd.f32 %v6780_v6, %v2242_v49 }
 0x1e3   : > { %v3079_v35 = vmax.f32 %v2951_v48, %v2959_v30  ;;  %v3080_v8 = vmax.f32 %v2952_v37, %v2960_v28  ;;  %v3081_v54 = vmax.f32 %v2953_v51, %v2961_v44  ;;  %v6907_v39 = vpop.permute.xlu0 %5459  ;;  %v1976_v62 = vsel %vm1957_vm7, %v1943_v16, %v5446_v45 }
 0x1e4   : > { %v3227_v59 = vperm.slane %v3078_v56, 0  ;;  %v2310_v34 = vmax.f32 %v2278_v41, 0.0  ;;  %v1977_v57 = vsel %vm1957_vm7, %v1944_v22, %v5447_v1  ;;  %v2009_v24 = vsel %vm1990_vm8, %v1976_v62, %v5451_v12  ;;  %v5485_v1 = vpop.permute.xlu2 %5484  ;;  %v3383_v12 = vld [vmem:[#allocation3 + $0x2] sm:$0xff] }
 0x1e5   : > { %v3228_v58 = vperm.slane %v3079_v35, 0  ;;  %v3229_v14 = vperm.slane %v3080_v8, 0  ;;  %v2166_v31 = vpop.f32.mrf.mxu0  ;;  %v3230_v7 = vperm.slane %v3081_v54, 0  ;;  %v2010_v11 = vsel %vm1990_vm8, %v1977_v57, %v5452_v43  ;;  %v3375_v57 = vld [vmem:[#allocation3 + $0x1] sm:$0xff] }
 0x1e6   : > { %v3294_v48 = vsel %vm3293_vm15, %v3227_v59, %v3292_v13  ;;  %v1847_v40 = vsel %vm1825_vm4, %v6755_v61, %v5037_v19  ;;  %v1846_v18 = vsel %vm1825_vm4, %v6772_v33, %v5036_v3  ;;  %v5116_v0 = vunpack.i.l.bf16 %v7691_v36 }
 0x1e7   : > { %v3296_v23 = vsel %vm3295_vm1, %v3228_v58, %v3294_v48  ;;  %v1855_v26 = vsel %vm1825_vm4, %v6736_v17, %v5057_v25  ;;  %v2382_v37 = vrot.slane %v2310_v34, 2  ;;  %v2383_v51 = vrot.slane %v2310_v34, 4 }
 0x1e8   : > { %v3298_v27 = vsel %vm3297_vm3, %v3229_v14, %v3296_v23  ;;  %v2384_v61 = vrot.slane %v2310_v34, 6  ;;  %v2243_v38 = vmul.f32 %v6765_v4, %v2166_v31  ;;  %v2042_v33 = vsel %vm2023_vm9, %v2009_v24, %v5456_v10 }
 0x1e9   : > { %v3300_v29 = vsel %vm3299_vm11, %v3230_v7, %v3298_v27  ;;  %v5465_v63 = vpop.permute.xlu1 %5464  ;;  %v2043_v19 = vsel %vm2023_vm9, %v2010_v11, %v5457_v50  ;;  %v1854_v17 = vsel %vm1825_vm4, %v6740_v47, %v5056_v60  ;;  %v1880_v3 = vsel %vm1858_vm5, %v1847_v40, %v5117_v53 }
 0x1ea   : > { %3359 = vst.msk [vmem:[#allocation3 + $0x11] sm:$0xff] %vm1891_vm2, %v3300_v29  ;;  %v5461_v25 = vunpack.i.l.bf16 %v6907_v39  ;;  %v2065_v55 = vpack.c.bf16 %v2043_v19, %v2042_v33  ;;  %v1879_v21 = vsel %vm1858_vm5, %v1846_v18, %v5116_v0  ;;  %v2279_v20 = vadd.f32 %v6780_v6, %v2243_v38 }
 0x1eb   : > { %v5475_v15 = vpop.permute.xlu0 %5474  ;;  %v5467_v42 = vunpack.i.h.bf16 %v5465_v63  ;;  %v5466_v16 = vunpack.i.l.bf16 %v5465_v63  ;;  %v5472_v50 = vunpack.i.h.bf16 %v6911_v46  ;;  %v4628_v9 = vrot.slane %v2310_v34, 9 }
 0x1ec   : > { %v4629_v52 = vrot.slane %v2382_v37, 9  ;;  %v5462_v47 = vunpack.i.h.bf16 %v6907_v39  ;;  %4605 = vmatmul.msk.bf16.gmra.mxu1 %vm2092_vm10, %v2065_v55  ;;  %v5471_v36 = vunpack.i.l.bf16 %v6911_v46  ;;  %v4630_v53 = vrot.slane %v2383_v51, 9 }
 0x1ed   : > { %v2169_v60 = vpop.f32.mrf.mxu0  ;;  %v4631_v5 = vrot.slane %v2384_v61, 9  ;;  %v6954_v22 = vmax.f32 %v2279_v20, 0.0  ;;  %v1887_v30 = vsel %vm1858_vm5, %v1854_v17, %v5461_v25  ;;  %v5477_v28 = vunpack.i.h.bf16 %v5475_v15 }
 0x1ee   : > { %v5476_v44 = vunpack.i.l.bf16 %v5475_v15  ;;  %v2244_v49 = vmul.f32 %v6765_v4, %v2169_v60  ;;  %v5487_v2 = vunpack.i.h.bf16 %v5485_v1  ;;  %v5486_v56 = vunpack.i.l.bf16 %v5485_v1 }
 0x1ef   : > { %v1912_v45 = vsel %vm1891_vm2, %v1879_v21, %v5466_v16  ;;  %v1913_v43 = vsel %vm1891_vm2, %v1880_v3, %v5467_v42  ;;  %v2962_v35 = vmax.f32 %v2310_v34, %v4628_v9  ;;  %v2963_v8 = vmax.f32 %v2382_v37, %v4629_v52 }
 0x1f0   : > { %v1888_v54 = vsel %vm1858_vm5, %v1855_v26, %v5462_v47  ;;  %v2280_v41 = vadd.f32 %v6780_v6, %v2244_v49  ;;  %v2964_v59 = vmax.f32 %v2383_v51, %v4630_v53  ;;  %v6966_v13 = vmax.f32 %v2384_v61, %v4631_v5 }
 0x1f1   : > { %v6962_v39 = vpop.permute.xlu1 %5479  ;;  %v6964_v10 = vld [vmem:[#allocation3 + $0x12] sm:$0xff]  ;;  %v2385_v46 = vrot.slane %v6954_v22, 2  ;;  %v6970_v58 = vsel %vm1891_vm2, %v1887_v30, %v5471_v36  ;;  %v1945_v14 = vsel %vm1924_vm6, %v1912_v45, %v5476_v44  ;;  %v1946_v34 = vsel %vm1924_vm6, %v1913_v43, %v5477_v28 }
 0x1f2   : > { %v2312_v31 = vmax.f32 %v2280_v41, 0.0  ;;  %v5548_v62 = vpack.i.bf16 %v6964_v10, %v3383_v12  ;;  %v6977_v7 = vld [vmem:[#allocation3 + $0x11] sm:$0xff]  ;;  %v2386_v23 = vrot.slane %v6954_v22, 4  ;;  %v2387_v24 = vrot.slane %v6954_v22, 6 }
 0x1f3   : > { %v6974_v48 = vpop.permute.xlu0 %5489  ;;  %v4632_v11 = vrot.slane %v6954_v22, 9  ;;  %v6983_v40 = vsel %vm1891_vm2, %v1888_v54, %v5472_v50  ;;  %v4633_v37 = vrot.slane %v2385_v46, 9  ;;  %v5543_v51 = vpack.i.bf16 %v6977_v7, %v3375_v57 }
 0x1f4   : > { %v2388_v18 = vrot.slane %v2312_v31, 2  ;;  %v2389_v0 = vrot.slane %v2312_v31, 4  ;;  %v2390_v27 = vrot.slane %v2312_v31, 6  ;;  %v4636_v26 = vrot.slane %v2312_v31, 9  ;;  %5549 = vrot.lane.b32.xlu0 %v5548_v62, %s5724_s25 }
 0x1f5   : > { %v2171_v29 = vpop.f32.mrf.mxu0  ;;  %v1978_v63 = vsel %vm1957_vm7, %v1945_v14, %v5486_v56  ;;  %v1979_v61 = vsel %vm1957_vm7, %v1946_v34, %v5487_v2  ;;  %v4634_v3 = vrot.slane %v2386_v23, 9  ;;  %v4635_v25 = vrot.slane %v2387_v24, 9  ;;  %5544 = vrot.lane.b32.xlu2 %v5543_v51, %s5722_s23  ;;  %v5500_v14 = vpop.permute.xlu2 %5499 }
 0x1f6   : > { %v4637_v38 = vrot.slane %v2388_v18, 9  ;;  %v4638_v33 = vrot.slane %v2389_v0, 9  ;;  %v4639_v19 = vrot.slane %v2390_v27, 9  ;;  %v2970_v17 = vmax.f32 %v2312_v31, %v4636_v26 }
 0x1f7   : > { %v2966_v55 = vmax.f32 %v6954_v22, %v4632_v11  ;;  %v2245_v15 = vmul.f32 %v6765_v4, %v2171_v29  ;;  %v5482_v16 = vunpack.i.h.bf16 %v6962_v39  ;;  %v5481_v9 = vunpack.i.l.bf16 %v6962_v39 }
 0x1f8   : > { %v2971_v21 = vmax.f32 %v2388_v18, %v4637_v38  ;;  %v2972_v20 = vmax.f32 %v2389_v0, %v4638_v33  ;;  %v3082_v42 = vmax.f32 %v2962_v35, %v2970_v17  ;;  %v2967_v36 = vmax.f32 %v2385_v46, %v4633_v37 }
 0x1f9   : > { %v5495_v50 = vpop.permute.xlu1 %5494  ;;  %v2281_v52 = vadd.f32 %v6780_v6, %v2245_v15  ;;  %v2973_v53 = vmax.f32 %v2390_v27, %v4639_v19  ;;  %v2968_v2 = vmax.f32 %v2386_v23, %v4634_v3  ;;  %v2969_v23 = vmax.f32 %v2387_v24, %v4635_v25 }
 0x1fa   : > { %v5497_v47 = vunpack.i.h.bf16 %v5495_v50  ;;  %v5496_v60 = vunpack.i.l.bf16 %v5495_v50  ;;  %v3083_v5 = vmax.f32 %v2963_v8, %v2971_v21  ;;  %v3084_v22 = vmax.f32 %v2964_v59, %v2972_v20 }
 0x1fb   : > { %v5505_v1 = vpop.permute.xlu0 %5504  ;;  %v2313_v30 = vmax.f32 %v2281_v52, 0.0  ;;  %v3231_v56 = vperm.slane %v3082_v42, 0  ;;  %v3085_v39 = vmax.f32 %v6966_v13, %v2973_v53  ;;  %v5492_v11 = vunpack.i.h.bf16 %v6974_v48 }
 0x1fc   : > { %v2011_v28 = vsel %vm1990_vm8, %v1978_v63, %v5496_v60  ;;  %v2012_v44 = vsel %vm1990_vm8, %v1979_v61, %v5497_v47  ;;  %v5507_v49 = vunpack.i.h.bf16 %v5505_v1  ;;  %v3232_v45 = vperm.slane %v3083_v5, 0 }
 0x1fd   : > { %v5506_v43 = vunpack.i.l.bf16 %v5505_v1  ;;  %v2391_v12 = vrot.slane %v2313_v30, 2  ;;  %v2392_v35 = vrot.slane %v2313_v30, 4  ;;  %v2393_v54 = vrot.slane %v2313_v30, 6  ;;  %v5515_v47 = vpop.permute.xlu2 %5514 }
 0x1fe   : > { %v4640_v41 = vrot.slane %v2313_v30, 9  ;;  %v3233_v46 = vperm.slane %v3084_v22, 0  ;;  %v2045_v59 = vsel %vm2023_vm9, %v2012_v44, %v5507_v49  ;;  %v3301_v34 = vsel %vm3287_vm12, %v3232_v45, %v3231_v56  ;;  %v7692_v44 = vld [vmem:[#allocation10_spill] sm:$0xff] }
 0x1ff   : > { %v2044_v8 = vsel %vm2023_vm9, %v2011_v28, %v5506_v43  ;;  %v4641_v31 = vrot.slane %v2391_v12, 9  ;;  %v4642_v62 = vrot.slane %v2392_v35, 9  ;;  %v4643_v57 = vrot.slane %v2393_v54, 9  ;;  %v7693_v56 = vld [vmem:[#allocation18_spill] sm:$0xff] }
 0x200   : > { %v2974_v18 = vmax.f32 %v2313_v30, %v4640_v41  ;;  %v2066_v0 = vpack.c.bf16 %v2045_v59, %v2044_v8  ;;  %v5491_v27 = vunpack.i.l.bf16 %v6974_v48  ;;  %v3302_v51 = vsel %vm3289_vm13, %v3233_v46, %v3301_v34  ;;  %v5704_v41 = vld [vmem:[#allocation2 + $0x168] sm:$0xff] }
 0x201   : > { %v2975_v26 = vmax.f32 %v2391_v12, %v4641_v31  ;;  %v2976_v13 = vmax.f32 %v2392_v35, %v4642_v62  ;;  %v2977_v29 = vmax.f32 %v2393_v54, %v4643_v57  ;;  %v5510_v37 = vpop.permute.xlu1 %5509  ;;  %v1953_v63 = vsel %vm1924_vm6, %v6970_v58, %v5481_v9 }
 0x202   : > { %v1954_v61 = vsel %vm1924_vm6, %v6983_v40, %v5482_v16  ;;  %v3086_v38 = vmax.f32 %v2966_v55, %v2974_v18  ;;  %4606 = vmatmul.msk.bf16.vlgmr.msra.gmra.mxu2 %vm2092_vm10, %v2066_v0  ;;  %v3234_v24 = vperm.slane %v3085_v39, 0  ;;  %v5502_v48 = vunpack.i.h.bf16 %v5500_v14 }
 0x203   : > { %v3087_v33 = vmax.f32 %v2967_v36, %v2975_v26  ;;  %v3088_v19 = vmax.f32 %v2968_v2, %v2976_v13  ;;  %v3089_v17 = vmax.f32 %v2969_v23, %v2977_v29  ;;  %v5501_v3 = vunpack.i.l.bf16 %v5500_v14  ;;  %v5520_v5 = vpop.permute.xlu0 %5519  ;;  %v5705_v14 = vld [vmem:[#allocation2 + $0x170] sm:$0xff] }
 0x204   : > { %v3235_v25 = vperm.slane %v3086_v38, 0  ;;  %v3303_v15 = vsel %vm3291_vm14, %v3234_v24, %v3302_v51  ;;  %v1986_v21 = vsel %vm1957_vm7, %v1953_v63, %v5491_v27  ;;  %v1987_v58 = vsel %vm1957_vm7, %v1954_v61, %v5492_v11  ;;  %v3391_v24 = vld [vmem:[#allocation3 + $0x10] sm:$0xff] }
 0x205   : > { %v3236_v20 = vperm.slane %v3087_v33, 0  ;;  %v3237_v42 = vperm.slane %v3088_v19, 0  ;;  %v5512_v55 = vunpack.i.h.bf16 %v5510_v37  ;;  %v5511_v16 = vunpack.i.l.bf16 %v5510_v37  ;;  %v5530_v59 = vpop.permute.xlu2 %5529 }
 0x206   : > { %v3304_v40 = vsel %vm3293_vm15, %v3235_v25, %v3303_v15  ;;  %v3238_v50 = vperm.slane %v3089_v17, 0  ;;  %v2019_v36 = vsel %vm1990_vm8, %v1986_v21, %v5501_v3  ;;  %v2020_v53 = vsel %vm1990_vm8, %v1987_v58, %v5502_v48 }
 0x207   : > { %v3305_v9 = vsel %vm3295_vm1, %v3236_v20, %v3304_v40  ;;  %v2052_v22 = vsel %vm2023_vm9, %v2019_v36, %v5511_v16  ;;  %v2053_v1 = vsel %vm2023_vm9, %v2020_v53, %v5512_v55  ;;  %v4981_v49 = vunpack.i.l.bf16 %v7692_v44  ;;  %v2174_v55 = vpop.f32.mrf.mxu0 }
 0x208   : > { %v3306_v52 = vsel %vm3297_vm3, %v3237_v42, %v3305_v9  ;;  %v2070_v30 = vpack.c.bf16 %v2053_v1, %v2052_v22  ;;  %v4982_v2 = vunpack.i.h.bf16 %v7692_v44  ;;  %v5061_v45 = vunpack.i.l.bf16 %v7693_v56 }
 0x209   : > { %v3307_v60 = vsel %vm3299_vm11, %v3238_v50, %v3306_v52  ;;  %v5525_v28 = vpop.permute.xlu1 %5524  ;;  %v5062_v43 = vunpack.i.h.bf16 %v7693_v56  ;;  %v5516_v12 = vunpack.i.l.bf16 %v5515_v47  ;;  %v5517_v35 = vunpack.i.h.bf16 %v5515_v47  ;;  %v7058_v50 = vpop.f32.mrf.mxu3 }
 0x20a   : > { %3360 = vst.msk [vmem:[#allocation3 + $0x21] sm:$0xff] %vm1891_vm2, %v3307_v60  ;;  %4610 = vmatmul.msk.bf16.gmra.mxu3 %vm2092_vm10, %v2070_v30  ;;  %v5521_v54 = vunpack.i.l.bf16 %v5520_v5  ;;  %v1823_v39 = vsel %vm391_vm0, %v5704_v41, %v4981_v49  ;;  %v5522_v46 = vunpack.i.h.bf16 %v5520_v5  ;;  %v5526_v8 = vunpack.i.l.bf16 %v5525_v28 }
 0x20b   : > { %v1824_v34 = vsel %vm391_vm0, %v5705_v14, %v4982_v2  ;;  %v1856_v31 = vsel %vm1825_vm4, %v1823_v39, %v5061_v45  ;;  %v5527_v62 = vunpack.i.h.bf16 %v5525_v28  ;;  %v5531_v13 = vunpack.i.l.bf16 %v5530_v59  ;;  %v5535_v29 = vpop.permute.xlu0 %5534 }
 0x20c   : > { %v1857_v23 = vsel %vm1825_vm4, %v1824_v34, %v5062_v43  ;;  %v1889_v11 = vsel %vm1858_vm5, %v1856_v31, %v5516_v12  ;;  %v5532_v63 = vunpack.i.h.bf16 %v5530_v59  ;;  %v5536_v48 = vunpack.i.l.bf16 %v5535_v29 }
 0x20d   : > { %v1890_v27 = vsel %vm1858_vm5, %v1857_v23, %v5517_v35  ;;  %v1922_v26 = vsel %vm1891_vm2, %v1889_v11, %v5521_v54  ;;  %v5537_v25 = vunpack.i.h.bf16 %v5535_v29  ;;  %v2246_v16 = vmul.f32 %v6765_v4, %v2174_v55 }
 0x20e   : > { %v1923_v37 = vsel %vm1891_vm2, %v1890_v27, %v5522_v46  ;;  %v1955_v51 = vsel %vm1924_vm6, %v1922_v26, %v5526_v8  ;;  %v2189_v53 = vpop.f32.mrf.mxu1  ;;  %vm3680_vm0 = vcmask 392192   ;;  %vm3689_vm4 = vcmask 523264  }
 0x20f   : > { %v1956_v33 = vsel %vm1924_vm6, %v1923_v37, %v5527_v62  ;;  %v1988_v3 = vsel %vm1957_vm7, %v1955_v51, %v5531_v13  ;;  %v2282_v9 = vadd.f32 %v6780_v6, %v2246_v16  ;;  %v2176_v52 = vpop.f32.mrf.mxu0  ;;  %v2252_v54 = vmul.f32 %v6765_v4, %v2189_v53 }
 0x210   : > { %v2247_v60 = vmul.f32 %v6765_v4, %v2176_v52  ;;  %vm3698_vm5 = vcmask 654336   ;;  %vm3707_vm6 = vcmask 785408  }
 0x211   : > { %v7029_v57 = vld [vmem:[#allocation3 + $0x22] sm:$0xff]  ;;  %v5540_v61 = vpop.permute.xlu1 %5539  ;;  %v2314_v47 = vmax.f32 %v2282_v9, 0.0  ;;  %v7062_v36 = vpop.f32.mrf.mxu3 }
 0x212   : > { %v7033_v18 = vld [vmem:[#allocation3 + $0x21] sm:$0xff]  ;;  %v5563_v38 = vpack.i.bf16 %v7029_v57, %v6964_v10  ;;  %v5541_v15 = vunpack.i.l.bf16 %v5540_v61  ;;  %v1989_v10 = vsel %vm1957_vm7, %v1956_v33, %v5532_v63  ;;  %v5542_v21 = vunpack.i.h.bf16 %v5540_v61 }
 0x213   : > { %v7035_v0 = vld [vmem:[#allocation3 + $0x20] sm:$0xff]  ;;  %v5558_v19 = vpack.i.bf16 %v7033_v18, %v6977_v7  ;;  %v2021_v7 = vsel %vm1990_vm8, %v1988_v3, %v5536_v48  ;;  %v2022_v20 = vsel %vm1990_vm8, %v1989_v10, %v5537_v25  ;;  %v2394_v5 = vrot.slane %v2314_v47, 2 }
 0x214   : > { %v5553_v17 = vpack.i.bf16 %v7035_v0, %v3391_v24  ;;  %5564 = vrot.lane.b32.xlu0 %v5563_v38, %s5726_s19  ;;  %v2054_v42 = vsel %vm2023_vm9, %v2021_v7, %v5541_v15  ;;  %v2055_v58 = vsel %vm2023_vm9, %v2022_v20, %v5542_v21  ;;  %v2395_v22 = vrot.slane %v2314_v47, 4  ;;  %v4862_v7 = vld [vmem:[%s7630_s4 + $0x40] sm:$0xff] }
 0x215   : > { %5559 = vrot.lane.b32.xlu2 %v5558_v19, %s5727_s20  ;;  %v2071_v40 = vpack.c.bf16 %v2055_v58, %v2054_v42  ;;  %v2283_v1 = vadd.f32 %v6780_v6, %v2247_v60  ;;  %v2396_v44 = vrot.slane %v2314_v47, 6  ;;  %v4644_v2 = vrot.slane %v2314_v47, 9  ;;  %3853 = vmatpush.bf16.msrb.mxu2 %v4862_v7 }
 0x216   : > { %5554 = vrot.lane.b32.xlu1 %v5553_v17, %s5728_s21  ;;  %v4645_v56 = vrot.slane %v2394_v5, 9  ;;  %v4646_v45 = vrot.slane %v2395_v22, 9  ;;  %v2191_v11 = vpop.f32.mrf.mxu1  ;;  %v2288_v63 = vadd.f32 %v6780_v6, %v2252_v54  ;;  %vm3716_vm7 = vcmask 916480  }
 0x217   : > { %v2315_v43 = vmax.f32 %v2283_v1, 0.0  ;;  %v4647_v35 = vrot.slane %v2396_v44, 9  ;;  %v2978_v14 = vmax.f32 %v2314_v47, %v4644_v2  ;;  %v2253_v48 = vmul.f32 %v6765_v4, %v2191_v11 }
 0x218   : > { %v2979_v34 = vmax.f32 %v2394_v5, %v4645_v56  ;;  %v2980_v31 = vmax.f32 %v2395_v22, %v4646_v45  ;;  %v7075_v58 = vmax.f32 %v2288_v63, 0.0  ;;  %vm4107_vm8 = vcmask 128000  }
 0x219   : > { %v2397_v62 = vrot.slane %v2315_v43, 2  ;;  %v2398_v37 = vrot.slane %v2315_v43, 4  ;;  %v2399_v51 = vrot.slane %v2315_v43, 6  ;;  %v4648_v38 = vrot.slane %v2315_v43, 9  ;;  %4109 = vst.msk [vmem:[#allocation4 + $0x8] sm:$0x3f] %vm4107_vm8, %v7689_v32 }
 0x21a   : > { %4611 = vmatmul.msk.bf16.gmra.mxu3 %vm2092_vm10, %v2071_v40  ;;  %v2981_v17 = vmax.f32 %v2396_v44, %v4647_v35  ;;  %v2289_v1 = vadd.f32 %v6780_v6, %v2253_v48  ;;  %4108 = vst.msk [vmem:[#allocation4] sm:$0x3f] %vm4107_vm8, %v7689_v32  ;;  %vm4163_vm10 = vcmask 125952  }
 0x21b   : > { %v4649_v25 = vrot.slane %v2397_v62, 9  ;;  %v4650_v20 = vrot.slane %v2398_v37, 9  ;;  %v4651_v42 = vrot.slane %v2399_v51, 9  ;;  %v2982_v55 = vmax.f32 %v2315_v43, %v4648_v38  ;;  %4110 = vst.msk [vmem:[#allocation4 + $0x10] sm:$0x3f] %vm4107_vm8, %v7689_v32 }
 0x21c   : > { %4111 = vst.msk [vmem:[#allocation4 + $0x18] sm:$0x3f] %vm4107_vm8, %v7689_v32 }
 0x21d   : > { %v2983_v22 = vmax.f32 %v2397_v62, %v4649_v25  ;;  %v2984_v43 = vmax.f32 %v2398_v37, %v4650_v20  ;;  %v4668_v25 = vrot.slane %v7075_v58, 9  ;;  %4112 = vst.msk [vmem:[#allocation4 + $0x20] sm:$0x3f] %vm4107_vm8, %v7689_v32 }
 0x21e   : > { %4113 = vst.msk [vmem:[#allocation4 + $0x28] sm:$0x3f] %vm4107_vm8, %v7689_v32 }
 0x224   : > { %v2214_v41 = vpop.f32.mrf.mxu3 }
 0x225   : > { %v2262_v16 = vmul.f32 %v6765_v4, %v2214_v41 }
 0x227   : > { %v2298_v35 = vadd.f32 %v6780_v6, %v2262_v16 }
 0x234   : > { %v2179_v30 = vpop.f32.mrf.mxu0 }
 0x235   : > { %v2248_v28 = vmul.f32 %v6765_v4, %v2179_v30  ;;  %v2216_v30 = vpop.f32.mrf.mxu3 }
 0x236   : > { %v2263_v41 = vmul.f32 %v6765_v4, %v2216_v30 }
 0x237   : > { %v2284_v49 = vadd.f32 %v6780_v6, %v2248_v28 }
 0x239   : > { %v2316_v12 = vmax.f32 %v2284_v49, 0.0 }
 0x23b   : > { %v2400_v39 = vrot.slane %v2316_v12, 2  ;;  %v2401_v46 = vrot.slane %v2316_v12, 4  ;;  %v2402_v8 = vrot.slane %v2316_v12, 6  ;;  %v4652_v59 = vrot.slane %v2316_v12, 9 }
 0x23c   : > { %v2181_v23 = vpop.f32.mrf.mxu0 }
 0x23d   : > { %v4653_v27 = vrot.slane %v2400_v39, 9  ;;  %v4654_v26 = vrot.slane %v2401_v46, 9  ;;  %v4655_v13 = vrot.slane %v2402_v8, 9  ;;  %v2986_v29 = vmax.f32 %v2316_v12, %v4652_v59 }
 0x23e   : > { %v2249_v61 = vmul.f32 %v6765_v4, %v2181_v23  ;;  %v2985_v12 = vmax.f32 %v2399_v51, %v4651_v42  ;;  %v2321_v59 = vmax.f32 %v2289_v1, 0.0  ;;  %v7090_v4 = vld [vmem:[%s7629_s3] ss:$0 sm:$0xff]  ;;  %v7117_v1 = vmax.f32 %v7075_v58, %v4668_v25 }
 0x23f   : > { %v2987_v24 = vmax.f32 %v2400_v39, %v4653_v27  ;;  %v2988_v33 = vmax.f32 %v2401_v46, %v4654_v26  ;;  %v3090_v19 = vmax.f32 %v2978_v14, %v2986_v29  ;;  %v2989_v15 = vmax.f32 %v2402_v8, %v4655_v13 }
 0x240   : > { %v2285_v3 = vadd.f32 %v6780_v6, %v2249_v61  ;;  %v2412_v27 = vrot.slane %v7075_v58, 2  ;;  %v2413_v26 = vrot.slane %v7075_v58, 4  ;;  %v7085_v13 = vmax.f32 %v2298_v35, 0.0 }
 0x241   : > { %v3091_v10 = vmax.f32 %v2979_v34, %v2987_v24  ;;  %v3092_v21 = vmax.f32 %v2980_v31, %v2988_v33  ;;  %v3239_v9 = vperm.slane %v3090_v19, 0  ;;  %v3093_v28 = vmax.f32 %v2981_v17, %v2989_v15 }
 0x242   : > { %v2317_v40 = vmax.f32 %v2285_v3, 0.0  ;;  %v2299_v29 = vadd.f32 %v7090_v4, %v2263_v41  ;;  %v2414_v61 = vrot.slane %v7075_v58, 6  ;;  %v2415_v38 = vrot.slane %v2321_v59, 2  ;;  %v2194_v3 = vpop.f32.mrf.mxu1 }
 0x243   : > { %v3240_v52 = vperm.slane %v3091_v10, 0  ;;  %v3241_v44 = vperm.slane %v3092_v21, 0  ;;  %v3242_v31 = vperm.slane %v3093_v28, 0  ;;  %v2416_v33 = vrot.slane %v2321_v59, 4 }
 0x244   : > { %v2403_v47 = vrot.slane %v2317_v40, 2  ;;  %v2404_v60 = vrot.slane %v2317_v40, 4  ;;  %v2405_v53 = vrot.slane %v2317_v40, 6  ;;  %v4656_v5 = vrot.slane %v2317_v40, 9 }
 0x245   : > { %v3308_v49 = vsel %vm3287_vm12, %v3240_v52, %v3239_v9  ;;  %v2417_v19 = vrot.slane %v2321_v59, 6  ;;  %v4669_v15 = vrot.slane %v2412_v27, 9  ;;  %v4670_v10 = vrot.slane %v2413_v26, 9  ;;  %v7108_v52 = vld [vmem:[%s7628_s2] ss:$0 sm:$0xff] }
 0x246   : > { %v4657_v2 = vrot.slane %v2403_v47, 9  ;;  %v4658_v56 = vrot.slane %v2404_v60, 9  ;;  %v4659_v45 = vrot.slane %v2405_v53, 9  ;;  %v2990_v54 = vmax.f32 %v2317_v40, %v4656_v5 }
 0x247   : > { %v3309_v14 = vsel %vm3289_vm13, %v3241_v44, %v3308_v49  ;;  %v2442_v7 = vrot.slane %v7085_v13, 2  ;;  %v2443_v20 = vrot.slane %v7085_v13, 4  ;;  %v7101_v42 = vmax.f32 %v2299_v29, 0.0 }
 0x248   : > { %v2991_v39 = vmax.f32 %v2403_v47, %v4657_v2  ;;  %v2992_v46 = vmax.f32 %v2404_v60, %v4658_v56  ;;  %v2993_v8 = vmax.f32 %v2405_v53, %v4659_v45  ;;  %v3094_v34 = vmax.f32 %v2982_v55, %v2990_v54 }
 0x249   : > { %v3310_v37 = vsel %vm3291_vm14, %v3242_v31, %v3309_v14  ;;  %v4671_v55 = vrot.slane %v2414_v61, 9  ;;  %v4672_v16 = vrot.slane %v2321_v59, 9  ;;  %v4673_v9 = vrot.slane %v2415_v38, 9 }
 0x24a   : > { %v3095_v62 = vmax.f32 %v2983_v22, %v2991_v39  ;;  %v3096_v23 = vmax.f32 %v2984_v43, %v2992_v46  ;;  %v3097_v11 = vmax.f32 %v2985_v12, %v2993_v8  ;;  %v3243_v6 = vperm.slane %v3094_v34, 0 }
 0x24b   : > { %v2254_v47 = vmul.f32 %v7108_v52, %v2194_v3  ;;  %v7113_v60 = vmul.f32 %v7108_v52, %v7058_v50  ;;  %v4674_v53 = vrot.slane %v2416_v33, 9  ;;  %v4675_v5 = vrot.slane %v2417_v19, 9 }
 0x24c   : > { %v3244_v51 = vperm.slane %v3095_v62, 0  ;;  %v3245_v63 = vperm.slane %v3096_v23, 0  ;;  %v3311_v24 = vsel %vm3293_vm15, %v3243_v6, %v3310_v37  ;;  %v3246_v17 = vperm.slane %v3097_v11, 0 }
 0x24d   : > { %v2444_v22 = vrot.slane %v7085_v13, 6  ;;  %v7119_v30 = vmax.f32 %v2412_v27, %v4669_v15  ;;  %v7121_v28 = vmax.f32 %v2413_v26, %v4670_v10  ;;  %v4708_v44 = vrot.slane %v7085_v13, 9 }
 0x24e   : > { %v3312_v48 = vsel %vm3295_vm1, %v3244_v51, %v3311_v24  ;;  %v4709_v2 = vrot.slane %v2442_v7, 9  ;;  %v4710_v56 = vrot.slane %v2443_v20, 9  ;;  %v2445_v45 = vrot.slane %v7101_v42, 2 }
 0x24f   : > { %v3313_v21 = vsel %vm3297_vm3, %v3245_v63, %v3312_v48  ;;  %v7126_v43 = vmax.f32 %v2414_v61, %v4671_v55  ;;  %v7128_v12 = vmax.f32 %v2321_v59, %v4672_v16  ;;  %v7130_v35 = vmax.f32 %v2415_v38, %v4673_v9 }
 0x250   : > { %v3314_v40 = vsel %vm3299_vm11, %v3246_v17, %v3313_v21  ;;  %v2290_v58 = vadd.f32 %v7090_v4, %v2254_v47  ;;  %v7133_v54 = vmax.f32 %v2416_v33, %v4674_v53  ;;  %v7135_v41 = vmax.f32 %v2417_v19, %v4675_v5 }
 0x251   : > { %3361 = vst.msk [vmem:[#allocation3 + $0x31] sm:$0xff] %vm1891_vm2, %v3314_v40  ;;  %v4711_v39 = vrot.slane %v2444_v22, 9  ;;  %v3042_v8 = vmax.f32 %v7085_v13, %v4708_v44  ;;  %v2446_v14 = vrot.slane %v7101_v42, 4  ;;  %v2447_v34 = vrot.slane %v7101_v42, 6 }
 0x252   : > { %v2219_v49 = vpop.f32.mrf.mxu3  ;;  %v4712_v59 = vrot.slane %v7101_v42, 9  ;;  %v3043_v31 = vmax.f32 %v2442_v7, %v4709_v2  ;;  %v3044_v62 = vmax.f32 %v2443_v20, %v4710_v56  ;;  %v4713_v23 = vrot.slane %v2445_v45, 9 }
 0x253   : > { %v2264_v50 = vmul.f32 %v7108_v52, %v2219_v49  ;;  %v7148_v29 = vmax.f32 %v2290_v58, 0.0  ;;  %v7156_v33 = vmax.f32 %v2444_v22, %v4711_v39  ;;  %v4714_v19 = vrot.slane %v2446_v14, 9 }
 0x254   : > { %v4715_v17 = vrot.slane %v2447_v34, 9  ;;  %v7159_v48 = vmax.f32 %v7101_v42, %v4712_v59 }
 0x255   : > { %v2300_v46 = vadd.f32 %v7090_v4, %v2264_v50  ;;  %v2418_v21 = vrot.slane %v7148_v29, 2  ;;  %v2419_v40 = vrot.slane %v7148_v29, 4  ;;  %v3048_v47 = vmax.f32 %v2446_v14, %v4714_v19 }
 0x256   : > { %v7171_v53 = vmax.f32 %v2447_v34, %v4715_v17  ;;  %v2420_v44 = vrot.slane %v7148_v29, 6  ;;  %v4676_v49 = vrot.slane %v7148_v29, 9 }
 0x257   : > { %v2332_v11 = vmax.f32 %v2300_v46, 0.0  ;;  %v4678_v46 = vrot.slane %v2419_v40, 9 }
 0x258   : > { %v7142_v27 = vld [vmem:[#allocation3 + $0x32] sm:$0xff]  ;;  %v7187_v17 = vmax.f32 %v7148_v29, %v4676_v49 }
 0x259   : > { %v7144_v26 = vld [vmem:[#allocation3 + $0x31] sm:$0xff]  ;;  %v3726_v13 = vpack.c.bf16 %v7142_v27, %v7029_v57  ;;  %v2448_v63 = vrot.slane %v2332_v11, 2  ;;  %v2449_v61 = vrot.slane %v2332_v11, 4  ;;  %v2450_v38 = vrot.slane %v2332_v11, 6 }
 0x25a   : > { %v7146_v6 = vld [vmem:[#allocation3 + $0x30] sm:$0xff]  ;;  %v5573_v37 = vpack.i.bf16 %v7144_v26, %v7033_v18  ;;  %v4716_v24 = vrot.slane %v2332_v11, 9  ;;  %v2184_v3 = vpop.f32.mrf.mxu0  ;;  %v2221_v25 = vpop.f32.mrf.mxu3  ;;  %v7163_v18 = vmax.f32 %v2445_v45, %v4713_v23  ;;  %v4677_v45 = vrot.slane %v2418_v21, 9 }
 0x25b   : > { %v5568_v51 = vpack.i.bf16 %v7146_v6, %v7035_v0  ;;  %4776 = vmatmul.msk.bf16.vlgmr.msrb.gmra.mxu2 %vm1891_vm2, %v3726_v13  ;;  %v4717_v0 = vrot.slane %v2448_v63, 9  ;;  %v4718_v15 = vrot.slane %v2449_v61, 9  ;;  %v4719_v7 = vrot.slane %v2450_v38, 9 }
 0x25c   : > { %5574 = vrot.lane.b32.xlu2 %v5573_v37, %s5729_s30  ;;  %v3050_v10 = vmax.f32 %v2332_v11, %v4716_v24  ;;  %5579 = vrot.lane.b32.xlu0 %v5573_v37, %s5722_s23  ;;  %v2250_v20 = vmul.f32 %v7108_v52, %v2184_v3  ;;  %v2265_v42 = vmul.f32 %v7108_v52, %v2221_v25 }
 0x25d   : > { %5569 = vrot.lane.b32.xlu1 %v5568_v51, %s5730_s11  ;;  %v3051_v55 = vmax.f32 %v2448_v63, %v4717_v0  ;;  %v3052_v16 = vmax.f32 %v2449_v61, %v4718_v15  ;;  %v3053_v50 = vmax.f32 %v2450_v38, %v4719_v7  ;;  %v5583_v59 = vpack.i.bf16 %v7142_v27, %v7029_v57 }
 0x25e   : > { %v3122_v9 = vmax.f32 %v3042_v8, %v3050_v10  ;;  %v2286_v5 = vadd.f32 %v7090_v4, %v2250_v20  ;;  %v2301_v22 = vadd.f32 %v7090_v4, %v2265_v42  ;;  %v2196_v8 = vpop.f32.mrf.mxu1 }
 0x25f   : > { %v3123_v2 = vmax.f32 %v3043_v31, %v3051_v55  ;;  %v3124_v56 = vmax.f32 %v3044_v62, %v3052_v16  ;;  %v3125_v61 = vmax.f32 %v7156_v33, %v3053_v50  ;;  %v2255_v57 = vmul.f32 %v7108_v52, %v2196_v8 }
 0x260   : > { %v2318_v58 = vmax.f32 %v2286_v5, 0.0  ;;  %v2333_v39 = vmax.f32 %v2301_v22, 0.0  ;;  %v3271_v14 = vperm.slane %v3122_v9, 0 }
 0x261   : > { %v3272_v34 = vperm.slane %v3123_v2, 0  ;;  %v3273_v62 = vperm.slane %v3124_v56, 0  ;;  %v3274_v16 = vperm.slane %v3125_v61, 0  ;;  %v2291_v2 = vadd.f32 %v7090_v4, %v2255_v57 }
 0x262   : > { %v2406_v23 = vrot.slane %v2318_v58, 2  ;;  %v2407_v11 = vrot.slane %v2318_v58, 4  ;;  %v2408_v13 = vrot.slane %v2318_v58, 6  ;;  %v4660_v31 = vrot.slane %v2318_v58, 9  ;;  %v2186_v49 = vpop.f32.mrf.mxu0 }
 0x263   : > { %v2451_v37 = vrot.slane %v2333_v39, 2  ;;  %v2452_v51 = vrot.slane %v2333_v39, 4  ;;  %v2453_v63 = vrot.slane %v2333_v39, 6  ;;  %v3336_v38 = vsel %vm3287_vm12, %v3272_v34, %v3271_v14 }
 0x264   : > { %v4661_v24 = vrot.slane %v2406_v23, 9  ;;  %v4662_v19 = vrot.slane %v2407_v11, 9  ;;  %v4720_v3 = vrot.slane %v2333_v39, 9  ;;  %v4663_v0 = vrot.slane %v2408_v13, 9 }
 0x265   : > { %5584 = vrot.lane.b32.xlu1 %v5583_v59, %s5724_s25  ;;  %v4721_v25 = vrot.slane %v2451_v37, 9  ;;  %v2994_v15 = vmax.f32 %v2318_v58, %v4660_v31  ;;  %v4722_v7 = vrot.slane %v2452_v51, 9  ;;  %v3337_v20 = vsel %vm3289_vm13, %v3273_v62, %v3336_v38 }
 0x266   : > { %v2995_v10 = vmax.f32 %v2406_v23, %v4661_v24  ;;  %v4723_v42 = vrot.slane %v2453_v63, 9  ;;  %v3054_v55 = vmax.f32 %v2333_v39, %v4720_v3  ;;  %v2996_v9 = vmax.f32 %v2407_v11, %v4662_v19 }
 0x267   : > { %v3055_v33 = vmax.f32 %v2451_v37, %v4721_v25  ;;  %v3056_v22 = vmax.f32 %v2452_v51, %v4722_v7  ;;  %v3338_v14 = vsel %vm3291_vm14, %v3274_v16, %v3337_v20  ;;  %v2997_v34 = vmax.f32 %v2408_v13, %v4663_v0 }
 0x268   : > { %v3099_v5 = vmax.f32 %v2995_v10, %v7119_v30  ;;  %v3057_v56 = vmax.f32 %v2453_v63, %v4723_v42  ;;  %v3126_v50 = vmax.f32 %v7159_v48, %v3054_v55  ;;  %v3098_v39 = vmax.f32 %v2994_v15, %v7117_v1 }
 0x269   : > { %v3127_v58 = vmax.f32 %v7163_v18, %v3055_v33  ;;  %v2199_v8 = vpop.f32.mrf.mxu1  ;;  %v3128_v59 = vmax.f32 %v3048_v47, %v3056_v22  ;;  %v2251_v31 = vmul.f32 %v7108_v52, %v2186_v49  ;;  %v3100_v62 = vmax.f32 %v2996_v9, %v7121_v28 }
 0x26a   : > { %v3129_v23 = vmax.f32 %v7171_v53, %v3057_v56  ;;  %v3275_v11 = vperm.slane %v3126_v50, 0  ;;  %v3248_v37 = vperm.slane %v3099_v5, 0  ;;  %v2256_v48 = vmul.f32 %v7108_v52, %v2199_v8 }
 0x26b   : > { %v3276_v30 = vperm.slane %v3127_v58, 0  ;;  %v3277_v51 = vperm.slane %v3128_v59, 0  ;;  %v3011_v18 = vmax.f32 %v2418_v21, %v4677_v45  ;;  %v7205_v13 = vmax.f32 %v2419_v40, %v4678_v46 }
 0x26c   : > { %v3339_v1 = vsel %vm3293_vm15, %v3275_v11, %v3338_v14  ;;  %v2287_v47 = vadd.f32 %v7090_v4, %v2251_v31  ;;  %v3247_v53 = vperm.slane %v3098_v39, 0  ;;  %v3278_v63 = vperm.slane %v3129_v23, 0 }
 0x26d   : > { %v3340_v61 = vsel %vm3295_vm1, %v3276_v30, %v3339_v1  ;;  %v2292_v28 = vadd.f32 %v7090_v4, %v2256_v48  ;;  %v7211_v38 = vmax.f32 %v2291_v2, 0.0  ;;  %v3101_v24 = vmax.f32 %v2997_v34, %v7126_v43 }
 0x26e   : > { %v3341_v21 = vsel %vm3297_vm3, %v3277_v51, %v3340_v61  ;;  %v2319_v45 = vmax.f32 %v2287_v47, 0.0  ;;  %v3249_v19 = vperm.slane %v3100_v62, 0  ;;  %v3315_v40 = vsel %vm3287_vm12, %v3248_v37, %v3247_v53 }
 0x26f   : > { %v3342_v46 = vsel %vm3299_vm11, %v3278_v63, %v3341_v21  ;;  %v2324_v57 = vmax.f32 %v2292_v28, 0.0  ;;  %v3250_v8 = vperm.slane %v3101_v24, 0  ;;  %v4679_v62 = vrot.slane %v2420_v44, 9 }
 0x270   : > { %3365 = vst.msk [vmem:[#allocation3 + $0x71] sm:$0xff] %vm1891_vm2, %v3342_v46  ;;  %v2409_v3 = vrot.slane %v2319_v45, 2  ;;  %v2410_v25 = vrot.slane %v2319_v45, 4  ;;  %v2411_v0 = vrot.slane %v2319_v45, 6  ;;  %v4664_v15 = vrot.slane %v2319_v45, 9 }
 0x271   : > { %v2424_v10 = vrot.slane %v2324_v57, 2  ;;  %v2425_v7 = vrot.slane %v2324_v57, 4  ;;  %v2426_v20 = vrot.slane %v2324_v57, 6  ;;  %v4684_v42 = vrot.slane %v2324_v57, 9  ;;  %v2201_v31 = vpop.f32.mrf.mxu1 }
 0x272   : > { %v4665_v43 = vrot.slane %v2409_v3, 9  ;;  %v4666_v55 = vrot.slane %v2410_v25, 9  ;;  %v4667_v33 = vrot.slane %v2411_v0, 9  ;;  %v2998_v16 = vmax.f32 %v2319_v45, %v4664_v15 }
 0x273   : > { %v3316_v9 = vsel %vm3289_vm13, %v3249_v19, %v3315_v40  ;;  %v4685_v5 = vrot.slane %v2424_v10, 9  ;;  %v4686_v22 = vrot.slane %v2425_v7, 9  ;;  %v3018_v49 = vmax.f32 %v2324_v57, %v4684_v42 }
 0x274   : > { %v2999_v2 = vmax.f32 %v2409_v3, %v4665_v43  ;;  %v3000_v56 = vmax.f32 %v2410_v25, %v4666_v55  ;;  %v3001_v50 = vmax.f32 %v2411_v0, %v4667_v33  ;;  %v3102_v58 = vmax.f32 %v2998_v16, %v7128_v12 }
 0x275   : > { %v4687_v14 = vrot.slane %v2426_v20, 9  ;;  %v3019_v34 = vmax.f32 %v2424_v10, %v4685_v5  ;;  %v3020_v39 = vmax.f32 %v2425_v7, %v4686_v22  ;;  %v3317_v37 = vsel %vm3291_vm14, %v3250_v8, %v3316_v9 }
 0x276   : > { %v3103_v59 = vmax.f32 %v2999_v2, %v7130_v35  ;;  %v3104_v23 = vmax.f32 %v3000_v56, %v7133_v54  ;;  %v3105_v11 = vmax.f32 %v3001_v50, %v7135_v41  ;;  %v3251_v30 = vperm.slane %v3102_v58, 0 }
 0x277   : > { %v3106_v51 = vmax.f32 %v7187_v17, %v3018_v49  ;;  %v3107_v12 = vmax.f32 %v3011_v18, %v3019_v34  ;;  %v3108_v35 = vmax.f32 %v7205_v13, %v3020_v39  ;;  %v2421_v54 = vrot.slane %v7211_v38, 2 }
 0x278   : > { %v3252_v48 = vperm.slane %v3103_v59, 0  ;;  %v3253_v1 = vperm.slane %v3104_v23, 0  ;;  %v3318_v47 = vsel %vm3293_vm15, %v3251_v30, %v3317_v37  ;;  %v2422_v41 = vrot.slane %v7211_v38, 4 }
 0x279   : > { %v3256_v53 = vperm.slane %v3107_v12, 0  ;;  %v2257_v63 = vmul.f32 %v7108_v52, %v2201_v31  ;;  %v2423_v61 = vrot.slane %v7211_v38, 6  ;;  %v3254_v28 = vperm.slane %v3105_v11, 0 }
 0x27a   : > { %v3319_v24 = vsel %vm3295_vm1, %v3252_v48, %v3318_v47  ;;  %v3021_v17 = vmax.f32 %v2426_v20, %v4687_v14  ;;  %v2296_v18 = vadd.f32 %v7090_v4, %v7113_v60  ;;  %v3255_v45 = vperm.slane %v3106_v51, 0 }
 0x27b   : > { %v3320_v21 = vsel %vm3297_vm3, %v3253_v1, %v3319_v24  ;;  %v2293_v13 = vadd.f32 %v7090_v4, %v2257_v63  ;;  %v3013_v19 = vmax.f32 %v2420_v44, %v4679_v62  ;;  %v4680_v40 = vrot.slane %v7211_v38, 9 }
 0x27c   : > { %v3321_v46 = vsel %vm3299_vm11, %v3254_v28, %v3320_v21  ;;  %v3257_v57 = vperm.slane %v3108_v35, 0  ;;  %v3322_v3 = vsel %vm3287_vm12, %v3256_v53, %v3255_v45  ;;  %v4681_v0 = vrot.slane %v2421_v54, 9 }
 0x27d   : > { %3362 = vst.msk [vmem:[#allocation3 + $0x41] sm:$0xff] %vm1891_vm2, %v3321_v46  ;;  %v2325_v25 = vmax.f32 %v2293_v13, 0.0  ;;  %v4682_v60 = vrot.slane %v2422_v41, 9  ;;  %v4683_v15 = vrot.slane %v2423_v61, 9  ;;  %v3109_v10 = vmax.f32 %v3013_v19, %v3021_v17 }
 0x27e   : > { %v7244_v29 = vmax.f32 %v2296_v18, 0.0  ;;  %v2261_v44 = vmul.f32 %v7108_v52, %v7062_v36  ;;  %v3014_v55 = vmax.f32 %v7211_v38, %v4680_v40  ;;  %v3323_v33 = vsel %vm3289_vm13, %v3257_v57, %v3322_v3 }
 0x27f   : > { %v2427_v7 = vrot.slane %v2325_v25, 2  ;;  %v2428_v20 = vrot.slane %v2325_v25, 4  ;;  %v2429_v42 = vrot.slane %v2325_v25, 6  ;;  %v4688_v43 = vrot.slane %v2325_v25, 9 }
 0x280   : > { %v3015_v49 = vmax.f32 %v2421_v54, %v4681_v0  ;;  %v3016_v2 = vmax.f32 %v2422_v41, %v4682_v60  ;;  %v3017_v56 = vmax.f32 %v2423_v61, %v4683_v15  ;;  %v3258_v50 = vperm.slane %v3109_v10, 0 }
 0x281   : > { %v4689_v16 = vrot.slane %v2427_v7, 9  ;;  %v4690_v9 = vrot.slane %v2428_v20, 9  ;;  %v4691_v5 = vrot.slane %v2429_v42, 9  ;;  %v3022_v22 = vmax.f32 %v2325_v25, %v4688_v43 }
 0x282   : > { %v2436_v39 = vrot.slane %v7244_v29, 2  ;;  %v2297_v36 = vadd.f32 %v7090_v4, %v2261_v44  ;;  %v3324_v38 = vsel %vm3291_vm14, %v3258_v50, %v3323_v33  ;;  %v2437_v35 = vrot.slane %v7244_v29, 4 }
 0x283   : > { %v3023_v58 = vmax.f32 %v2427_v7, %v4689_v16  ;;  %v3024_v8 = vmax.f32 %v2428_v20, %v4690_v9  ;;  %v3025_v14 = vmax.f32 %v2429_v42, %v4691_v5  ;;  %v3110_v34 = vmax.f32 %v3014_v55, %v3022_v22 }
 0x284   : > { %v7253_v59 = vld [vmem:[#allocation3 + $0x42] sm:$0xff]  ;;  %v2438_v63 = vrot.slane %v7244_v29, 6  ;;  %v4700_v18 = vrot.slane %v7244_v29, 9  ;;  %v4701_v21 = vrot.slane %v2436_v39, 9  ;;  %v4702_v45 = vrot.slane %v2437_v35, 9 }
 0x285   : > { %v7255_v23 = vld [vmem:[#allocation3 + $0x41] sm:$0xff]  ;;  %v2204_v30 = vpop.f32.mrf.mxu2  ;;  %v3111_v31 = vmax.f32 %v3015_v49, %v3023_v58  ;;  %v3112_v62 = vmax.f32 %v3016_v2, %v3024_v8  ;;  %v3113_v37 = vmax.f32 %v3017_v56, %v3025_v14  ;;  %v3259_v51 = vperm.slane %v3110_v34, 0 }
 0x286   : > { %v7257_v11 = vld [vmem:[#allocation3 + $0x40] sm:$0xff]  ;;  %v5598_v12 = vpack.i.bf16 %v7253_v59, %v7142_v27  ;;  %v5593_v48 = vpack.i.bf16 %v7255_v23, %v7144_v26  ;;  %v2258_v47 = vmul.f32 %v7108_v52, %v2204_v30  ;;  %v7272_v26 = vmax.f32 %v2297_v36, 0.0 }
 0x287   : > { %v5588_v1 = vpack.i.bf16 %v7257_v11, %v7146_v6  ;;  %v3260_v54 = vperm.slane %v3111_v31, 0  ;;  %v3261_v41 = vperm.slane %v3112_v62, 0  ;;  %v3325_v53 = vsel %vm3293_vm15, %v3259_v51, %v3324_v38 }
 0x288   : > { %5599 = vrot.lane.b32.xlu1 %v5598_v12, %s5726_s19  ;;  %5594 = vrot.lane.b32.xlu0 %v5593_v48, %s5727_s20  ;;  %v2294_v27 = vadd.f32 %v7090_v4, %v2258_v47  ;;  %v3262_v61 = vperm.slane %v3113_v37, 0  ;;  %v4703_v25 = vrot.slane %v2438_v63, 9  ;;  %v2439_v0 = vrot.slane %v7272_v26, 2 }
 0x289   : > { %v3326_v28 = vsel %vm3295_vm1, %v3260_v54, %v3325_v53  ;;  %5589 = vrot.lane.b32.xlu2 %v5588_v1, %s5728_s21  ;;  %v2440_v15 = vrot.slane %v7272_v26, 4  ;;  %v3034_v42 = vmax.f32 %v7244_v29, %v4700_v18  ;;  %v3035_v43 = vmax.f32 %v2436_v39, %v4701_v21 }
 0x28a   : > { %v3327_v24 = vsel %vm3297_vm3, %v3261_v41, %v3326_v28  ;;  %v2326_v17 = vmax.f32 %v2294_v27, 0.0  ;;  %v3036_v16 = vmax.f32 %v2437_v35, %v4702_v45  ;;  %v2441_v9 = vrot.slane %v7272_v26, 6 }
 0x28b   : > { %v3328_v13 = vsel %vm3299_vm11, %v3262_v61, %v3327_v24  ;;  %v3037_v49 = vmax.f32 %v2438_v63, %v4703_v25  ;;  %v4704_v2 = vrot.slane %v7272_v26, 9  ;;  %v4705_v58 = vrot.slane %v2439_v0, 9 }
 0x28c   : > { %3363 = vst.msk [vmem:[#allocation3 + $0x51] sm:$0xff] %vm1891_vm2, %v3328_v13  ;;  %v2430_v19 = vrot.slane %v2326_v17, 2  ;;  %v2431_v40 = vrot.slane %v2326_v17, 4  ;;  %v2432_v46 = vrot.slane %v2326_v17, 6  ;;  %v4692_v57 = vrot.slane %v2326_v17, 9 }
 0x28d   : > { %v2206_v3 = vpop.f32.mrf.mxu2  ;;  %v2224_v55 = vpop.f32.mrf.mxu3  ;;  %v4706_v8 = vrot.slane %v2440_v15, 9  ;;  %v4707_v37 = vrot.slane %v2441_v9, 9  ;;  %v3038_v61 = vmax.f32 %v7272_v26, %v4704_v2 }
 0x28e   : > { %v2259_v60 = vmul.f32 %v7108_v52, %v2206_v3  ;;  %v4693_v10 = vrot.slane %v2430_v19, 9  ;;  %v4694_v7 = vrot.slane %v2431_v40, 9  ;;  %v3026_v20 = vmax.f32 %v2326_v17, %v4692_v57 }
 0x28f   : > { %v4695_v44 = vrot.slane %v2432_v46, 9  ;;  %v2266_v12 = vmul.f32 %v7108_v52, %v2224_v55  ;;  %v3040_v13 = vmax.f32 %v2440_v15, %v4706_v8 }
 0x290   : > { %v2295_v33 = vadd.f32 %v7090_v4, %v2259_v60  ;;  %v3027_v5 = vmax.f32 %v2430_v19, %v4693_v10  ;;  %v3028_v22 = vmax.f32 %v2431_v40, %v4694_v7  ;;  %v3114_v56 = vmax.f32 %v3026_v20, %v3034_v42 }
 0x291   : > { %v3029_v29 = vmax.f32 %v2432_v46, %v4695_v44  ;;  %v2302_v17 = vadd.f32 %v7090_v4, %v2266_v12  ;;  %v3041_v19 = vmax.f32 %v2441_v9, %v4707_v37 }
 0x292   : > { %v2327_v50 = vmax.f32 %v2295_v33, 0.0  ;;  %v3115_v14 = vmax.f32 %v3027_v5, %v3035_v43  ;;  %v3116_v34 = vmax.f32 %v3028_v22, %v3036_v16  ;;  %v3263_v1 = vperm.slane %v3114_v56, 0  ;;  %v4861_v33 = vld [vmem:[%s7630_s4 + $0x38] sm:$0xff] }
 0x293   : > { %v7287_v39 = vld [vmem:[#allocation3 + $0x52] sm:$0xff]  ;;  %v3117_v28 = vmax.f32 %v3029_v29, %v3037_v49  ;;  %v7310_v10 = vmax.f32 %v2302_v17, 0.0  ;;  %3817 = vmatpush.bf16.msrb.mxu1 %v4861_v33 }
 0x294   : > { %v7289_v36 = vld [vmem:[#allocation3 + $0x51] sm:$0xff]  ;;  %v2433_v30 = vrot.slane %v2327_v50, 2  ;;  %v2434_v31 = vrot.slane %v2327_v50, 4  ;;  %v2435_v62 = vrot.slane %v2327_v50, 6  ;;  %v3264_v51 = vperm.slane %v3115_v14, 0 }
 0x295   : > { %v7291_v38 = vld [vmem:[#allocation3 + $0x50] sm:$0xff]  ;;  %v3728_v48 = vpack.c.bf16 %v7287_v39, %v7253_v59  ;;  %v7298_v47 = vpack.i.bf16 %v7289_v36, %v7255_v23  ;;  %v4696_v54 = vrot.slane %v2327_v50, 9  ;;  %v3265_v41 = vperm.slane %v3116_v34, 0  ;;  %v2226_v45 = vpop.f32.mrf.mxu3  ;;  %v4860_v49 = vld [vmem:[%s7630_s4 + $0x30] sm:$0xff] }
 0x296   : > { %v5603_v35 = vpack.i.bf16 %v7291_v38, %v7257_v11  ;;  %v4697_v53 = vrot.slane %v2433_v30, 9  ;;  %v4698_v27 = vrot.slane %v2434_v31, 9  ;;  %v4699_v63 = vrot.slane %v2435_v62, 9 }
 0x297   : > { %4777 = vmatmul.msk.bf16.gmra.mxu2 %vm1891_vm2, %v3728_v48  ;;  %v3329_v24 = vsel %vm3287_vm12, %v3264_v51, %v3263_v1  ;;  %5609 = vrot.lane.b32.xlu0 %v7298_v47, %s5729_s30  ;;  %v3039_v23 = vmax.f32 %v2439_v0, %v4705_v58  ;;  %v3030_v18 = vmax.f32 %v2327_v50, %v4696_v54  ;;  %v3266_v25 = vperm.slane %v3117_v28, 0  ;;  %v7338_v1 = vld [vmem:[#allocation3 + $0x72] sm:$0xff] }
 0x298   : > { %5604 = vrot.lane.b32.xlu2 %v5603_v35, %s5730_s11  ;;  %v3031_v21 = vmax.f32 %v2433_v30, %v4697_v53  ;;  %v3032_v40 = vmax.f32 %v2434_v31, %v4698_v27  ;;  %v3330_v46 = vsel %vm3289_vm13, %v3265_v41, %v3329_v24  ;;  %v3033_v26 = vmax.f32 %v2435_v62, %v4699_v63  ;;  %v4859_v30 = vld [vmem:[%s7630_s4 + $0x28] sm:$0xff] }
 0x299   : > { %v3118_v57 = vmax.f32 %v3030_v18, %v3038_v61  ;;  %v3331_v42 = vsel %vm3291_vm14, %v3266_v25, %v3330_v46  ;;  %v2454_v16 = vrot.slane %v7310_v10, 2  ;;  %v2267_v5 = vmul.f32 %v7108_v52, %v2226_v45  ;;  %3818 = vmatpush.bf16.msrb.mxu1 %v4860_v49 }
 0x29a   : > { %v3119_v3 = vmax.f32 %v3031_v21, %v3039_v23  ;;  %v3120_v60 = vmax.f32 %v3032_v40, %v3040_v13  ;;  %v3121_v7 = vmax.f32 %v3033_v26, %v3041_v19  ;;  %v2455_v2 = vrot.slane %v7310_v10, 4  ;;  %v4858_v21 = vld [vmem:[%s7630_s4 + $0x20] sm:$0xff] }
 0x29b   : > { %v3267_v20 = vperm.slane %v3118_v57, 0  ;;  %v2456_v58 = vrot.slane %v7310_v10, 6  ;;  %v4724_v8 = vrot.slane %v7310_v10, 9  ;;  %v4725_v14 = vrot.slane %v2454_v16, 9 }
 0x29c   : > { %v3268_v0 = vperm.slane %v3119_v3, 0  ;;  %v3269_v43 = vperm.slane %v3120_v60, 0  ;;  %v3270_v15 = vperm.slane %v3121_v7, 0  ;;  %v2303_v34 = vadd.f32 %v7090_v4, %v2267_v5 }
 0x29d   : > { %v3332_v44 = vsel %vm3293_vm15, %v3267_v20, %v3331_v42  ;;  %v2229_v56 = vpop.f32.mrf.mxu3  ;;  %v4726_v31 = vrot.slane %v2455_v2, 9  ;;  %v4727_v37 = vrot.slane %v2456_v58, 9  ;;  %v3058_v51 = vmax.f32 %v7310_v10, %v4724_v8  ;;  %3819 = vmatpush.bf16.msrb.mxu1 %v4859_v30 }
 0x29e   : > { %v3333_v55 = vsel %vm3295_vm1, %v3268_v0, %v3332_v44  ;;  %v2268_v50 = vmul.f32 %v7108_v52, %v2229_v56  ;;  %v3059_v12 = vmax.f32 %v2454_v16, %v4725_v14  ;;  %v7336_v48 = vmax.f32 %v2303_v34, 0.0 }
 0x29f   : > { %v3334_v9 = vsel %vm3297_vm3, %v3269_v43, %v3333_v55  ;;  %v3060_v61 = vmax.f32 %v2455_v2, %v4726_v31  ;;  %v3061_v44 = vmax.f32 %v2456_v58, %v4727_v37  ;;  %v5643_v33 = vpack.i.bf16 %v7287_v39, %v7253_v59  ;;  %v4856_v58 = vld [vmem:[%s7630_s4 + $0x10] sm:$0xff] }
 0x2a0   : > { %v3335_v22 = vsel %vm3299_vm11, %v3270_v15, %v3334_v9  ;;  %v2304_v29 = vadd.f32 %v7090_v4, %v2268_v50  ;;  %v2457_v46 = vrot.slane %v7336_v48, 2  ;;  %v2458_v26 = vrot.slane %v7336_v48, 4  ;;  %v7372_v50 = vld [vmem:[#allocation3 + $0x70] sm:$0xff] }
 0x2a1   : > { %3364 = vst.msk [vmem:[#allocation3 + $0x61] sm:$0xff] %vm1891_vm2, %v3335_v22  ;;  %v2459_v3 = vrot.slane %v7336_v48, 6  ;;  %3820 = vmatpush.bf16.msrb.mxu1 %v4858_v21  ;;  %v4728_v20 = vrot.slane %v7336_v48, 9  ;;  %v3382_v21 = vld [vmem:[#allocation3 + $0x71] sm:$0xff] }
 0x2a2   : > { %v2336_v62 = vmax.f32 %v2304_v29, 0.0  ;;  %v4729_v15 = vrot.slane %v2457_v46, 9  ;;  %v4730_v16 = vrot.slane %v2458_v26, 9 }
 0x2a3   : > { %v3062_v8 = vmax.f32 %v7336_v48, %v4728_v20 }
 0x2a4   : > { %v2460_v35 = vrot.slane %v2336_v62, 2  ;;  %v2461_v54 = vrot.slane %v2336_v62, 4  ;;  %v2462_v41 = vrot.slane %v2336_v62, 6  ;;  %v4732_v53 = vrot.slane %v2336_v62, 9 }
 0x2a5   : > { %v2231_v28 = vpop.f32.mrf.mxu3  ;;  %v3064_v37 = vmax.f32 %v2458_v26, %v4730_v16  ;;  %v5545_v26 = vpop.permute.xlu2 %5544 }
 0x2a6   : > { %v4733_v45 = vrot.slane %v2460_v35, 9  ;;  %v4734_v13 = vrot.slane %v2461_v54, 9  ;;  %v4735_v19 = vrot.slane %v2462_v41, 9  ;;  %v3066_v40 = vmax.f32 %v2336_v62, %v4732_v53 }
 0x2a7   : > { %v2269_v57 = vmul.f32 %v7108_v52, %v2231_v28  ;;  %v4857_v52 = vld [vmem:[%s7630_s4 + $0x18] sm:$0xff]  ;;  %v3063_v62 = vmax.f32 %v2457_v46, %v4729_v15  ;;  %v4854_v46 = vld [vmem:[%s7630_s4] sm:$0xff]  ;;  %v5546_v20 = vunpack.i.l.bf16 %v5545_v26 }
 0x2a8   : > { %v7340_v27 = vld [vmem:[#allocation3 + $0x62] sm:$0xff]  ;;  %v3067_v25 = vmax.f32 %v2460_v35, %v4733_v45  ;;  %v3068_v60 = vmax.f32 %v2461_v54, %v4734_v13  ;;  %v3130_v10 = vmax.f32 %v3058_v51, %v3066_v40  ;;  %v3069_v0 = vmax.f32 %v2462_v41, %v4735_v19  ;;  %3821 = vmatpush.bf16.msrb.mxu1 %v4857_v52  ;;  %v4855_v41 = vld [vmem:[%s7630_s4 + $0x8] sm:$0xff]  ;;  %v5555_v52 = vpop.permute.xlu1 %5554 }
 0x2a9   : > { %v7342_v63 = vld [vmem:[#allocation3 + $0x61] sm:$0xff]  ;;  %v3730_v24 = vpack.c.bf16 %v7338_v1, %v7340_v27  ;;  %v5623_v18 = vpack.i.bf16 %v7340_v27, %v7287_v39  ;;  %v2305_v7 = vadd.f32 %v7090_v4, %v2269_v57  ;;  %v4731_v4 = vrot.slane %v2459_v3, 9 }
 0x2aa   : > { %v5618_v23 = vpack.i.bf16 %v7342_v63, %v7289_v36  ;;  %v7348_v17 = vld [vmem:[#allocation3 + $0x60] sm:$0xff]  ;;  %v3131_v42 = vmax.f32 %v3059_v12, %v3067_v25  ;;  %v3132_v43 = vmax.f32 %v3060_v61, %v3068_v60  ;;  %v3279_v9 = vperm.slane %v3130_v10, 0  ;;  %v5550_v10 = vpop.permute.xlu0 %5549 }
 0x2ab   : > { %4778 = vmatmul.msk.bf16.gmra.mxu2 %vm1891_vm2, %v3730_v24  ;;  %v5613_v36 = vpack.i.bf16 %v7348_v17, %v7291_v38  ;;  %5624 = vrot.lane.b32.xlu2 %v5623_v18, %s5726_s19  ;;  %v2337_v55 = vmax.f32 %v2305_v7, 0.0  ;;  %v3133_v14 = vmax.f32 %v3061_v44, %v3069_v0  ;;  %v5628_v59 = vpack.i.bf16 %v7372_v50, %v7348_v17 }
 0x2ac   : > { %5619 = vrot.lane.b32.xlu1 %v5618_v23, %s5727_s20  ;;  %v3280_v5 = vperm.slane %v3131_v42, 0  ;;  %v3281_v34 = vperm.slane %v3132_v43, 0  ;;  %v3065_v51 = vmax.f32 %v2459_v3, %v4731_v4  ;;  %3822 = vmatpush.bf16.msrb.mxu1 %v4856_v58  ;;  %v5648_v40 = vpack.i.bf16 %v3382_v21, %v7342_v63  ;;  %v3367_v42 = vld [vmem:[#allocation3] sm:$0xff] }
 0x2ad   : > { %5614 = vrot.lane.b32.xlu0 %v5613_v36, %s5728_s21  ;;  %v2463_v22 = vrot.slane %v2337_v55, 2  ;;  %v2464_v49 = vrot.slane %v2337_v55, 4  ;;  %v2465_v2 = vrot.slane %v2337_v55, 6  ;;  %v4736_v56 = vrot.slane %v2337_v55, 9  ;;  %v5560_v43 = vpop.permute.xlu2 %5559 }
 0x2ae   : > { %v3343_v39 = vsel %vm3287_vm12, %v3280_v5, %v3279_v9  ;;  %v5653_v25 = vpack.i.bf16 %v7338_v1, %v7340_v27  ;;  %v5547_v7 = vunpack.i.h.bf16 %v5545_v26  ;;  %v5552_v0 = vunpack.i.h.bf16 %v5550_v10 }
 0x2af   : > { %v4737_v29 = vrot.slane %v2463_v22, 9  ;;  %v4738_v30 = vrot.slane %v2464_v49, 9  ;;  %v4739_v31 = vrot.slane %v2465_v2, 9  ;;  %v3070_v12 = vmax.f32 %v2337_v55, %v4736_v56  ;;  %v3439_v55 = vld [vmem:[#allocation3 + $0x92] sm:$0xff] }
 0x2b0   : > { %v3344_v53 = vsel %vm3289_vm13, %v3281_v34, %v3343_v39  ;;  %3823 = vmatpush.bf16.msrb.mxu1 %v4855_v41  ;;  %v5551_v27 = vunpack.i.l.bf16 %v5550_v10  ;;  %v5557_v44 = vunpack.i.h.bf16 %v5555_v52  ;;  %v5556_v15 = vunpack.i.l.bf16 %v5555_v52 }
 0x2b1   : > { %v3071_v48 = vmax.f32 %v2463_v22, %v4737_v29  ;;  %v3072_v35 = vmax.f32 %v2464_v49, %v4738_v30  ;;  %v3073_v54 = vmax.f32 %v2465_v2, %v4739_v31  ;;  %v3134_v61 = vmax.f32 %v3062_v8, %v3070_v12 }
 0x2b2   : > { %v3664_v4 = vsel %vm1891_vm2, %v3367_v42, %v5546_v20  ;;  %v5562_v39 = vunpack.i.h.bf16 %v5560_v43  ;;  %v5561_v29 = vunpack.i.l.bf16 %v5560_v43  ;;  %v5565_v30 = vpop.permute.xlu0 %5564 }
 0x2b3   : > { %5644 = vrot.lane.b32.xlu2 %v5643_v33, %s5724_s25  ;;  %v3135_v28 = vmax.f32 %v3063_v62, %v3071_v48  ;;  %v3136_v24 = vmax.f32 %v3064_v37, %v3072_v35  ;;  %v3137_v23 = vmax.f32 %v3065_v51, %v3073_v54  ;;  %v3283_v18 = vperm.slane %v3134_v61, 0  ;;  %v5708_v33 = vld [vmem:[#allocation3 + $0x10] sm:$0xff] }
 0x2b4   : > { %5634 = vrot.lane.b32.xlu1 %v7298_v47, %s5722_s23  ;;  %v3282_v47 = vperm.slane %v3133_v14, 0  ;;  %3824 = vmatpush.bf16.msrb.mxu1 %v4854_v46  ;;  %v3665_v16 = vsel %vm1891_vm2, %v5708_v33, %v5547_v7  ;;  %v3672_v2 = vsel %vm2023_vm9, %v3664_v4, %v5551_v27  ;;  %v5567_v37 = vunpack.i.h.bf16 %v5565_v30  ;;  %v3431_v48 = vld [vmem:[#allocation3 + $0x91] sm:$0xff]  ;;  %v3369_v7 = vld [vmem:[#allocation3 + $0x20] sm:$0xff] }
 0x2b5   : > { %5629 = vrot.lane.b32.xlu0 %v5628_v59, %s5730_s11  ;;  %v3284_v13 = vperm.slane %v3135_v28, 0  ;;  %v3285_v19 = vperm.slane %v3136_v24, 0  ;;  %v3286_v36 = vperm.slane %v3137_v23, 0  ;;  %v3673_v9 = vsel %vm2023_vm9, %v3665_v16, %v5552_v0  ;;  %v3423_v35 = vld [vmem:[#allocation3 + $0x90] sm:$0xff] }
 0x2b6   : > { %v3345_v45 = vsel %vm3291_vm14, %v3282_v47, %v3344_v53  ;;  %v3682_v8 = vsel %vm3680_vm0, %v3673_v9, %v5557_v44  ;;  %v3681_v14 = vsel %vm3680_vm0, %v3672_v2, %v5556_v15  ;;  %v5575_v62 = vpop.permute.xlu2 %5574  ;;  %v5566_v51 = vunpack.i.l.bf16 %v5565_v30 }
 0x2b7   : > { %v3346_v57 = vsel %vm3293_vm15, %v3283_v18, %v3345_v45  ;;  %v3690_v31 = vsel %vm3689_vm4, %v3681_v14, %v5561_v29  ;;  %v5577_v53 = vunpack.i.h.bf16 %v5575_v62  ;;  %v5576_v61 = vunpack.i.l.bf16 %v5575_v62 }
 0x2b8   : > { %v3347_v3 = vsel %vm3295_vm1, %v3284_v13, %v3346_v57  ;;  %v3699_v47 = vsel %vm3698_vm5, %v3690_v31, %v5566_v51 }
 0x2b9   : > { %v3348_v60 = vsel %vm3297_vm3, %v3285_v19, %v3347_v3 }
 0x2ba   : > { %v3349_v63 = vsel %vm3299_vm11, %v3286_v36, %v3348_v60 }
 0x2bb   : > { %5649 = vrot.lane.b32.xlu2 %v5648_v40, %s5722_s23  ;;  %3366 = vst.msk [vmem:[#allocation3 + $0x81] sm:$0xff] %vm1891_vm2, %v3349_v63 }
 0x2bc   : > { %5639 = vrot.lane.b32.xlu1 %v5648_v40, %s5729_s30 }
 0x2bd   : > { %5654 = vrot.lane.b32.xlu0 %v5653_v25, %s5724_s25 }
 0x2c2   : > { %v3438_v5 = vld [vmem:[#allocation3 + $0x82] sm:$0xff] }
 0x2c3   : > { %v3406_v22 = vld [vmem:[#allocation3 + $0x81] sm:$0xff]  ;;  %v3732_v56 = vpack.c.bf16 %v3439_v55, %v3438_v5  ;;  %v5668_v58 = vpack.i.bf16 %v3438_v5, %v7338_v1  ;;  %v3691_v1 = vsel %vm3689_vm4, %v3682_v8, %v5562_v39 }
 0x2c4   : > { %v3398_v49 = vld [vmem:[#allocation3 + $0x80] sm:$0xff]  ;;  %v5663_v34 = vpack.i.bf16 %v3406_v22, %v3382_v21  ;;  %v3700_v28 = vsel %vm3698_vm5, %v3691_v1, %v5567_v37  ;;  %v5678_v18 = vpack.i.bf16 %v3431_v48, %v3406_v22 }
 0x2c5   : > { %v5658_v59 = vpack.i.bf16 %v3398_v49, %v7372_v50  ;;  %4779 = vmatmul.msk.bf16.gmra.mxu2 %vm1891_vm2, %v3732_v56  ;;  %5669 = vrot.lane.b32.xlu0 %v5668_v58, %s5726_s19  ;;  %v5673_v21 = vpack.i.bf16 %v3423_v35, %v3398_v49 }
 0x2c6   : > { %5664 = vrot.lane.b32.xlu2 %v5663_v34, %s5727_s20 }
 0x2c7   : > { %5659 = vrot.lane.b32.xlu1 %v5658_v59, %s5728_s21 }
 0x2ce   : > { %5679 = vrot.lane.b32.xlu2 %v5678_v18, %s5729_s30  ;;  %v5580_v40 = vpop.permute.xlu0 %5579 }
 0x2cf   : > { %v5570_v12 = vpop.permute.xlu1 %5569  ;;  %5674 = vrot.lane.b32.xlu1 %v5673_v21, %s5730_s11  ;;  %v5582_v57 = vunpack.i.h.bf16 %v5580_v40  ;;  %v5581_v36 = vunpack.i.l.bf16 %v5580_v40 }
 0x2d0   : > { %v5572_v54 = vunpack.i.h.bf16 %v5570_v12  ;;  %v5571_v41 = vunpack.i.l.bf16 %v5570_v12 }
 0x2d1   : > { %v3666_v42 = vsel %vm1891_vm2, %v3369_v7, %v5581_v36  ;;  %v3667_v27 = vsel %vm1891_vm2, %v7146_v6, %v5582_v57 }
 0x2d2   : > { %v3709_v24 = vsel %vm3707_vm6, %v3700_v28, %v5572_v54  ;;  %v3708_v23 = vsel %vm3707_vm6, %v3699_v47, %v5571_v41 }
 0x2d3   : > { %v3717_v45 = vsel %vm3716_vm7, %v3708_v23, %v5576_v61  ;;  %v3718_v13 = vsel %vm3716_vm7, %v3709_v24, %v5577_v53 }
 0x2d4   : > { %v3725_v19 = vpack.c.bf16 %v3718_v13, %v3717_v45 }
 0x2d6   : > { %3825 = vmatmul.bf16.vlgmr.msrb.gmra.mxu1 %v3725_v19 }
 0x2d7   : > { %v5585_v46 = vpop.permute.xlu1 %5584 }
 0x2d8   : > { %v5587_v25 = vunpack.i.h.bf16 %v5585_v46  ;;  %v5586_v60 = vunpack.i.l.bf16 %v5585_v46 }
 0x2da   : > { %v3674_v43 = vsel %vm2023_vm9, %v3666_v42, %v5586_v60  ;;  %v3675_v44 = vsel %vm2023_vm9, %v3667_v27, %v5587_v25 }
 0x2e3   : > { %v5590_v26 = vpop.permute.xlu2 %5589 }
 0x2e4   : > { %v5592_v63 = vunpack.i.h.bf16 %v5590_v26  ;;  %v5591_v10 = vunpack.i.l.bf16 %v5590_v26 }
 0x2e6   : > { %v3684_v15 = vsel %vm3680_vm0, %v3675_v44, %v5592_v63  ;;  %v3683_v55 = vsel %vm3680_vm0, %v3674_v43, %v5591_v10 }
 0x2f2   : > { %v5605_v5 = vpop.permute.xlu2 %5604 }
 0x2f3   : > { %v5607_v6 = vunpack.i.h.bf16 %v5605_v5  ;;  %v5606_v2 = vunpack.i.l.bf16 %v5605_v5 }
 0x2fa   : > { %v5595_v3 = vpop.permute.xlu0 %5594  ;;  %v5600_v52 = vpop.permute.xlu1 %5599 }
 0x2fb   : > { %v5597_v20 = vunpack.i.h.bf16 %v5595_v3  ;;  %v5596_v0 = vunpack.i.l.bf16 %v5595_v3  ;;  %v5602_v33 = vunpack.i.h.bf16 %v5600_v52  ;;  %v5601_v16 = vunpack.i.l.bf16 %v5600_v52 }
 0x2fd   : > { %v3692_v4 = vsel %vm3689_vm4, %v3683_v55, %v5596_v0  ;;  %v3693_v9 = vsel %vm3689_vm4, %v3684_v15, %v5597_v20 }
 0x2fe   : > { %v3701_v22 = vsel %vm3698_vm5, %v3692_v4, %v5601_v16  ;;  %v3702_v49 = vsel %vm3698_vm5, %v3693_v9, %v5602_v33 }
 0x2ff   : > { %v3710_v14 = vsel %vm3707_vm6, %v3701_v22, %v5606_v2  ;;  %v3711_v34 = vsel %vm3707_vm6, %v3702_v49, %v5607_v6 }
 0x305   : > { %v5625_v30 = vpop.permute.xlu2 %5624 }
 0x306   : > { %v5627_v18 = vunpack.i.h.bf16 %v5625_v30  ;;  %v5626_v21 = vunpack.i.l.bf16 %v5625_v30 }
 0x309   : > { %v5610_v56 = vpop.permute.xlu0 %5609 }
 0x30a   : > { %v5612_v58 = vunpack.i.h.bf16 %v5610_v56  ;;  %v5611_v8 = vunpack.i.l.bf16 %v5610_v56 }
 0x30c   : > { %v3719_v59 = vsel %vm3716_vm7, %v3710_v14, %v5611_v8  ;;  %v3720_v39 = vsel %vm3716_vm7, %v3711_v34, %v5612_v58 }
 0x30d   : > { %v3727_v29 = vpack.c.bf16 %v3720_v39, %v3719_v59  ;;  %v5645_v62 = vpop.permute.xlu2 %5644 }
 0x30e   : > { %v5647_v48 = vunpack.i.h.bf16 %v5645_v62  ;;  %v5646_v35 = vunpack.i.l.bf16 %v5645_v62 }
 0x30f   : > { %3830 = vmatmul.bf16.gmra.mxu1 %v3727_v29 }
 0x315   : > { %v5650_v3 = vpop.permute.xlu2 %5649 }
 0x316   : > { %v5652_v27 = vunpack.i.h.bf16 %v5650_v3  ;;  %v5651_v43 = vunpack.i.l.bf16 %v5650_v3 }
 0x318   : > { %v3671_v4 = vsel %vm1891_vm2, %v7372_v50, %v5652_v27  ;;  %v3670_v9 = vsel %vm1891_vm2, %v7348_v17, %v5651_v43 }
 0x31e   : > { %v5620_v1 = vpop.permute.xlu1 %5619 }
 0x31f   : > { %v5615_v31 = vpop.permute.xlu0 %5614  ;;  %v5622_v47 = vunpack.i.h.bf16 %v5620_v1  ;;  %v5621_v28 = vunpack.i.l.bf16 %v5620_v1 }
 0x320   : > { %v5617_v54 = vunpack.i.h.bf16 %v5615_v31  ;;  %v5616_v41 = vunpack.i.l.bf16 %v5615_v31  ;;  %v5665_v42 = vpop.permute.xlu2 %5664 }
 0x321   : > { %v5667_v2 = vunpack.i.h.bf16 %v5665_v42  ;;  %v5666_v56 = vunpack.i.l.bf16 %v5665_v42 }
 0x326   : > { %v5635_v37 = vpop.permute.xlu1 %5634 }
 0x327   : > { %v5637_v51 = vunpack.i.h.bf16 %v5635_v37  ;;  %v5636_v12 = vunpack.i.l.bf16 %v5635_v37  ;;  %v5630_v45 = vpop.permute.xlu0 %5629 }
 0x328   : > { %v5632_v26 = vunpack.i.h.bf16 %v5630_v45  ;;  %v5631_v57 = vunpack.i.l.bf16 %v5630_v45  ;;  %v5680_v8 = vpop.permute.xlu2 %5679 }
 0x329   : > { %v3669_v53 = vsel %vm1891_vm2, %v7291_v38, %v5637_v51  ;;  %v3668_v61 = vsel %vm1891_vm2, %v7257_v11, %v5636_v12  ;;  %v5682_v30 = vunpack.i.h.bf16 %v5680_v8  ;;  %v5681_v1 = vunpack.i.l.bf16 %v5680_v8 }
 0x32a   : > { %v3677_v24 = vsel %vm2023_vm9, %v3669_v53, %v5647_v48  ;;  %v3676_v23 = vsel %vm2023_vm9, %v3668_v61, %v5646_v35 }
 0x32b   : > { %v3686_v13 = vsel %vm3680_vm0, %v3677_v24, %v5617_v54  ;;  %v3685_v19 = vsel %vm3680_vm0, %v3676_v23, %v5616_v41  ;;  %v3855_v54 = vpop.f32.mrf.mxu2  ;;  %v7482_v41 = vld [vmem:[%s7631_s5] ss:$0 sm:$0xff]  ;;  %v4176_v24 = vld [vmem:[#allocation4 + $0x2] sm:$0xf] }
 0x32c   : > { %v3694_v40 = vsel %vm3689_vm4, %v3685_v19, %v5621_v28  ;;  %v3695_v38 = vsel %vm3689_vm4, %v3686_v13, %v5622_v47  ;;  %v7487_v47 = vld [vmem:[%s7632_s6] ss:$0 sm:$0xff]  ;;  %v4172_v28 = vld [vmem:[#allocation4 + $0x1] sm:$0xf]  ;;  %4225 = vrot.lane.b32.xlu1 %v4176_v24, %s5724_s25 }
 0x32d   : > { %v3703_v46 = vsel %vm3698_vm5, %v3694_v40, %v5626_v21  ;;  %v3704_v11 = vsel %vm3698_vm5, %v3695_v38, %v5627_v18  ;;  %4209 = vrot.lane.b32.xlu0 %v4172_v28, %s5722_s23  ;;  %v4196_v18 = vld [vmem:[#allocation4 + $0x28] sm:$0xf] }
 0x32e   : > { %v5640_v36 = vpop.permute.xlu1 %5639  ;;  %v3712_v63 = vsel %vm3707_vm6, %v3703_v46, %v5631_v57  ;;  %v3713_v10 = vsel %vm3707_vm6, %v3704_v11, %v5632_v26  ;;  %4295 = vrot.lane.b32.xlu2 %v4196_v18, %s5730_s11 }
 0x32f   : > { %v5642_v25 = vunpack.i.h.bf16 %v5640_v36  ;;  %v5641_v60 = vunpack.i.l.bf16 %v5640_v36  ;;  %v5655_v0 = vpop.permute.xlu0 %5654 }
 0x330   : > { %v5657_v44 = vunpack.i.h.bf16 %v5655_v0  ;;  %v5656_v15 = vunpack.i.l.bf16 %v5655_v0 }
 0x331   : > { %v3721_v7 = vsel %vm3716_vm7, %v3712_v63, %v5641_v60  ;;  %v3722_v52 = vsel %vm3716_vm7, %v3713_v10, %v5642_v25 }
 0x332   : > { %v3729_v20 = vpack.c.bf16 %v3722_v52, %v3721_v7  ;;  %v3678_v5 = vsel %vm2023_vm9, %v3670_v9, %v5656_v15  ;;  %v3679_v22 = vsel %vm2023_vm9, %v3671_v4, %v5657_v44 }
 0x333   : > { %v3857_v45 = vpop.f32.mrf.mxu2 }
 0x334   : > { %3835 = vmatmul.bf16.gmra.mxu1 %v3729_v20 }
 0x337   : > { %v5670_v58 = vpop.permute.xlu0 %5669 }
 0x338   : > { %v5672_v50 = vunpack.i.h.bf16 %v5670_v58  ;;  %v5671_v59 = vunpack.i.l.bf16 %v5670_v58 }
 0x339   : > { %v5660_v55 = vpop.permute.xlu1 %5659 }
 0x33a   : > { %v5662_v33 = vunpack.i.h.bf16 %v5660_v55  ;;  %v5661_v16 = vunpack.i.l.bf16 %v5660_v55 }
 0x33c   : > { %v3688_v49 = vsel %vm3680_vm0, %v3679_v22, %v5662_v33  ;;  %v3687_v6 = vsel %vm3680_vm0, %v3678_v5, %v5661_v16 }
 0x33d   : > { %v3697_v14 = vsel %vm3689_vm4, %v3688_v49, %v5667_v2  ;;  %v3696_v34 = vsel %vm3689_vm4, %v3687_v6, %v5666_v56 }
 0x33e   : > { %v3705_v31 = vsel %vm3698_vm5, %v3696_v34, %v5671_v59  ;;  %v3706_v62 = vsel %vm3698_vm5, %v3697_v14, %v5672_v50 }
 0x341   : > { %v5675_v39 = vpop.permute.xlu1 %5674 }
 0x342   : > { %v5677_v17 = vunpack.i.h.bf16 %v5675_v39  ;;  %v5676_v29 = vunpack.i.l.bf16 %v5675_v39 }
 0x344   : > { %v3714_v37 = vsel %vm3707_vm6, %v3705_v31, %v5676_v29  ;;  %v3715_v51 = vsel %vm3707_vm6, %v3706_v62, %v5677_v17 }
 0x345   : > { %v3723_v12 = vsel %vm3716_vm7, %v3714_v37, %v5681_v1  ;;  %v3724_v48 = vsel %vm3716_vm7, %v3715_v51, %v5682_v30  ;;  %v3860_v30 = vpop.f32.mrf.mxu2 }
 0x346   : > { %v3731_v35 = vpack.c.bf16 %v3724_v48, %v3723_v12 }
 0x348   : > { %3840 = vmatmul.bf16.gmra.mxu1 %v3731_v35 }
 0x34d   : > { %v3862_v12 = vpop.f32.mrf.mxu2 }
 0x353   : > { %v3826_v53 = vpop.f32.mrf.mxu1 }
 0x354   : > { %v3856_v61 = vadd.f32 %v3855_v54, %v3826_v53 }
 0x356   : > { %v3879_v32 = vmul.f32 %v7482_v41, %v3856_v61 }
 0x358   : > { %v3891_v23 = vadd.f32 %v7487_v47, %v3879_v32 }
 0x35a   : > { %v3899_v13 = vmax.f32 %v3891_v23, 0.0 }
 0x35b   : > { %v3828_v21 = vpop.f32.mrf.mxu1 }
 0x35c   : > { %v3858_v19 = vadd.f32 %v3857_v45, %v3828_v21  ;;  %v3915_v38 = vrot.slane %v3899_v13, 2  ;;  %v3916_v46 = vrot.slane %v3899_v13, 4  ;;  %v3917_v11 = vrot.slane %v3899_v13, 6 }
 0x35d   : > { %v4780_v57 = vrot.slane %v3899_v13, 9 }
 0x35e   : > { %v3880_v40 = vmul.f32 %v7482_v41, %v3858_v19  ;;  %v4781_v3 = vrot.slane %v3915_v38, 9  ;;  %v4782_v25 = vrot.slane %v3916_v46, 9  ;;  %v4783_v60 = vrot.slane %v3917_v11, 9 }
 0x35f   : > { %v4059_v20 = vmax.f32 %v3899_v13, %v4780_v57 }
 0x360   : > { %v3892_v26 = vadd.f32 %v7487_v47, %v3880_v40  ;;  %v4060_v44 = vmax.f32 %v3915_v38, %v4781_v3  ;;  %v4061_v15 = vmax.f32 %v3916_v46, %v4782_v25  ;;  %v4062_v55 = vmax.f32 %v3917_v11, %v4783_v60 }
 0x362   : > { %v3900_v36 = vmax.f32 %v3892_v26, 0.0 }
 0x364   : > { %v3918_v63 = vrot.slane %v3900_v36, 2  ;;  %v3919_v10 = vrot.slane %v3900_v36, 4  ;;  %v3920_v7 = vrot.slane %v3900_v36, 6  ;;  %v4784_v52 = vrot.slane %v3900_v36, 9 }
 0x366   : > { %v4785_v0 = vrot.slane %v3918_v63, 9  ;;  %v4786_v42 = vrot.slane %v3919_v10, 9  ;;  %v4787_v27 = vrot.slane %v3920_v7, 9  ;;  %v4063_v43 = vmax.f32 %v3900_v36, %v4784_v52 }
 0x368   : > { %v4064_v33 = vmax.f32 %v3918_v63, %v4785_v0  ;;  %v4065_v16 = vmax.f32 %v3919_v10, %v4786_v42  ;;  %v4066_v4 = vmax.f32 %v3920_v7, %v4787_v27  ;;  %v4091_v9 = vmax.f32 %v4059_v20, %v4063_v43 }
 0x36a   : > { %v4092_v5 = vmax.f32 %v4060_v44, %v4064_v33  ;;  %v4093_v22 = vmax.f32 %v4061_v15, %v4065_v16  ;;  %v4094_v49 = vmax.f32 %v4062_v55, %v4066_v4  ;;  %v4130_v6 = vperm.slane %v4091_v9, 0  ;;  %v3865_v4 = vpop.f32.mrf.mxu2 }
 0x36c   : > { %v4131_v2 = vperm.slane %v4092_v5, 0  ;;  %v4132_v56 = vperm.slane %v4093_v22, 0  ;;  %v4133_v58 = vperm.slane %v4094_v49, 0 }
 0x36e   : > { %v4146_v8 = vsel %vm3287_vm12, %v4131_v2, %v4130_v6 }
 0x36f   : > { %v4147_v14 = vsel %vm3289_vm13, %v4132_v56, %v4146_v8 }
 0x370   : > { %v4148_v34 = vsel %vm3291_vm14, %v4133_v58, %v4147_v14 }
 0x371   : > { %4164 = vst.msk [vmem:[#allocation4 + $0x9] sm:$0xf] %vm4163_vm10, %v4148_v34 }
 0x372   : > { %v3867_v8 = vpop.f32.mrf.mxu2 }
 0x378   : > { %v4184_v50 = vld [vmem:[#allocation4 + $0x9] sm:$0xf] }
 0x379   : > { %v4177_v59 = vld [vmem:[#allocation4 + $0xa] sm:$0xf]  ;;  %4257 = vrot.lane.b32.xlu0 %v4184_v50, %s5727_s20 }
 0x37a   : > { %v4173_v39 = vld [vmem:[#allocation4 + $0x9] sm:$0xf]  ;;  %4227 = vrot.lane.b32.xlu2 %v4177_v59, %s5724_s25 }
 0x37b   : > { %4211 = vrot.lane.b32.xlu1 %v4173_v39, %s5722_s23  ;;  %v4180_v17 = vld [vmem:[#allocation4 + $0x8] sm:$0xf] }
 0x37c   : > { %v4188_v29 = vld [vmem:[#allocation4 + $0xa] sm:$0xf] }
 0x382   : > { %4241 = vrot.lane.b32.xlu2 %v4180_v17, %s5728_s21 }
 0x383   : > { %4273 = vrot.lane.b32.xlu1 %v4188_v29, %s5726_s19 }
 0x38c   : > { %v3831_v1 = vpop.f32.mrf.mxu1 }
 0x38d   : > { %v3861_v31 = vadd.f32 %v3860_v30, %v3831_v1 }
 0x38f   : > { %v3881_v62 = vmul.f32 %v7482_v41, %v3861_v31 }
 0x391   : > { %v3893_v37 = vadd.f32 %v7487_v47, %v3881_v62 }
 0x393   : > { %v3901_v48 = vmax.f32 %v3893_v37, 0.0 }
 0x394   : > { %v3833_v51 = vpop.f32.mrf.mxu1 }
 0x395   : > { %v3863_v35 = vadd.f32 %v3862_v12, %v3833_v51  ;;  %v3921_v53 = vrot.slane %v3901_v48, 2  ;;  %v3922_v61 = vrot.slane %v3901_v48, 4  ;;  %v3923_v28 = vrot.slane %v3901_v48, 6 }
 0x396   : > { %v4788_v32 = vrot.slane %v3901_v48, 9 }
 0x397   : > { %v3882_v54 = vmul.f32 %v7482_v41, %v3863_v35  ;;  %v4789_v18 = vrot.slane %v3921_v53, 9  ;;  %v4790_v21 = vrot.slane %v3922_v61, 9  ;;  %v4791_v45 = vrot.slane %v3923_v28, 9 }
 0x398   : > { %v4067_v46 = vmax.f32 %v3901_v48, %v4788_v32 }
 0x399   : > { %v3894_v24 = vadd.f32 %v7487_v47, %v3882_v54  ;;  %v4068_v3 = vmax.f32 %v3921_v53, %v4789_v18  ;;  %v4069_v25 = vmax.f32 %v3922_v61, %v4790_v21  ;;  %v4070_v60 = vmax.f32 %v3923_v28, %v4791_v45  ;;  %v3870_v45 = vpop.f32.mrf.mxu2 }
 0x39b   : > { %v3902_v23 = vmax.f32 %v3894_v24, 0.0 }
 0x39d   : > { %v3924_v13 = vrot.slane %v3902_v23, 2  ;;  %v3925_v19 = vrot.slane %v3902_v23, 4  ;;  %v3926_v40 = vrot.slane %v3902_v23, 6  ;;  %v4792_v38 = vrot.slane %v3902_v23, 9 }
 0x39f   : > { %v4793_v11 = vrot.slane %v3924_v13, 9  ;;  %v4794_v26 = vrot.slane %v3925_v19, 9  ;;  %v4795_v57 = vrot.slane %v3926_v40, 9  ;;  %v4071_v36 = vmax.f32 %v3902_v23, %v4792_v38 }
 0x3a1   : > { %v4072_v63 = vmax.f32 %v3924_v13, %v4793_v11  ;;  %v4073_v10 = vmax.f32 %v3925_v19, %v4794_v26  ;;  %v4074_v7 = vmax.f32 %v3926_v40, %v4795_v57  ;;  %v4095_v52 = vmax.f32 %v4067_v46, %v4071_v36 }
 0x3a3   : > { %v4096_v20 = vmax.f32 %v4068_v3, %v4072_v63  ;;  %v4097_v0 = vmax.f32 %v4069_v25, %v4073_v10  ;;  %v4098_v42 = vmax.f32 %v4070_v60, %v4074_v7  ;;  %v4134_v27 = vperm.slane %v4095_v52, 0 }
 0x3a5   : > { %v4135_v43 = vperm.slane %v4096_v20, 0  ;;  %v4136_v44 = vperm.slane %v4097_v0, 0  ;;  %v4137_v15 = vperm.slane %v4098_v42, 0 }
 0x3a7   : > { %v4149_v55 = vsel %vm3287_vm12, %v4135_v43, %v4134_v27 }
 0x3a8   : > { %v4150_v33 = vsel %vm3289_vm13, %v4136_v44, %v4149_v55  ;;  %v3872_v44 = vpop.f32.mrf.mxu2 }
 0x3a9   : > { %v4151_v16 = vsel %vm3291_vm14, %v4137_v15, %v4150_v33 }
 0x3aa   : > { %4165 = vst.msk [vmem:[#allocation4 + $0x11] sm:$0xf] %vm4163_vm10, %v4151_v16 }
 0x3b1   : > { %v3836_v9 = vpop.f32.mrf.mxu1  ;;  %v4178_v5 = vld [vmem:[#allocation4 + $0x12] sm:$0xf] }
 0x3b2   : > { %v4174_v22 = vld [vmem:[#allocation4 + $0x11] sm:$0xf]  ;;  %v3866_v6 = vadd.f32 %v3865_v4, %v3836_v9  ;;  %4229 = vrot.lane.b32.xlu0 %v4178_v5, %s5724_s25 }
 0x3b3   : > { %v4185_v49 = vld [vmem:[#allocation4 + $0x11] sm:$0xf]  ;;  %4213 = vrot.lane.b32.xlu2 %v4174_v22, %s5722_s23 }
 0x3b4   : > { %4259 = vrot.lane.b32.xlu1 %v4185_v49, %s5727_s20  ;;  %v3883_v2 = vmul.f32 %v7482_v41, %v3866_v6  ;;  %v4181_v14 = vld [vmem:[#allocation4 + $0x10] sm:$0xf] }
 0x3b5   : > { %v4189_v34 = vld [vmem:[#allocation4 + $0x12] sm:$0xf] }
 0x3b6   : > { %v3895_v56 = vadd.f32 %v7487_v47, %v3883_v2  ;;  %v4197_v62 = vld [vmem:[#allocation4 + $0x11] sm:$0xf] }
 0x3b7   : > { %v4193_v35 = vld [vmem:[#allocation4 + $0x10] sm:$0xf] }
 0x3b8   : > { %v3903_v50 = vmax.f32 %v3895_v56, 0.0 }
 0x3b9   : > { %v3838_v58 = vpop.f32.mrf.mxu1 }
 0x3ba   : > { %4243 = vrot.lane.b32.xlu0 %v4181_v14, %s5728_s21  ;;  %v3868_v59 = vadd.f32 %v3867_v8, %v3838_v58  ;;  %v3927_v17 = vrot.slane %v3903_v50, 2  ;;  %v3928_v29 = vrot.slane %v3903_v50, 4  ;;  %v3929_v30 = vrot.slane %v3903_v50, 6 }
 0x3bb   : > { %4275 = vrot.lane.b32.xlu2 %v4189_v34, %s5726_s19  ;;  %v4796_v31 = vrot.slane %v3903_v50, 9 }
 0x3bc   : > { %v3884_v39 = vmul.f32 %v7482_v41, %v3868_v59  ;;  %v4797_v51 = vrot.slane %v3927_v17, 9  ;;  %v4798_v12 = vrot.slane %v3928_v29, 9  ;;  %v4799_v48 = vrot.slane %v3929_v30, 9 }
 0x3bd   : > { %v4075_v24 = vmax.f32 %v3903_v50, %v4796_v31 }
 0x3be   : > { %v3896_v1 = vadd.f32 %v7487_v47, %v3884_v39  ;;  %v4076_v13 = vmax.f32 %v3927_v17, %v4797_v51  ;;  %v4077_v19 = vmax.f32 %v3928_v29, %v4798_v12  ;;  %v4078_v40 = vmax.f32 %v3929_v30, %v4799_v48 }
 0x3c0   : > { %v3904_v37 = vmax.f32 %v3896_v1, 0.0 }
 0x3c2   : > { %4305 = vrot.lane.b32.xlu0 %v4197_v62, %s5729_s30  ;;  %v3930_v54 = vrot.slane %v3904_v37, 2  ;;  %v3931_v53 = vrot.slane %v3904_v37, 4  ;;  %v3932_v61 = vrot.slane %v3904_v37, 6  ;;  %v4800_v28 = vrot.slane %v3904_v37, 9 }
 0x3c3   : > { %4289 = vrot.lane.b32.xlu2 %v4193_v35, %s5730_s11 }
 0x3c4   : > { %v4801_v32 = vrot.slane %v3930_v54, 9  ;;  %v4802_v23 = vrot.slane %v3931_v53, 9  ;;  %v4803_v18 = vrot.slane %v3932_v61, 9  ;;  %v4079_v21 = vmax.f32 %v3904_v37, %v4800_v28 }
 0x3c5   : > { %v3841_v57 = vpop.f32.mrf.mxu1 }
 0x3c6   : > { %v4080_v38 = vmax.f32 %v3930_v54, %v4801_v32  ;;  %v4081_v46 = vmax.f32 %v3931_v53, %v4802_v23  ;;  %v4082_v11 = vmax.f32 %v3932_v61, %v4803_v18  ;;  %v4099_v26 = vmax.f32 %v4075_v24, %v4079_v21 }
 0x3c7   : > { %v3871_v60 = vadd.f32 %v3870_v45, %v3841_v57 }
 0x3c8   : > { %v4100_v36 = vmax.f32 %v4076_v13, %v4080_v38  ;;  %v4101_v3 = vmax.f32 %v4077_v19, %v4081_v46  ;;  %v4102_v25 = vmax.f32 %v4078_v40, %v4082_v11  ;;  %v4138_v63 = vperm.slane %v4099_v26, 0 }
 0x3c9   : > { %v3885_v52 = vmul.f32 %v7482_v41, %v3871_v60 }
 0x3ca   : > { %v4139_v10 = vperm.slane %v4100_v36, 0  ;;  %v4140_v7 = vperm.slane %v4101_v3, 0  ;;  %v4141_v20 = vperm.slane %v4102_v25, 0  ;;  %v4200_v36 = vld [vmem:[#allocation4 + $0x29] sm:$0xf]  ;;  %v7549_v25 = vpop.permute.xlu2 %4295 }
 0x3cb   : > { %v3897_v27 = vadd.f32 %v7487_v47, %v3885_v52 }
 0x3cc   : > { %v4152_v0 = vsel %vm3287_vm12, %v4139_v10, %v4138_v63  ;;  %v4870_v63 = vld [vmem:[%s7633_s7 + $0x38] sm:$0xff]  ;;  %v4226_v10 = vpop.permute.xlu1 %4225 }
 0x3cd   : > { %v4153_v42 = vsel %vm3289_vm13, %v4140_v7, %v4152_v0  ;;  %v3905_v15 = vmax.f32 %v3897_v27, 0.0  ;;  %v3843_v55 = vpop.f32.mrf.mxu1  ;;  %4454 = vmatpush.bf16.msrb.mxu3 %v4870_v63  ;;  %v4210_v7 = vpop.permute.xlu0 %4209  ;;  %v4868_v0 = vld [vmem:[%s7633_s7 + $0x28] sm:$0xff] }
 0x3ce   : > { %v4154_v43 = vsel %vm3291_vm14, %v4141_v20, %v4153_v42  ;;  %v3873_v33 = vadd.f32 %v3872_v44, %v3843_v55  ;;  %v4869_v20 = vld [vmem:[%s7633_s7 + $0x30] sm:$0xff] }
 0x3cf   : > { %4166 = vst.msk [vmem:[#allocation4 + $0x19] sm:$0xf] %vm4163_vm10, %v4154_v43  ;;  %v3933_v4 = vrot.slane %v3905_v15, 2  ;;  %v3934_v9 = vrot.slane %v3905_v15, 4  ;;  %v3935_v5 = vrot.slane %v3905_v15, 6  ;;  %v4804_v49 = vrot.slane %v3905_v15, 9 }
 0x3d0   : > { %v3886_v16 = vmul.f32 %v7482_v41, %v3873_v33  ;;  %v4867_v33 = vld [vmem:[%s7633_s7 + $0x20] sm:$0xff] }
 0x3d1   : > { %v4805_v58 = vrot.slane %v3933_v4, 9  ;;  %v4806_v8 = vrot.slane %v3934_v9, 9  ;;  %v4807_v14 = vrot.slane %v3935_v5, 9  ;;  %v4083_v17 = vmax.f32 %v3905_v15, %v4804_v49  ;;  %4455 = vmatpush.bf16.msrb.mxu3 %v4869_v20 }
 0x3d2   : > { %v3898_v22 = vadd.f32 %v7487_v47, %v3886_v16  ;;  %v4168_v16 = vld [vmem:[#allocation4] sm:$0xf] }
 0x3d3   : > { %v4084_v31 = vmax.f32 %v3933_v4, %v4805_v58  ;;  %v4085_v62 = vmax.f32 %v3934_v9, %v4806_v8  ;;  %v4086_v37 = vmax.f32 %v3935_v5, %v4807_v14  ;;  %v4169_v4 = vld [vmem:[#allocation4 + $0x8] sm:$0xf]  ;;  %v4317_v5 = vsel %vm1891_vm2, %v4168_v16, %v4210_v7  ;;  %v4866_v8 = vld [vmem:[%s7633_s7 + $0x18] sm:$0xff] }
 0x3d4   : > { %v3906_v6 = vmax.f32 %v3898_v22, 0.0  ;;  %v4228_v60 = vpop.permute.xlu2 %4227 }
 0x3d5   : > { %4456 = vmatpush.bf16.msrb.mxu3 %v4868_v0 }
 0x3d6   : > { %v4186_v2 = vld [vmem:[#allocation4 + $0x19] sm:$0xf]  ;;  %v3936_v50 = vrot.slane %v3906_v6, 2  ;;  %v3937_v59 = vrot.slane %v3906_v6, 4  ;;  %v3938_v41 = vrot.slane %v3906_v6, 6  ;;  %v4808_v39 = vrot.slane %v3906_v6, 9 }
 0x3d7   : > { %v4179_v56 = vld [vmem:[#allocation4 + $0x1a] sm:$0xf]  ;;  %4261 = vrot.lane.b32.xlu2 %v4186_v2, %s5727_s20 }
 0x3d8   : > { %4231 = vrot.lane.b32.xlu1 %v4179_v56, %s5724_s25  ;;  %v4175_v34 = vld [vmem:[#allocation4 + $0x19] sm:$0xf]  ;;  %v4809_v47 = vrot.slane %v3936_v50, 9  ;;  %v4810_v29 = vrot.slane %v3937_v59, 9  ;;  %v4811_v30 = vrot.slane %v3938_v41, 9  ;;  %v4087_v1 = vmax.f32 %v3906_v6, %v4808_v39 }
 0x3d9   : > { %4215 = vrot.lane.b32.xlu0 %v4175_v34, %s5722_s23  ;;  %v4182_v28 = vld [vmem:[#allocation4 + $0x18] sm:$0xf]  ;;  %4457 = vmatpush.bf16.msrb.mxu3 %v4867_v33  ;;  %v4321_v56 = vsel %vm2023_vm9, %v4317_v5, %v4226_v10 }
 0x3da   : > { %v4088_v51 = vmax.f32 %v3936_v50, %v4809_v47  ;;  %v4089_v12 = vmax.f32 %v3937_v59, %v4810_v29  ;;  %v4090_v48 = vmax.f32 %v3938_v41, %v4811_v30  ;;  %v4103_v35 = vmax.f32 %v4083_v17, %v4087_v1  ;;  %v4190_v24 = vld [vmem:[#allocation4 + $0x1a] sm:$0xf]  ;;  %v4201_v59 = vld [vmem:[#allocation4 + $0x12] sm:$0xf] }
 0x3db   : > { %v4194_v40 = vld [vmem:[#allocation4 + $0x18] sm:$0xf]  ;;  %v4353_v47 = vrot.slane %v4201_v59, 4 }
 0x3dc   : > { %v4104_v54 = vmax.f32 %v4084_v31, %v4088_v51  ;;  %v4105_v53 = vmax.f32 %v4085_v62, %v4089_v12  ;;  %v4106_v61 = vmax.f32 %v4086_v37, %v4090_v48  ;;  %v4142_v32 = vperm.slane %v4103_v35, 0  ;;  %v4198_v3 = vld [vmem:[#allocation4 + $0x19] sm:$0xf]  ;;  %v4242_v52 = vpop.permute.xlu2 %4241  ;;  %v4864_v51 = vld [vmem:[%s7633_s7 + $0x8] sm:$0xff]  ;;  %v4863_v48 = vld [vmem:[%s7633_s7] sm:$0xff] }
 0x3dd   : > { %v4325_v34 = vsel %vm3680_vm0, %v4321_v56, %v4242_v52  ;;  %4458 = vmatpush.bf16.msrb.mxu3 %v4866_v8  ;;  %v4865_v30 = vld [vmem:[%s7633_s7 + $0x10] sm:$0xff]  ;;  %v5687_v8 = vld [vmem:[%s7634_s8] ss:$0 sm:$0xff] }
 0x3de   : > { %v4143_v23 = vperm.slane %v4104_v54, 0  ;;  %v4144_v18 = vperm.slane %v4105_v53, 0  ;;  %v4145_v21 = vperm.slane %v4106_v61, 0  ;;  %v4171_v61 = vld [vmem:[#allocation4 + $0x18] sm:$0xf] }
 0x3e0   : > { %4245 = vrot.lane.b32.xlu1 %v4182_v28, %s5728_s21  ;;  %v4155_v45 = vsel %vm3287_vm12, %v4143_v23, %v4142_v32  ;;  %vm4357_vm12 = vcmask 1043456   ;;  %v4871_v28 = vld [vmem:[%s7633_s7 + $0x40] sm:$0xff]  ;;  %v4170_v32 = vld [vmem:[#allocation4 + $0x10] sm:$0xf] }
 0x3e1   : > { %4277 = vrot.lane.b32.xlu0 %v4190_v24, %s5726_s19  ;;  %v4156_v13 = vsel %vm3289_vm13, %v4144_v18, %v4155_v45  ;;  %4459 = vmatpush.bf16.msrb.mxu3 %v4865_v30 }
 0x3e2   : > { %v4157_v19 = vsel %vm3291_vm14, %v4145_v21, %v4156_v13 }
 0x3e3   : > { %4167 = vst.msk [vmem:[#allocation4 + $0x21] sm:$0xf] %vm4163_vm10, %v4157_v19 }
 0x3e5   : > { %4460 = vmatpush.bf16.msrb.mxu3 %v4864_v51 }
 0x3e9   : > { %4291 = vrot.lane.b32.xlu0 %v4194_v40, %s5730_s11  ;;  %4461 = vmatpush.bf16.msrb.mxu3 %v4863_v48 }
 0x3ea   : > { %v4191_v38 = vld [vmem:[#allocation4 + $0x22] sm:$0xf] }
 0x3eb   : > { %v4183_v46 = vld [vmem:[#allocation4 + $0x20] sm:$0xf]  ;;  %4279 = vrot.lane.b32.xlu1 %v4191_v38, %s5726_s19  ;;  %v4258_v27 = vpop.permute.xlu0 %4257 }
 0x3ec   : > { %4247 = vrot.lane.b32.xlu2 %v4183_v46, %s5728_s21  ;;  %v4187_v11 = vld [vmem:[#allocation4 + $0x21] sm:$0xf]  ;;  %v4329_v41 = vsel %vm3689_vm4, %v4325_v34, %v4258_v27  ;;  %s4587_s21 = sshll.u32 %s7695_s14, 3 }
 0x3ed   : > { %v4195_v26 = vld [vmem:[#allocation4 + $0x20] sm:$0xf]  ;;  %v4212_v42 = vpop.permute.xlu1 %4211  ;;  %4475 = vmatpush.bf16.msra.mxu3 %v4871_v28  ;;  %s357_s28 = scalar_lea.vmem %s7636_s10, %s4587_s21 }
 0x3ee   : > { %v4199_v57 = vld [vmem:[#allocation4 + $0x21] sm:$0xf]  ;;  %v4318_v9 = vsel %vm1891_vm2, %v4169_v4, %v4212_v42 }
 0x3ef   : > { %v4322_v49 = vsel %vm2023_vm9, %v4318_v9, %v4228_v60 }
 0x3f1   : > { %4263 = vrot.lane.b32.xlu0 %v4187_v11, %s5727_s20 }
 0x3f3   : > { %4293 = vrot.lane.b32.xlu1 %v4195_v26, %s5730_s11  ;;  %v4203_v26 = vld [vmem:[#allocation4 + $0x22] sm:$0xf] }
 0x3f4   : > { %4309 = vrot.lane.b32.xlu2 %v4199_v57, %s5729_s30  ;;  %v4204_v57 = vld [vmem:[#allocation4 + $0x2a] sm:$0xf]  ;;  %v4355_v10 = vrot.slane %v4203_v26, 4 }
 0x3f5   : > { %v4274_v15 = vpop.permute.xlu1 %4273  ;;  %v4356_v52 = vrot.slane %v4204_v57, 4 }
 0x3f6   : > { %v4333_v39 = vsel %vm3698_vm5, %v4329_v41, %v4274_v15  ;;  %v4202_v15 = vld [vmem:[#allocation4 + $0x1a] sm:$0xf] }
 0x3f7   : > { %v4354_v33 = vrot.slane %v4202_v15, 4 }
 0x3f9   : > { %4311 = vrot.lane.b32.xlu0 %v4200_v36, %s5729_s30 }
 0x3fb   : > { %4307 = vrot.lane.b32.xlu1 %v4198_v3, %s5729_s30 }
 0x40d   : > { %v4214_v43 = vpop.permute.xlu2 %4213 }
 0x40e   : > { %v4319_v18 = vsel %vm1891_vm2, %v4170_v32, %v4214_v43 }
 0x415   : > { %v4276_v55 = vpop.permute.xlu2 %4275 }
 0x41d   : > { %v4290_v50 = vpop.permute.xlu2 %4289 }
 0x41e   : > { %v4337_v17 = vsel %vm3707_vm6, %v4333_v39, %v4290_v50  ;;  %v5688_v50 = vld [vmem:[%s7635_s9] ss:$0 sm:$0xff] }
 0x424   : > { %v4230_v44 = vpop.permute.xlu0 %4229 }
 0x425   : > { %v4323_v45 = vsel %vm2023_vm9, %v4319_v18, %v4230_v44 }
 0x426   : > { %v4260_v6 = vpop.permute.xlu1 %4259 }
 0x42c   : > { %v4244_v22 = vpop.permute.xlu0 %4243 }
 0x42d   : > { %v4326_v2 = vsel %vm3680_vm0, %v4322_v49, %v4244_v22 }
 0x42e   : > { %v4330_v58 = vsel %vm3689_vm4, %v4326_v2, %v4260_v6 }
 0x42f   : > { %v4334_v14 = vsel %vm3698_vm5, %v4330_v58, %v4276_v55 }
 0x431   : > { %v4262_v54 = vpop.permute.xlu2 %4261 }
 0x434   : > { %v4306_v29 = vpop.permute.xlu0 %4305 }
 0x435   : > { %v4341_v1 = vsel %vm3716_vm7, %v4337_v17, %v4306_v29 }
 0x436   : > { %v4358_v31 = vsel %vm4357_vm12, %v4341_v1, %v4353_v47 }
 0x437   : > { %4362 = vst [vmem:[#allocation1] ss:$2 sm:$0xff] %v4358_v31 }
 0x446   : > { %v4248_v23 = vpop.permute.xlu2 %4247 }
 0x44a   : > { %v4232_v37 = vpop.permute.xlu1 %4231 }
 0x44b   : > { %v4216_v62 = vpop.permute.xlu0 %4215 }
 0x44c   : > { %v4320_v24 = vsel %vm1891_vm2, %v4171_v61, %v4216_v62 }
 0x44d   : > { %v4324_v13 = vsel %vm2023_vm9, %v4320_v24, %v4232_v37 }
 0x44e   : > { %v4328_v38 = vsel %vm3680_vm0, %v4324_v13, %v4248_v23  ;;  %v4310_v63 = vpop.permute.xlu2 %4309 }
 0x452   : > { %v4246_v35 = vpop.permute.xlu1 %4245 }
 0x453   : > { %v4278_v12 = vpop.permute.xlu0 %4277  ;;  %v4327_v19 = vsel %vm3680_vm0, %v4323_v45, %v4246_v35 }
 0x454   : > { %v4331_v46 = vsel %vm3689_vm4, %v4327_v19, %v4262_v54 }
 0x455   : > { %v4335_v36 = vsel %vm3698_vm5, %v4331_v46, %v4278_v12 }
 0x45b   : > { %v4292_v53 = vpop.permute.xlu0 %4291 }
 0x45c   : > { %v4338_v55 = vsel %vm3707_vm6, %v4334_v14, %v4292_v53 }
 0x45d   : > { %v4280_v21 = vpop.permute.xlu1 %4279 }
 0x463   : > { %v4264_v40 = vpop.permute.xlu0 %4263 }
 0x464   : > { %v4332_v11 = vsel %vm3689_vm4, %v4328_v38, %v4264_v40 }
 0x465   : > { %v4336_v3 = vsel %vm3698_vm5, %v4332_v11, %v4280_v21  ;;  %v4294_v60 = vpop.permute.xlu1 %4293 }
 0x466   : > { %v4339_v7 = vsel %vm3707_vm6, %v4335_v36, %v4294_v60  ;;  %v4340_v27 = vsel %vm3707_vm6, %v4336_v3, %v7549_v25 }
 0x467   : > { %v4343_v20 = vsel %vm3716_vm7, %v4339_v7, %v4310_v63 }
 0x468   : > { %v4360_v0 = vsel %vm4357_vm12, %v4343_v20, %v4355_v10 }
 0x469   : > { %4366 = vst [vmem:[#allocation1 + $0x10] ss:$2 sm:$0xff] %v4360_v0 }
 0x46b   : > { %v4312_v42 = vpop.permute.xlu0 %4311 }
 0x46c   : > { %v4344_v43 = vsel %vm3716_vm7, %v4340_v27, %v4312_v42 }
 0x46d   : > { %v4361_v44 = vsel %vm4357_vm12, %v4344_v43, %v4356_v52  ;;  %v4308_v16 = vpop.permute.xlu1 %4307 }
 0x46e   : > { %4368 = vst [vmem:[#allocation1 + $0x11] ss:$2 sm:$0xff] %v4361_v44  ;;  %v4342_v4 = vsel %vm3716_vm7, %v4338_v55, %v4308_v16 }
 0x46f   : > { %v4359_v9 = vsel %vm4357_vm12, %v4342_v4, %v4354_v33 }
 0x470   : > { %4364 = vst [vmem:[#allocation1 + $0x1] ss:$2 sm:$0xff] %v4359_v9 }
 0x475   : > { %v4371_v5 = vld.sshfl [vmem:[#allocation1 + $0x10] sm:$0xff pattern:$0x75316420]  ;;  %v4372_v6 = vld.sshfl [vmem:[#allocation1 + $0x18] sm:$0xff pattern:$0x75316420] }
 0x477   : > { %v4369_v22 = vld.sshfl [vmem:[#allocation1] sm:$0xff pattern:$0x75316420]  ;;  %v4370_v25 = vld.sshfl [vmem:[#allocation1 + $0x8] sm:$0xff pattern:$0x75316420] }
 0x478   : > { %v4377_v49 = vpack.c.bf16 %v4371_v5, %v4369_v22  ;;  %v4378_v2 = vpack.c.bf16 %v4372_v6, %v4370_v25 }
 0x47a   : > { %4462 = vmatmul.bf16.vlgmr.msrb.gmra.mxu3 %v4377_v49 }
 0x48a   : > { %4848 = vmatmul.msk.bf16.vlgmr.msra.gmra.mxu3 %vm1891_vm2, %v4378_v2 }
 0x4fd   : > { %v4463_v56 = vpop.f32.mrf.mxu3 }
 0x505   : > { %v4465_v58 = vpop.f32.mrf.mxu3 }
 0x50d   : > { %v4477_v14 = vpop.f32.mrf.mxu3 }
 0x50e   : > { %v4478_v34 = vadd.f32 %v4477_v14, %v4463_v56 }
 0x510   : > { %v4486_v59 = vmul.f32 %v5687_v8, %v4478_v34 }
 0x512   : > { %v4492_v41 = vadd.f32 %v5688_v50, %v4486_v59 }
 0x514   : > { %4494 = vxpose.xlu1.b32.start [1/2] (short) (narrow) %v4492_v41, 8 }
 0x515   : > { %v4479_v39 = vpop.f32.mrf.mxu3 }
 0x516   : > { %v4480_v17 = vadd.f32 %v4479_v39, %v4465_v58 }
 0x518   : > { %v4487_v47 = vmul.f32 %v5687_v8, %v4480_v17 }
 0x51a   : > { %v4493_v29 = vadd.f32 %v5688_v50, %v4487_v47 }
 0x51c   : > { %4495 = vxpose.xlu1.b32.end [2/2] (short) (narrow) %v4493_v29, 8 }
 0x5b8   : > { %v4510_v30 = vpop.trf.xlu1 }
 0x5b9   : > { %4526 = vst.msk [vmem:[%s357_s28] sm:$0xff] %vm1891_vm2, %v4510_v30 }
 0x5ba PF: > { %s20_s13 = sadd.s32 1, %s5715_s13  }
 0x5bb   : > { %p17_p4 = scmp.ge.s32.totalorder %s20_s13, 4  }
 0x5bd   :  { %19 = sbr.rel (!%p17_p4) target bundleno = 1 (0x1), region = 99 }

</bundles_post_ra>
